<compile_context>
chip_gen: v7x
topology: tpu7x:2x2x1
jax: 0.10.0
libtpu: 0.0.40
codegen_flags: <defaults>
</compile_context>

<pallas_src>
import jax
import jax.numpy as jnp
import numpy as np
from jax.experimental import pallas as pl
from jax.experimental.pallas import tpu as pltpu

EPS = 1e-5
BF16 = jnp.bfloat16

# -------- static model configuration (from the PyTorch module) --------
CIN, L0 = 6, 100
C1, K1 = 20, 11
C2, K2 = 10, 14
C3, K3 = 20, 5
L1 = L0 - K1 + 1          # 90
P1 = L1 // 2              # 45
L2 = P1 - K2 + 1          # 32
P2 = L2 // 2              # 16
L3 = P2 - K3 + 1          # 12
P3 = L3 // 2              # 6
F1, F2, F3 = 128, 64, 26
F3P = 128                 # padded output lanes -> lane-dense final store
CB2 = 32                  # conv2 im2col tap-block stride (>= C1, no 128-lane crossing)
CB3 = 16                  # conv3 im2col tap-block stride (>= C2)


# --------------------------------- kernel ------------------------------------

def cnn_kernel(xim_ref, w1_ref, w2_ref, w3_ref,
               se1_ref, so1_ref, se2_ref, so2_ref, se3_ref, so3_ref,
               fw1_ref, fw2_ref, fw3_ref, pp_ref,
               out_ref,
               p1_ref, im2_ref, p2_ref, im3_ref, p3_ref, fc_ref):
    N = out_ref.shape[0]

    def bn_train(y, g, b, rows):
        # Training-mode BatchNorm1d: two-pass batch statistics (biased variance), f32.
        inv_cnt = 1.0 / float(rows)
        mean = jnp.sum(y, axis=0, keepdims=True) * inv_cnt
        d = y - mean
        var = jnp.sum(d * d, axis=0, keepdims=True) * inv_cnt
        return d * (jax.lax.rsqrt(var + EPS) * g) + b

    def pool(y, se_ref, so_ref):
        # MaxPool1d(2): exact 0/1 selectors in bf16 (MXU), max in f32 (VPU).
        yb = y.astype(BF16)
        pe = jnp.dot(se_ref[...], yb, preferred_element_type=jnp.float32)
        po = jnp.dot(so_ref[...], yb, preferred_element_type=jnp.float32)
        return jnp.maximum(pe, po)

    # ---- conv1 (single im2col matmul, contraction K1*CIN) + relu + bn1 + pool1 ----
    a = jnp.dot(xim_ref[...], w1_ref[...], preferred_element_type=jnp.float32)
    a = jnp.maximum(a + pp_ref[0:1, :C1], 0.0)                     # (L1*N, C1)
    a = bn_train(a, pp_ref[1:2, :C1], pp_ref[2:3, :C1], L1 * N)
    p1_ref[...] = pool(a, se1_ref, so1_ref)                        # (P1*N, C1)

    # ---- conv2: im2col built in VMEM scratch from contiguous row windows ----
    im2_ref[...] = jnp.zeros(im2_ref.shape, im2_ref.dtype)         # zero the pad lanes
    for k in range(K2):
        im2_ref[:, k * CB2:k * CB2 + C1] = p1_ref[pl.ds(k * N, L2 * N), :]
    a = jnp.dot(im2_ref[...].astype(BF16), w2_ref[...],
                preferred_element_type=jnp.float32)                # (L2*N, C2)
    a = jnp.maximum(a + pp_ref[3:4, :C2], 0.0)
    a = bn_train(a, pp_ref[4:5, :C2], pp_ref[5:6, :C2], L2 * N)
    p2_ref[...] = pool(a, se2_ref, so2_ref)                        # (P2*N, C2)

    # ---- conv3 ----
    im3_ref[...] = jnp.zeros(im3_ref.shape, im3_ref.dtype)
    for k in range(K3):
        im3_ref[:, k * CB3:k * CB3 + C2] = p2_ref[pl.ds(k * N, L3 * N), :]
    a = jnp.dot(im3_ref[...].astype(BF16), w3_ref[...],
                preferred_element_type=jnp.float32)                # (L3*N, C3)
    a = jnp.maximum(a + pp_ref[6:7, :C3], 0.0)
    a = bn_train(a, pp_ref[7:8, :C3], pp_ref[8:9, :C3], L3 * N)
    p3_ref[...] = pool(a, se3_ref, so3_ref)                        # (P3*N, C3)

    # ---- flatten: P3 lane-block copies (independent of N); fw1 is pre-permuted ----
    for l in range(P3):
        fc_ref[:, l * C3:(l + 1) * C3] = p3_ref[pl.ds(l * N, N), :]

    # ---- fully batched FC stack; final store is 128-lane dense ----
    h = jnp.dot(fc_ref[...].astype(BF16), fw1_ref[...],
                preferred_element_type=jnp.float32) + pp_ref[9:10, :]
    h = jnp.maximum(h, 0.0)
    h = jnp.dot(h.astype(BF16), fw2_ref[...],
                preferred_element_type=jnp.float32) + pp_ref[10:11, :F2]
    h = jnp.maximum(h, 0.0)
    out_ref[...] = jnp.dot(h.astype(BF16), fw3_ref[...],
                           preferred_element_type=jnp.float32) + pp_ref[11:12, :]


# ----------------------------- wrapper helpers --------------------------------

def _pool_sel(lc, nb):
    """Even/odd 0/1 row selectors for MaxPool1d(2) on a (lc*nb, C) length-major tile."""
    lp = lc // 2
    rows = np.arange(lp * nb)
    m, s = rows // nb, rows % nb
    se = np.zeros((lp * nb, lc * nb), np.float32)
    so = np.zeros((lp * nb, lc * nb), np.float32)
    se[rows, (2 * m) * nb + s] = 1.0
    so[rows, (2 * m + 1) * nb + s] = 1.0
    return jnp.asarray(se, dtype=BF16), jnp.asarray(so, dtype=BF16)


def _conv_weight(w, blk):
    """torch (Co, Ci, K) -> shared (K*blk, Co) weight; tap blocks padded to blk lanes."""
    Co, Ci, K = w.shape
    wt = jnp.transpose(w, (2, 1, 0)).astype(jnp.float32)           # (K, Ci, Co)
    wp = jnp.zeros((K, blk, Co), jnp.float32).at[:, :Ci, :].set(wt)
    return wp.reshape(K * blk, Co).astype(BF16)


def _packed_rows(p):
    """Pack the 12 tiny per-channel parameter rows into one (12, 128) f32 array."""
    def row(v):
        return jnp.zeros((128,), jnp.float32).at[:v.shape[0]].set(v.astype(jnp.float32))
    return jnp.stack([row(p["b1"]), row(p["g1"]), row(p["be1"]),
                      row(p["b2"]), row(p["g2"]), row(p["be2"]),
                      row(p["b3"]), row(p["g3"]), row(p["be3"]),
                      row(p["fb1"]), row(p["fb2"]), row(p["fb3"])], axis=0)


# --------------------------------- wrapper -----------------------------------

def cnn_forward(x, p):
    """x: (N, 6, 100) float32 (PyTorch NCL).  Returns (N, 26) float32."""
    N = x.shape[0]

    # conv1 im2col built wrapper-side: row = l*N + n, column = k*CIN + c.
    xt = jnp.transpose(x, (2, 0, 1)).astype(jnp.float32)           # (L0, N, CIN)
    cols = jnp.stack([xt[k:k + L1] for k in range(K1)], axis=2)    # (L1, N, K1, CIN)
    xim = cols.reshape(L1 * N, K1 * CIN).astype(BF16)

    w1 = _conv_weight(p["w1"], CIN)        # (66, 20), dense
    w2 = _conv_weight(p["w2"], CB2)        # (448, 10), tap blocks padded to 32 lanes
    w3 = _conv_weight(p["w3"], CB3)        # (80, 20),  tap blocks padded to 16 lanes

    se1, so1 = _pool_sel(L1, N)
    se2, so2 = _pool_sel(L2, N)
    se3, so3 = _pool_sel(L3, N)

    # fc1 weight permuted so its row index is l*C3 + c (kernel flatten order);
    # torch flatten order is c*P3 + l.
    fw1p = jnp.transpose(p["fw1"].reshape(F1, C3, P3), (2, 1, 0)).reshape(P3 * C3, F1)
    fw1p = fw1p.astype(BF16)
    fw2 = p["fw2"].T.astype(BF16)
    fw3p = jnp.zeros((F2, F3P), jnp.float32).at[:, :F3].set(p["fw3"].T).astype(BF16)

    pp = _packed_rows(p)                   # (12, 128) f32

    vmem = pl.BlockSpec(memory_space=pltpu.MemorySpace.VMEM)
    out = pl.pallas_call(
        cnn_kernel,
        out_shape=jax.ShapeDtypeStruct((N, F3P), jnp.float32),
        in_specs=[vmem] * 14,
        out_specs=vmem,
        scratch_shapes=[
            pltpu.VMEM((P1 * N, C1), jnp.float32),        # pool1 output
            pltpu.VMEM((L2 * N, K2 * CB2), jnp.float32),  # conv2 im2col tile
            pltpu.VMEM((P2 * N, C2), jnp.float32),        # pool2 output
            pltpu.VMEM((L3 * N, K3 * CB3), jnp.float32),  # conv3 im2col tile
            pltpu.VMEM((P3 * N, C3), jnp.float32),        # pool3 output
            pltpu.VMEM((N, P3 * C3), jnp.float32),        # fc input (N, 120)
        ],
    )(xim, w1, w2, w3, se1, so1, se2, so2, se3, so3, fw1p, fw2, fw3p, pp)
    return out[:, :F3]


# --------------------------- pure-JAX references -------------------------------

def _ref_conv1d(x, w, b, cast_bf16):
    if cast_bf16:
        x = x.astype(BF16)
        w = w.astype(BF16)
    N, Ci, L = x.shape
    Co, _, K = w.shape
    Lout = L - K + 1
    out = jnp.zeros((N, Co, Lout), jnp.float32)
    for k in range(K):
        out = out + jnp.einsum('ncl,oc->nol', x[:, :, k:k + Lout], w[:, :, k],
                               preferred_element_type=jnp.float32)
    return out + b[None, :, None]


def _ref_bn(x, g, be):
    m = x.mean(axis=(0, 2), keepdims=True)
    d = x - m
    var = (d * d).mean(axis=(0, 2), keepdims=True)
    inv = jax.lax.rsqrt(var + EPS)
    return d * inv * g[None, :, None] + be[None, :, None]


def _ref_pool(x):
    N, C, L = x.shape
    return x.reshape(N, C, L // 2, 2).max(axis=-1)


def _ref_fc(feat, p, cast_bf16):
    def mm(a, w):
        if cast_bf16:
            a = a.astype(BF16)
            w = w.astype(BF16)
        return jnp.dot(a, w, preferred_element_type=jnp.float32)
    h = jax.nn.relu(mm(feat, p["fw1"].T) + p["fb1"])
    h = jax.nn.relu(mm(h, p["fw2"].T) + p["fb2"])
    return mm(h, p["fw3"].T) + p["fb3"]


def ref_forward(x, p, cast_bf16=False):
    a = _ref_pool(_ref_bn(jax.nn.relu(_ref_conv1d(x, p["w1"], p["b1"], cast_bf16)),
                          p["g1"], p["be1"]))
    a = _ref_pool(_ref_bn(jax.nn.relu(_ref_conv1d(a, p["w2"], p["b2"], cast_bf16)),
                          p["g2"], p["be2"]))
    a = _ref_pool(_ref_bn(jax.nn.relu(_ref_conv1d(a, p["w3"], p["b3"], cast_bf16)),
                          p["g3"], p["be3"]))
    feat = a.reshape(a.shape[0], -1)      # torch .view(-1, 20*6), channel-major
    return _ref_fc(feat, p, cast_bf16)


# --------------------------------- params ------------------------------------

def init_params(key):
    ks = jax.random.split(key, 12)

    def u(k, shape, fan_in):
        bound = 1.0 / np.sqrt(fan_in)
        return jax.random.uniform(k, shape, jnp.float32, -bound, bound)

    return {
        "w1": u(ks[0], (20, 6, 11), 6 * 11),   "b1": u(ks[1], (20,), 6 * 11),
        "w2": u(ks[2], (10, 20, 14), 20 * 14), "b2": u(ks[3], (10,), 20 * 14),
        "w3": u(ks[4], (20, 10, 5), 10 * 5),   "b3": u(ks[5], (20,), 10 * 5),
        "g1": jnp.ones((20,), jnp.float32),  "be1": jnp.zeros((20,), jnp.float32),
        "g2": jnp.ones((10,), jnp.float32),  "be2": jnp.zeros((10,), jnp.float32),
        "g3": jnp.ones((20,), jnp.float32),  "be3": jnp.zeros((20,), jnp.float32),
        "fw1": u(ks[6], (128, 120), 120),  "fb1": u(ks[7], (128,), 120),
        "fw2": u(ks[8], (64, 128), 128),   "fb2": u(ks[9], (64,), 128),
        "fw3": u(ks[10], (26, 64), 64),    "fb3": u(ks[11], (26,), 64),
    }


if __name__ == "__main__":
    key = jax.random.PRNGKey(0)
    kx, kp = jax.random.split(key)
    params = init_params(kp)
    # Input length 100 is what the module's view(-1, 20*6) implies; batch = 2.
    x = jax.random.normal(kx, (2, 6, 100), jnp.float32)

    out = jax.block_until_ready(cnn_forward(x, params))
    assert out.shape == (2, 26)

    # Primary check: reference mirroring the kernel's bf16-operand / f32-accum matmuls.
    ref_bf = ref_forward(x, params, cast_bf16=True)
    np.testing.assert_allclose(np.asarray(out), np.asarray(ref_bf), rtol=1e-2, atol=1e-2)

    # Fidelity sanity check against the full-f32 reference (looser, bf16 operands).
    ref32 = ref_forward(x, params, cast_bf16=False)
    np.testing.assert_allclose(np.asarray(out), np.asarray(ref32), rtol=5e-2, atol=5e-2)

    print("KERNEL_OK")
</pallas_src>

<mosaic_0001>
module attributes {stable_mosaic.version = 11 : i64} {
  func.func @cnn_kernel(%arg0: memref<180x66xbf16, #tpu.memory_space<vmem>>, %arg1: memref<66x20xbf16, #tpu.memory_space<vmem>>, %arg2: memref<448x10xbf16, #tpu.memory_space<vmem>>, %arg3: memref<80x20xbf16, #tpu.memory_space<vmem>>, %arg4: memref<90x180xbf16, #tpu.memory_space<vmem>>, %arg5: memref<90x180xbf16, #tpu.memory_space<vmem>>, %arg6: memref<32x64xbf16, #tpu.memory_space<vmem>>, %arg7: memref<32x64xbf16, #tpu.memory_space<vmem>>, %arg8: memref<12x24xbf16, #tpu.memory_space<vmem>>, %arg9: memref<12x24xbf16, #tpu.memory_space<vmem>>, %arg10: memref<120x128xbf16, #tpu.memory_space<vmem>>, %arg11: memref<128x64xbf16, #tpu.memory_space<vmem>>, %arg12: memref<64x128xbf16, #tpu.memory_space<vmem>>, %arg13: memref<12x128xf32, #tpu.memory_space<vmem>>, %arg14: memref<2x128xf32, #tpu.memory_space<vmem>>, %arg15: memref<90x20xf32, #tpu.memory_space<vmem>>, %arg16: memref<64x448xf32, #tpu.memory_space<vmem>>, %arg17: memref<32x10xf32, #tpu.memory_space<vmem>>, %arg18: memref<24x80xf32, #tpu.memory_space<vmem>>, %arg19: memref<12x20xf32, #tpu.memory_space<vmem>>, %arg20: memref<2x120xf32, #tpu.memory_space<vmem>>) attributes {dimension_semantics = [], scalar_prefetch = 0 : i64, scratch_operands = 6 : i64, tpu.core_type = #tpu.core_type<tc>} {
    %c0 = arith.constant 0 : index
    %c0_0 = arith.constant 0 : index
    %0 = vector.load %arg0[%c0, %c0_0] : memref<180x66xbf16, #tpu.memory_space<vmem>>, vector<180x66xbf16>
    %c0_1 = arith.constant 0 : index
    %c0_2 = arith.constant 0 : index
    %1 = vector.load %arg1[%c0_1, %c0_2] : memref<66x20xbf16, #tpu.memory_space<vmem>>, vector<66x20xbf16>
    %cst = arith.constant dense<0.000000e+00> : vector<180x20xf32>
    %2 = tpu.matmul %0, %1, %cst {dimension_numbers = #tpu.dot_dimension_numbers<[1], [0], [0], [1], [0, 0, 1, 1], [], []>} : vector<180x66xbf16>, vector<66x20xbf16>, vector<180x20xf32> -> vector<180x20xf32>
    %c0_3 = arith.constant 0 : index
    %c0_4 = arith.constant 0 : index
    %3 = vector.load %arg13[%c0_3, %c0_4] : memref<12x128xf32, #tpu.memory_space<vmem>>, vector<1x20xf32>
    %4 = vector.broadcast %3 : vector<1x20xf32> to vector<180x20xf32>
    %5 = arith.addf %2, %4 : vector<180x20xf32>
    %cst_5 = arith.constant 0.000000e+00 : f32
    %6 = vector.broadcast %cst_5 : f32 to vector<180x20xf32>
    %7 = arith.maximumf %5, %6 : vector<180x20xf32>
    %c1 = arith.constant 1 : index
    %c0_6 = arith.constant 0 : index
    %8 = vector.load %arg13[%c1, %c0_6] : memref<12x128xf32, #tpu.memory_space<vmem>>, vector<1x20xf32>
    %c2 = arith.constant 2 : index
    %c0_7 = arith.constant 0 : index
    %9 = vector.load %arg13[%c2, %c0_7] : memref<12x128xf32, #tpu.memory_space<vmem>>, vector<1x20xf32>
    %cst_8 = arith.constant dense<0.000000e+00> : vector<20xf32>
    %10 = vector.multi_reduction <add>, %7, %cst_8 [0] : vector<180x20xf32> to vector<20xf32>
    %11 = vector.shape_cast %10 : vector<20xf32> to vector<1x20xf32>
    %cst_9 = arith.constant 0.00555555569 : f32
    %12 = vector.broadcast %cst_9 : f32 to vector<1x20xf32>
    %13 = arith.mulf %11, %12 : vector<1x20xf32>
    %14 = vector.broadcast %13 : vector<1x20xf32> to vector<180x20xf32>
    %15 = arith.subf %7, %14 : vector<180x20xf32>
    %16 = arith.mulf %15, %15 : vector<180x20xf32>
    %cst_10 = arith.constant dense<0.000000e+00> : vector<20xf32>
    %17 = vector.multi_reduction <add>, %16, %cst_10 [0] : vector<180x20xf32> to vector<20xf32>
    %18 = vector.shape_cast %17 : vector<20xf32> to vector<1x20xf32>
    %cst_11 = arith.constant 0.00555555569 : f32
    %19 = vector.broadcast %cst_11 : f32 to vector<1x20xf32>
    %20 = arith.mulf %18, %19 : vector<1x20xf32>
    %cst_12 = arith.constant 9.99999974E-6 : f32
    %21 = vector.broadcast %cst_12 : f32 to vector<1x20xf32>
    %22 = arith.addf %20, %21 : vector<1x20xf32>
    %23 = math.rsqrt %22 : vector<1x20xf32>
    %24 = arith.mulf %23, %8 : vector<1x20xf32>
    %25 = vector.broadcast %24 : vector<1x20xf32> to vector<180x20xf32>
    %26 = arith.mulf %15, %25 : vector<180x20xf32>
    %27 = vector.broadcast %9 : vector<1x20xf32> to vector<180x20xf32>
    %28 = arith.addf %26, %27 : vector<180x20xf32>
    %29 = arith.truncf %28 : vector<180x20xf32> to vector<180x20xbf16>
    %c0_13 = arith.constant 0 : index
    %c0_14 = arith.constant 0 : index
    %30 = vector.load %arg4[%c0_13, %c0_14] : memref<90x180xbf16, #tpu.memory_space<vmem>>, vector<90x180xbf16>
    %cst_15 = arith.constant dense<0.000000e+00> : vector<90x20xf32>
    %31 = tpu.matmul %30, %29, %cst_15 {dimension_numbers = #tpu.dot_dimension_numbers<[1], [0], [0], [1], [0, 0, 1, 1], [], []>} : vector<90x180xbf16>, vector<180x20xbf16>, vector<90x20xf32> -> vector<90x20xf32>
    %c0_16 = arith.constant 0 : index
    %c0_17 = arith.constant 0 : index
    %32 = vector.load %arg5[%c0_16, %c0_17] : memref<90x180xbf16, #tpu.memory_space<vmem>>, vector<90x180xbf16>
    %cst_18 = arith.constant dense<0.000000e+00> : vector<90x20xf32>
    %33 = tpu.matmul %32, %29, %cst_18 {dimension_numbers = #tpu.dot_dimension_numbers<[1], [0], [0], [1], [0, 0, 1, 1], [], []>} : vector<90x180xbf16>, vector<180x20xbf16>, vector<90x20xf32> -> vector<90x20xf32>
    %34 = arith.maximumf %31, %33 : vector<90x20xf32>
    %c0_19 = arith.constant 0 : index
    %c0_20 = arith.constant 0 : index
    %35 = vector.load %arg15[%c0_19, %c0_20] : memref<90x20xf32, #tpu.memory_space<vmem>>, vector<90x20xf32>
    tpu.vector_store %arg15[%c0_19, %c0_20], %34 {strides = array<i32>} : memref<90x20xf32, #tpu.memory_space<vmem>>, vector<90x20xf32>,
    %cst_21 = arith.constant 0.000000e+00 : f32
    %36 = vector.broadcast %cst_21 : f32 to vector<64x448xf32>
    %c0_22 = arith.constant 0 : index
    %c0_23 = arith.constant 0 : index
    %37 = vector.load %arg16[%c0_22, %c0_23] : memref<64x448xf32, #tpu.memory_space<vmem>>, vector<64x448xf32>
    tpu.vector_store %arg16[%c0_22, %c0_23], %36 {strides = array<i32>} : memref<64x448xf32, #tpu.memory_space<vmem>>, vector<64x448xf32>,
    %c0_24 = arith.constant 0 : index
    %c0_25 = arith.constant 0 : index
    %38 = vector.load %arg15[%c0_24, %c0_25] : memref<90x20xf32, #tpu.memory_space<vmem>>, vector<64x20xf32>
    %c0_26 = arith.constant 0 : index
    %c0_27 = arith.constant 0 : index
    %39 = vector.load %arg16[%c0_26, %c0_27] : memref<64x448xf32, #tpu.memory_space<vmem>>, vector<64x20xf32>
    tpu.vector_store %arg16[%c0_26, %c0_27], %38 {strides = array<i32>} : memref<64x448xf32, #tpu.memory_space<vmem>>, vector<64x20xf32>,
    %c2_28 = arith.constant 2 : index
    %c0_29 = arith.constant 0 : index
    %40 = vector.load %arg15[%c2_28, %c0_29] : memref<90x20xf32, #tpu.memory_space<vmem>>, vector<64x20xf32>
    %c0_30 = arith.constant 0 : index
    %c32 = arith.constant 32 : index
    %41 = vector.load %arg16[%c0_30, %c32] : memref<64x448xf32, #tpu.memory_space<vmem>>, vector<64x20xf32>
    tpu.vector_store %arg16[%c0_30, %c32], %40 {strides = array<i32>} : memref<64x448xf32, #tpu.memory_space<vmem>>, vector<64x20xf32>,
    %c4 = arith.constant 4 : index
    %c0_31 = arith.constant 0 : index
    %42 = vector.load %arg15[%c4, %c0_31] : memref<90x20xf32, #tpu.memory_space<vmem>>, vector<64x20xf32>
    %c0_32 = arith.constant 0 : index
    %c64 = arith.constant 64 : index
    %43 = vector.load %arg16[%c0_32, %c64] : memref<64x448xf32, #tpu.memory_space<vmem>>, vector<64x20xf32>
    tpu.vector_store %arg16[%c0_32, %c64], %42 {strides = array<i32>} : memref<64x448xf32, #tpu.memory_space<vmem>>, vector<64x20xf32>,
    %c6 = arith.constant 6 : index
    %c0_33 = arith.constant 0 : index
    %44 = vector.load %arg15[%c6, %c0_33] : memref<90x20xf32, #tpu.memory_space<vmem>>, vector<64x20xf32>
    %c0_34 = arith.constant 0 : index
    %c96 = arith.constant 96 : index
    %45 = vector.load %arg16[%c0_34, %c96] : memref<64x448xf32, #tpu.memory_space<vmem>>, vector<64x20xf32>
    tpu.vector_store %arg16[%c0_34, %c96], %44 {strides = array<i32>} : memref<64x448xf32, #tpu.memory_space<vmem>>, vector<64x20xf32>,
    %c8 = arith.constant 8 : index
    %c0_35 = arith.constant 0 : index
    %46 = vector.load %arg15[%c8, %c0_35] : memref<90x20xf32, #tpu.memory_space<vmem>>, vector<64x20xf32>
    %c0_36 = arith.constant 0 : index
    %c128 = arith.constant 128 : index
    %47 = vector.load %arg16[%c0_36, %c128] : memref<64x448xf32, #tpu.memory_space<vmem>>, vector<64x20xf32>
    tpu.vector_store %arg16[%c0_36, %c128], %46 {strides = array<i32>} : memref<64x448xf32, #tpu.memory_space<vmem>>, vector<64x20xf32>,
    %c10 = arith.constant 10 : index
    %c0_37 = arith.constant 0 : index
    %48 = vector.load %arg15[%c10, %c0_37] : memref<90x20xf32, #tpu.memory_space<vmem>>, vector<64x20xf32>
    %c0_38 = arith.constant 0 : index
    %c160 = arith.constant 160 : index
    %49 = vector.load %arg16[%c0_38, %c160] : memref<64x448xf32, #tpu.memory_space<vmem>>, vector<64x20xf32>
    tpu.vector_store %arg16[%c0_38, %c160], %48 {strides = array<i32>} : memref<64x448xf32, #tpu.memory_space<vmem>>, vector<64x20xf32>,
    %c12 = arith.constant 12 : index
    %c0_39 = arith.constant 0 : index
    %50 = vector.load %arg15[%c12, %c0_39] : memref<90x20xf32, #tpu.memory_space<vmem>>, vector<64x20xf32>
    %c0_40 = arith.constant 0 : index
    %c192 = arith.constant 192 : index
    %51 = vector.load %arg16[%c0_40, %c192] : memref<64x448xf32, #tpu.memory_space<vmem>>, vector<64x20xf32>
    tpu.vector_store %arg16[%c0_40, %c192], %50 {strides = array<i32>} : memref<64x448xf32, #tpu.memory_space<vmem>>, vector<64x20xf32>,
    %c14 = arith.constant 14 : index
    %c0_41 = arith.constant 0 : index
    %52 = vector.load %arg15[%c14, %c0_41] : memref<90x20xf32, #tpu.memory_space<vmem>>, vector<64x20xf32>
    %c0_42 = arith.constant 0 : index
    %c224 = arith.constant 224 : index
    %53 = vector.load %arg16[%c0_42, %c224] : memref<64x448xf32, #tpu.memory_space<vmem>>, vector<64x20xf32>
    tpu.vector_store %arg16[%c0_42, %c224], %52 {strides = array<i32>} : memref<64x448xf32, #tpu.memory_space<vmem>>, vector<64x20xf32>,
    %c16 = arith.constant 16 : index
    %c0_43 = arith.constant 0 : index
    %54 = vector.load %arg15[%c16, %c0_43] : memref<90x20xf32, #tpu.memory_space<vmem>>, vector<64x20xf32>
    %c0_44 = arith.constant 0 : index
    %c256 = arith.constant 256 : index
    %55 = vector.load %arg16[%c0_44, %c256] : memref<64x448xf32, #tpu.memory_space<vmem>>, vector<64x20xf32>
    tpu.vector_store %arg16[%c0_44, %c256], %54 {strides = array<i32>} : memref<64x448xf32, #tpu.memory_space<vmem>>, vector<64x20xf32>,
    %c18 = arith.constant 18 : index
    %c0_45 = arith.constant 0 : index
    %56 = vector.load %arg15[%c18, %c0_45] : memref<90x20xf32, #tpu.memory_space<vmem>>, vector<64x20xf32>
    %c0_46 = arith.constant 0 : index
    %c288 = arith.constant 288 : index
    %57 = vector.load %arg16[%c0_46, %c288] : memref<64x448xf32, #tpu.memory_space<vmem>>, vector<64x20xf32>
    tpu.vector_store %arg16[%c0_46, %c288], %56 {strides = array<i32>} : memref<64x448xf32, #tpu.memory_space<vmem>>, vector<64x20xf32>,
    %c20 = arith.constant 20 : index
    %c0_47 = arith.constant 0 : index
    %58 = vector.load %arg15[%c20, %c0_47] : memref<90x20xf32, #tpu.memory_space<vmem>>, vector<64x20xf32>
    %c0_48 = arith.constant 0 : index
    %c320 = arith.constant 320 : index
    %59 = vector.load %arg16[%c0_48, %c320] : memref<64x448xf32, #tpu.memory_space<vmem>>, vector<64x20xf32>
    tpu.vector_store %arg16[%c0_48, %c320], %58 {strides = array<i32>} : memref<64x448xf32, #tpu.memory_space<vmem>>, vector<64x20xf32>,
    %c22 = arith.constant 22 : index
    %c0_49 = arith.constant 0 : index
    %60 = vector.load %arg15[%c22, %c0_49] : memref<90x20xf32, #tpu.memory_space<vmem>>, vector<64x20xf32>
    %c0_50 = arith.constant 0 : index
    %c352 = arith.constant 352 : index
    %61 = vector.load %arg16[%c0_50, %c352] : memref<64x448xf32, #tpu.memory_space<vmem>>, vector<64x20xf32>
    tpu.vector_store %arg16[%c0_50, %c352], %60 {strides = array<i32>} : memref<64x448xf32, #tpu.memory_space<vmem>>, vector<64x20xf32>,
    %c24 = arith.constant 24 : index
    %c0_51 = arith.constant 0 : index
    %62 = vector.load %arg15[%c24, %c0_51] : memref<90x20xf32, #tpu.memory_space<vmem>>, vector<64x20xf32>
    %c0_52 = arith.constant 0 : index
    %c384 = arith.constant 384 : index
    %63 = vector.load %arg16[%c0_52, %c384] : memref<64x448xf32, #tpu.memory_space<vmem>>, vector<64x20xf32>
    tpu.vector_store %arg16[%c0_52, %c384], %62 {strides = array<i32>} : memref<64x448xf32, #tpu.memory_space<vmem>>, vector<64x20xf32>,
    %c26 = arith.constant 26 : index
    %c0_53 = arith.constant 0 : index
    %64 = vector.load %arg15[%c26, %c0_53] : memref<90x20xf32, #tpu.memory_space<vmem>>, vector<64x20xf32>
    %c0_54 = arith.constant 0 : index
    %c416 = arith.constant 416 : index
    %65 = vector.load %arg16[%c0_54, %c416] : memref<64x448xf32, #tpu.memory_space<vmem>>, vector<64x20xf32>
    tpu.vector_store %arg16[%c0_54, %c416], %64 {strides = array<i32>} : memref<64x448xf32, #tpu.memory_space<vmem>>, vector<64x20xf32>,
    %c0_55 = arith.constant 0 : index
    %c0_56 = arith.constant 0 : index
    %66 = vector.load %arg16[%c0_55, %c0_56] : memref<64x448xf32, #tpu.memory_space<vmem>>, vector<64x448xf32>
    %67 = arith.truncf %66 : vector<64x448xf32> to vector<64x448xbf16>
    %c0_57 = arith.constant 0 : index
    %c0_58 = arith.constant 0 : index
    %68 = vector.load %arg2[%c0_57, %c0_58] : memref<448x10xbf16, #tpu.memory_space<vmem>>, vector<448x10xbf16>
    %cst_59 = arith.constant dense<0.000000e+00> : vector<64x10xf32>
    %69 = tpu.matmul %67, %68, %cst_59 {dimension_numbers = #tpu.dot_dimension_numbers<[1], [0], [0], [1], [0, 0, 1, 1], [], []>} : vector<64x448xbf16>, vector<448x10xbf16>, vector<64x10xf32> -> vector<64x10xf32>
    %c3 = arith.constant 3 : index
    %c0_60 = arith.constant 0 : index
    %70 = vector.load %arg13[%c3, %c0_60] : memref<12x128xf32, #tpu.memory_space<vmem>>, vector<1x10xf32>
    %71 = vector.broadcast %70 : vector<1x10xf32> to vector<64x10xf32>
    %72 = arith.addf %69, %71 : vector<64x10xf32>
    %cst_61 = arith.constant 0.000000e+00 : f32
    %73 = vector.broadcast %cst_61 : f32 to vector<64x10xf32>
    %74 = arith.maximumf %72, %73 : vector<64x10xf32>
    %c4_62 = arith.constant 4 : index
    %c0_63 = arith.constant 0 : index
    %75 = vector.load %arg13[%c4_62, %c0_63] : memref<12x128xf32, #tpu.memory_space<vmem>>, vector<1x10xf32>
    %c5 = arith.constant 5 : index
    %c0_64 = arith.constant 0 : index
    %76 = vector.load %arg13[%c5, %c0_64] : memref<12x128xf32, #tpu.memory_space<vmem>>, vector<1x10xf32>
    %cst_65 = arith.constant dense<0.000000e+00> : vector<10xf32>
    %77 = vector.multi_reduction <add>, %74, %cst_65 [0] : vector<64x10xf32> to vector<10xf32>
    %78 = vector.shape_cast %77 : vector<10xf32> to vector<1x10xf32>
    %cst_66 = arith.constant 1.562500e-02 : f32
    %79 = vector.broadcast %cst_66 : f32 to vector<1x10xf32>
    %80 = arith.mulf %78, %79 : vector<1x10xf32>
    %81 = vector.broadcast %80 : vector<1x10xf32> to vector<64x10xf32>
    %82 = arith.subf %74, %81 : vector<64x10xf32>
    %83 = arith.mulf %82, %82 : vector<64x10xf32>
    %cst_67 = arith.constant dense<0.000000e+00> : vector<10xf32>
    %84 = vector.multi_reduction <add>, %83, %cst_67 [0] : vector<64x10xf32> to vector<10xf32>
    %85 = vector.shape_cast %84 : vector<10xf32> to vector<1x10xf32>
    %cst_68 = arith.constant 1.562500e-02 : f32
    %86 = vector.broadcast %cst_68 : f32 to vector<1x10xf32>
    %87 = arith.mulf %85, %86 : vector<1x10xf32>
    %cst_69 = arith.constant 9.99999974E-6 : f32
    %88 = vector.broadcast %cst_69 : f32 to vector<1x10xf32>
    %89 = arith.addf %87, %88 : vector<1x10xf32>
    %90 = math.rsqrt %89 : vector<1x10xf32>
    %91 = arith.mulf %90, %75 : vector<1x10xf32>
    %92 = vector.broadcast %91 : vector<1x10xf32> to vector<64x10xf32>
    %93 = arith.mulf %82, %92 : vector<64x10xf32>
    %94 = vector.broadcast %76 : vector<1x10xf32> to vector<64x10xf32>
    %95 = arith.addf %93, %94 : vector<64x10xf32>
    %96 = arith.truncf %95 : vector<64x10xf32> to vector<64x10xbf16>
    %c0_70 = arith.constant 0 : index
    %c0_71 = arith.constant 0 : index
    %97 = vector.load %arg6[%c0_70, %c0_71] : memref<32x64xbf16, #tpu.memory_space<vmem>>, vector<32x64xbf16>
    %cst_72 = arith.constant dense<0.000000e+00> : vector<32x10xf32>
    %98 = tpu.matmul %97, %96, %cst_72 {dimension_numbers = #tpu.dot_dimension_numbers<[1], [0], [0], [1], [0, 0, 1, 1], [], []>} : vector<32x64xbf16>, vector<64x10xbf16>, vector<32x10xf32> -> vector<32x10xf32>
    %c0_73 = arith.constant 0 : index
    %c0_74 = arith.constant 0 : index
    %99 = vector.load %arg7[%c0_73, %c0_74] : memref<32x64xbf16, #tpu.memory_space<vmem>>, vector<32x64xbf16>
    %cst_75 = arith.constant dense<0.000000e+00> : vector<32x10xf32>
    %100 = tpu.matmul %99, %96, %cst_75 {dimension_numbers = #tpu.dot_dimension_numbers<[1], [0], [0], [1], [0, 0, 1, 1], [], []>} : vector<32x64xbf16>, vector<64x10xbf16>, vector<32x10xf32> -> vector<32x10xf32>
    %101 = arith.maximumf %98, %100 : vector<32x10xf32>
    %c0_76 = arith.constant 0 : index
    %c0_77 = arith.constant 0 : index
    %102 = vector.load %arg17[%c0_76, %c0_77] : memref<32x10xf32, #tpu.memory_space<vmem>>, vector<32x10xf32>
    tpu.vector_store %arg17[%c0_76, %c0_77], %101 {strides = array<i32>} : memref<32x10xf32, #tpu.memory_space<vmem>>, vector<32x10xf32>,
    %cst_78 = arith.constant 0.000000e+00 : f32
    %103 = vector.broadcast %cst_78 : f32 to vector<24x80xf32>
    %c0_79 = arith.constant 0 : index
    %c0_80 = arith.constant 0 : index
    %104 = vector.load %arg18[%c0_79, %c0_80] : memref<24x80xf32, #tpu.memory_space<vmem>>, vector<24x80xf32>
    tpu.vector_store %arg18[%c0_79, %c0_80], %103 {strides = array<i32>} : memref<24x80xf32, #tpu.memory_space<vmem>>, vector<24x80xf32>,
    %c0_81 = arith.constant 0 : index
    %c0_82 = arith.constant 0 : index
    %105 = vector.load %arg17[%c0_81, %c0_82] : memref<32x10xf32, #tpu.memory_space<vmem>>, vector<24x10xf32>
    %c0_83 = arith.constant 0 : index
    %c0_84 = arith.constant 0 : index
    %106 = vector.load %arg18[%c0_83, %c0_84] : memref<24x80xf32, #tpu.memory_space<vmem>>, vector<24x10xf32>
    tpu.vector_store %arg18[%c0_83, %c0_84], %105 {strides = array<i32>} : memref<24x80xf32, #tpu.memory_space<vmem>>, vector<24x10xf32>,
    %c2_85 = arith.constant 2 : index
    %c0_86 = arith.constant 0 : index
    %107 = vector.load %arg17[%c2_85, %c0_86] : memref<32x10xf32, #tpu.memory_space<vmem>>, vector<24x10xf32>
    %c0_87 = arith.constant 0 : index
    %c16_88 = arith.constant 16 : index
    %108 = vector.load %arg18[%c0_87, %c16_88] : memref<24x80xf32, #tpu.memory_space<vmem>>, vector<24x10xf32>
    tpu.vector_store %arg18[%c0_87, %c16_88], %107 {strides = array<i32>} : memref<24x80xf32, #tpu.memory_space<vmem>>, vector<24x10xf32>,
    %c4_89 = arith.constant 4 : index
    %c0_90 = arith.constant 0 : index
    %109 = vector.load %arg17[%c4_89, %c0_90] : memref<32x10xf32, #tpu.memory_space<vmem>>, vector<24x10xf32>
    %c0_91 = arith.constant 0 : index
    %c32_92 = arith.constant 32 : index
    %110 = vector.load %arg18[%c0_91, %c32_92] : memref<24x80xf32, #tpu.memory_space<vmem>>, vector<24x10xf32>
    tpu.vector_store %arg18[%c0_91, %c32_92], %109 {strides = array<i32>} : memref<24x80xf32, #tpu.memory_space<vmem>>, vector<24x10xf32>,
    %c6_93 = arith.constant 6 : index
    %c0_94 = arith.constant 0 : index
    %111 = vector.load %arg17[%c6_93, %c0_94] : memref<32x10xf32, #tpu.memory_space<vmem>>, vector<24x10xf32>
    %c0_95 = arith.constant 0 : index
    %c48 = arith.constant 48 : index
    %112 = vector.load %arg18[%c0_95, %c48] : memref<24x80xf32, #tpu.memory_space<vmem>>, vector<24x10xf32>
    tpu.vector_store %arg18[%c0_95, %c48], %111 {strides = array<i32>} : memref<24x80xf32, #tpu.memory_space<vmem>>, vector<24x10xf32>,
    %c8_96 = arith.constant 8 : index
    %c0_97 = arith.constant 0 : index
    %113 = vector.load %arg17[%c8_96, %c0_97] : memref<32x10xf32, #tpu.memory_space<vmem>>, vector<24x10xf32>
    %c0_98 = arith.constant 0 : index
    %c64_99 = arith.constant 64 : index
    %114 = vector.load %arg18[%c0_98, %c64_99] : memref<24x80xf32, #tpu.memory_space<vmem>>, vector<24x10xf32>
    tpu.vector_store %arg18[%c0_98, %c64_99], %113 {strides = array<i32>} : memref<24x80xf32, #tpu.memory_space<vmem>>, vector<24x10xf32>,
    %c0_100 = arith.constant 0 : index
    %c0_101 = arith.constant 0 : index
    %115 = vector.load %arg18[%c0_100, %c0_101] : memref<24x80xf32, #tpu.memory_space<vmem>>, vector<24x80xf32>
    %116 = arith.truncf %115 : vector<24x80xf32> to vector<24x80xbf16>
    %c0_102 = arith.constant 0 : index
    %c0_103 = arith.constant 0 : index
    %117 = vector.load %arg3[%c0_102, %c0_103] : memref<80x20xbf16, #tpu.memory_space<vmem>>, vector<80x20xbf16>
    %cst_104 = arith.constant dense<0.000000e+00> : vector<24x20xf32>
    %118 = tpu.matmul %116, %117, %cst_104 {dimension_numbers = #tpu.dot_dimension_numbers<[1], [0], [0], [1], [0, 0, 1, 1], [], []>} : vector<24x80xbf16>, vector<80x20xbf16>, vector<24x20xf32> -> vector<24x20xf32>
    %c6_105 = arith.constant 6 : index
    %c0_106 = arith.constant 0 : index
    %119 = vector.load %arg13[%c6_105, %c0_106] : memref<12x128xf32, #tpu.memory_space<vmem>>, vector<1x20xf32>
    %120 = vector.broadcast %119 : vector<1x20xf32> to vector<24x20xf32>
    %121 = arith.addf %118, %120 : vector<24x20xf32>
    %cst_107 = arith.constant 0.000000e+00 : f32
    %122 = vector.broadcast %cst_107 : f32 to vector<24x20xf32>
    %123 = arith.maximumf %121, %122 : vector<24x20xf32>
    %c7 = arith.constant 7 : index
    %c0_108 = arith.constant 0 : index
    %124 = vector.load %arg13[%c7, %c0_108] : memref<12x128xf32, #tpu.memory_space<vmem>>, vector<1x20xf32>
    %c8_109 = arith.constant 8 : index
    %c0_110 = arith.constant 0 : index
    %125 = vector.load %arg13[%c8_109, %c0_110] : memref<12x128xf32, #tpu.memory_space<vmem>>, vector<1x20xf32>
    %cst_111 = arith.constant dense<0.000000e+00> : vector<20xf32>
    %126 = vector.multi_reduction <add>, %123, %cst_111 [0] : vector<24x20xf32> to vector<20xf32>
    %127 = vector.shape_cast %126 : vector<20xf32> to vector<1x20xf32>
    %cst_112 = arith.constant 0.0416666679 : f32
    %128 = vector.broadcast %cst_112 : f32 to vector<1x20xf32>
    %129 = arith.mulf %127, %128 : vector<1x20xf32>
    %130 = vector.broadcast %129 : vector<1x20xf32> to vector<24x20xf32>
    %131 = arith.subf %123, %130 : vector<24x20xf32>
    %132 = arith.mulf %131, %131 : vector<24x20xf32>
    %cst_113 = arith.constant dense<0.000000e+00> : vector<20xf32>
    %133 = vector.multi_reduction <add>, %132, %cst_113 [0] : vector<24x20xf32> to vector<20xf32>
    %134 = vector.shape_cast %133 : vector<20xf32> to vector<1x20xf32>
    %cst_114 = arith.constant 0.0416666679 : f32
    %135 = vector.broadcast %cst_114 : f32 to vector<1x20xf32>
    %136 = arith.mulf %134, %135 : vector<1x20xf32>
    %cst_115 = arith.constant 9.99999974E-6 : f32
    %137 = vector.broadcast %cst_115 : f32 to vector<1x20xf32>
    %138 = arith.addf %136, %137 : vector<1x20xf32>
    %139 = math.rsqrt %138 : vector<1x20xf32>
    %140 = arith.mulf %139, %124 : vector<1x20xf32>
    %141 = vector.broadcast %140 : vector<1x20xf32> to vector<24x20xf32>
    %142 = arith.mulf %131, %141 : vector<24x20xf32>
    %143 = vector.broadcast %125 : vector<1x20xf32> to vector<24x20xf32>
    %144 = arith.addf %142, %143 : vector<24x20xf32>
    %145 = arith.truncf %144 : vector<24x20xf32> to vector<24x20xbf16>
    %c0_116 = arith.constant 0 : index
    %c0_117 = arith.constant 0 : index
    %146 = vector.load %arg8[%c0_116, %c0_117] : memref<12x24xbf16, #tpu.memory_space<vmem>>, vector<12x24xbf16>
    %cst_118 = arith.constant dense<0.000000e+00> : vector<12x20xf32>
    %147 = tpu.matmul %146, %145, %cst_118 {dimension_numbers = #tpu.dot_dimension_numbers<[1], [0], [0], [1], [0, 0, 1, 1], [], []>} : vector<12x24xbf16>, vector<24x20xbf16>, vector<12x20xf32> -> vector<12x20xf32>
    %c0_119 = arith.constant 0 : index
    %c0_120 = arith.constant 0 : index
    %148 = vector.load %arg9[%c0_119, %c0_120] : memref<12x24xbf16, #tpu.memory_space<vmem>>, vector<12x24xbf16>
    %cst_121 = arith.constant dense<0.000000e+00> : vector<12x20xf32>
    %149 = tpu.matmul %148, %145, %cst_121 {dimension_numbers = #tpu.dot_dimension_numbers<[1], [0], [0], [1], [0, 0, 1, 1], [], []>} : vector<12x24xbf16>, vector<24x20xbf16>, vector<12x20xf32> -> vector<12x20xf32>
    %150 = arith.maximumf %147, %149 : vector<12x20xf32>
    %c0_122 = arith.constant 0 : index
    %c0_123 = arith.constant 0 : index
    %151 = vector.load %arg19[%c0_122, %c0_123] : memref<12x20xf32, #tpu.memory_space<vmem>>, vector<12x20xf32>
    tpu.vector_store %arg19[%c0_122, %c0_123], %150 {strides = array<i32>} : memref<12x20xf32, #tpu.memory_space<vmem>>, vector<12x20xf32>,
    %c0_124 = arith.constant 0 : index
    %c0_125 = arith.constant 0 : index
    %152 = vector.load %arg19[%c0_124, %c0_125] : memref<12x20xf32, #tpu.memory_space<vmem>>, vector<2x20xf32>
    %c0_126 = arith.constant 0 : index
    %c0_127 = arith.constant 0 : index
    %153 = vector.load %arg20[%c0_126, %c0_127] : memref<2x120xf32, #tpu.memory_space<vmem>>, vector<2x20xf32>
    tpu.vector_store %arg20[%c0_126, %c0_127], %152 {strides = array<i32>} : memref<2x120xf32, #tpu.memory_space<vmem>>, vector<2x20xf32>,
    %c2_128 = arith.constant 2 : index
    %c0_129 = arith.constant 0 : index
    %154 = vector.load %arg19[%c2_128, %c0_129] : memref<12x20xf32, #tpu.memory_space<vmem>>, vector<2x20xf32>
    %c0_130 = arith.constant 0 : index
    %c20_131 = arith.constant 20 : index
    %155 = vector.load %arg20[%c0_130, %c20_131] : memref<2x120xf32, #tpu.memory_space<vmem>>, vector<2x20xf32>
    tpu.vector_store %arg20[%c0_130, %c20_131], %154 {strides = array<i32>} : memref<2x120xf32, #tpu.memory_space<vmem>>, vector<2x20xf32>,
    %c4_132 = arith.constant 4 : index
    %c0_133 = arith.constant 0 : index
    %156 = vector.load %arg19[%c4_132, %c0_133] : memref<12x20xf32, #tpu.memory_space<vmem>>, vector<2x20xf32>
    %c0_134 = arith.constant 0 : index
    %c40 = arith.constant 40 : index
    %157 = vector.load %arg20[%c0_134, %c40] : memref<2x120xf32, #tpu.memory_space<vmem>>, vector<2x20xf32>
    tpu.vector_store %arg20[%c0_134, %c40], %156 {strides = array<i32>} : memref<2x120xf32, #tpu.memory_space<vmem>>, vector<2x20xf32>,
    %c6_135 = arith.constant 6 : index
    %c0_136 = arith.constant 0 : index
    %158 = vector.load %arg19[%c6_135, %c0_136] : memref<12x20xf32, #tpu.memory_space<vmem>>, vector<2x20xf32>
    %c0_137 = arith.constant 0 : index
    %c60 = arith.constant 60 : index
    %159 = vector.load %arg20[%c0_137, %c60] : memref<2x120xf32, #tpu.memory_space<vmem>>, vector<2x20xf32>
    tpu.vector_store %arg20[%c0_137, %c60], %158 {strides = array<i32>} : memref<2x120xf32, #tpu.memory_space<vmem>>, vector<2x20xf32>,
    %c8_138 = arith.constant 8 : index
    %c0_139 = arith.constant 0 : index
    %160 = vector.load %arg19[%c8_138, %c0_139] : memref<12x20xf32, #tpu.memory_space<vmem>>, vector<2x20xf32>
    %c0_140 = arith.constant 0 : index
    %c80 = arith.constant 80 : index
    %161 = vector.load %arg20[%c0_140, %c80] : memref<2x120xf32, #tpu.memory_space<vmem>>, vector<2x20xf32>
    tpu.vector_store %arg20[%c0_140, %c80], %160 {strides = array<i32>} : memref<2x120xf32, #tpu.memory_space<vmem>>, vector<2x20xf32>,
    %c10_141 = arith.constant 10 : index
    %c0_142 = arith.constant 0 : index
    %162 = vector.load %arg19[%c10_141, %c0_142] : memref<12x20xf32, #tpu.memory_space<vmem>>, vector<2x20xf32>
    %c0_143 = arith.constant 0 : index
    %c100 = arith.constant 100 : index
    %163 = vector.load %arg20[%c0_143, %c100] : memref<2x120xf32, #tpu.memory_space<vmem>>, vector<2x20xf32>
    tpu.vector_store %arg20[%c0_143, %c100], %162 {strides = array<i32>} : memref<2x120xf32, #tpu.memory_space<vmem>>, vector<2x20xf32>,
    %c0_144 = arith.constant 0 : index
    %c0_145 = arith.constant 0 : index
    %164 = vector.load %arg20[%c0_144, %c0_145] : memref<2x120xf32, #tpu.memory_space<vmem>>, vector<2x120xf32>
    %165 = arith.truncf %164 : vector<2x120xf32> to vector<2x120xbf16>
    %c0_146 = arith.constant 0 : index
    %c0_147 = arith.constant 0 : index
    %166 = vector.load %arg10[%c0_146, %c0_147] : memref<120x128xbf16, #tpu.memory_space<vmem>>, vector<120x128xbf16>
    %cst_148 = arith.constant dense<0.000000e+00> : vector<2x128xf32>
    %167 = tpu.matmul %165, %166, %cst_148 {dimension_numbers = #tpu.dot_dimension_numbers<[1], [0], [0], [1], [0, 0, 1, 1], [], []>} : vector<2x120xbf16>, vector<120x128xbf16>, vector<2x128xf32> -> vector<2x128xf32>
    %c9 = arith.constant 9 : index
    %c0_149 = arith.constant 0 : index
    %168 = vector.load %arg13[%c9, %c0_149] : memref<12x128xf32, #tpu.memory_space<vmem>>, vector<1x128xf32>
    %169 = vector.broadcast %168 : vector<1x128xf32> to vector<2x128xf32>
    %170 = arith.addf %167, %169 : vector<2x128xf32>
    %cst_150 = arith.constant 0.000000e+00 : f32
    %171 = vector.broadcast %cst_150 : f32 to vector<2x128xf32>
    %172 = arith.maximumf %170, %171 : vector<2x128xf32>
    %173 = arith.truncf %172 : vector<2x128xf32> to vector<2x128xbf16>
    %c0_151 = arith.constant 0 : index
    %c0_152 = arith.constant 0 : index
    %174 = vector.load %arg11[%c0_151, %c0_152] : memref<128x64xbf16, #tpu.memory_space<vmem>>, vector<128x64xbf16>
    %cst_153 = arith.constant dense<0.000000e+00> : vector<2x64xf32>
    %175 = tpu.matmul %173, %174, %cst_153 {dimension_numbers = #tpu.dot_dimension_numbers<[1], [0], [0], [1], [0, 0, 1, 1], [], []>} : vector<2x128xbf16>, vector<128x64xbf16>, vector<2x64xf32> -> vector<2x64xf32>
    %c10_154 = arith.constant 10 : index
    %c0_155 = arith.constant 0 : index
    %176 = vector.load %arg13[%c10_154, %c0_155] : memref<12x128xf32, #tpu.memory_space<vmem>>, vector<1x64xf32>
    %177 = vector.broadcast %176 : vector<1x64xf32> to vector<2x64xf32>
    %178 = arith.addf %175, %177 : vector<2x64xf32>
    %cst_156 = arith.constant 0.000000e+00 : f32
    %179 = vector.broadcast %cst_156 : f32 to vector<2x64xf32>
    %180 = arith.maximumf %178, %179 : vector<2x64xf32>
    %181 = arith.truncf %180 : vector<2x64xf32> to vector<2x64xbf16>
    %c0_157 = arith.constant 0 : index
    %c0_158 = arith.constant 0 : index
    %182 = vector.load %arg12[%c0_157, %c0_158] : memref<64x128xbf16, #tpu.memory_space<vmem>>, vector<64x128xbf16>
    %cst_159 = arith.constant dense<0.000000e+00> : vector<2x128xf32>
    %183 = tpu.matmul %181, %182, %cst_159 {dimension_numbers = #tpu.dot_dimension_numbers<[1], [0], [0], [1], [0, 0, 1, 1], [], []>} : vector<2x64xbf16>, vector<64x128xbf16>, vector<2x128xf32> -> vector<2x128xf32>
    %c11 = arith.constant 11 : index
    %c0_160 = arith.constant 0 : index
    %184 = vector.load %arg13[%c11, %c0_160] : memref<12x128xf32, #tpu.memory_space<vmem>>, vector<1x128xf32>
    %185 = vector.broadcast %184 : vector<1x128xf32> to vector<2x128xf32>
    %186 = arith.addf %183, %185 : vector<2x128xf32>
    %c0_161 = arith.constant 0 : index
    %c0_162 = arith.constant 0 : index
    %187 = vector.load %arg14[%c0_161, %c0_162] : memref<2x128xf32, #tpu.memory_space<vmem>>, vector<2x128xf32>
    tpu.vector_store %arg14[%c0_161, %c0_162], %186 {strides = array<i32>} : memref<2x128xf32, #tpu.memory_space<vmem>>, vector<2x128xf32>,
    return
  }
}

</mosaic_0001>

<bundles_post_ra>
// kernel: tpu_custom_call.1
= control target key start
LH: loop header
LB: loop body
LE: loop exit
PB: predicated region body
PF: predicated region fallthrough
CT: control target
= control target key end

     0   :  { %vm171_vm0 = vcmask 539648   ;;  %vm208_vm1 = vcmask 1040384   ;;  %s4692_s0 = inlined_call_operand.vmem [shape: bf16[180,66], index: 0, kind: input, shape index: {}]   ;;  %s4693_s1 = inlined_call_operand.vmem [shape: bf16[66,20], index: 1, kind: input, shape index: {}]   ;;  %s4694_s2 = inlined_call_operand.vmem [shape: bf16[448,10], index: 2, kind: input, shape index: {}]   ;;  %s4695_s3 = inlined_call_operand.vmem [shape: bf16[80,20], index: 3, kind: input, shape index: {}]   ;;  %s4696_s4 = inlined_call_operand.vmem [shape: bf16[90,180], index: 4, kind: input, shape index: {}]   ;;  %s4697_s5 = inlined_call_operand.vmem [shape: bf16[90,180], index: 5, kind: input, shape index: {}]   ;;  %s4698_s6 = inlined_call_operand.vmem [shape: bf16[32,64], index: 6, kind: input, shape index: {}]   ;;  %s4699_s7 = inlined_call_operand.vmem [shape: bf16[32,64], index: 7, kind: input, shape index: {}]   ;;  %s4700_s8 = inlined_call_operand.vmem [shape: bf16[12,24], index: 8, kind: input, shape index: {}]   ;;  %s4701_s9 = inlined_call_operand.vmem [shape: bf16[12,24], index: 9, kind: input, shape index: {}]   ;;  %s4702_s10 = inlined_call_operand.vmem [shape: bf16[120,128], index: 10, kind: input, shape index: {}]   ;;  %s4703_s11 = inlined_call_operand.vmem [shape: bf16[128,64], index: 11, kind: input, shape index: {}]   ;;  %s4704_s12 = inlined_call_operand.vmem [shape: bf16[64,128], index: 12, kind: input, shape index: {}]   ;;  %s4705_s13 = inlined_call_operand.vmem [shape: f32[12,128], index: 13, kind: input, shape index: {}]   ;;  %s4706_s14 = inlined_call_operand.hbm [shape: f32[2,128], index: 14, kind: output, shape index: {}]  }
   0x1   :  { %v3314_v0 = vld [vmem:[%s4693_s1] sm:$0xff]   ;;  %v3315_v1 = vld [vmem:[%s4693_s1 + $0x8] sm:$0xff]   ;;  %v3316_v2 = vld [vmem:[%s4693_s1 + $0x10] sm:$0xff]  }
   0x2   :  { %3159 = vmatprep.subr.bf16.mxu0 %v3314_v0  ;;  %v3319_v3 = vld [vmem:[%s4692_s0] sm:$0xff]   ;;  %v3317_v4 = vld [vmem:[%s4693_s1 + $0x18] sm:$0xff]   ;;  %v3320_v7 = vld [vmem:[%s4692_s0 + $0x8] sm:$0xff]  }
   0x3   :  { %3160 = vmatpush3.bf16.msra.mxu0 %v3314_v0  ;;  %3169 = vmatprep.mubr.msk.bf16.mxu0 %vm171_vm0, %v3319_v3  ;;  %v3318_v5 = vld [vmem:[%s4693_s1 + $0x20] ss:$0 sps:$4 sm:$0x11]   ;;  %v3321_v8 = vld [vmem:[%s4692_s0 + $0x10] sm:$0xff]   ;;  %v3322_v9 = vld [vmem:[%s4692_s0 + $0x18] sm:$0xff]  }
   0x4   :  { %3161 = vmatprep.subr.bf16.mxu0 %v3315_v1  ;;  %v210_v6 = vsel %vm208_vm1, %v3318_v5, 0  ;;  %v3323_v10 = vld [vmem:[%s4692_s0 + $0x20] sm:$0xff]   ;;  %v3324_v11 = vld [vmem:[%s4692_s0 + $0x28] sm:$0xff]   ;;  %v3325_v12 = vld [vmem:[%s4692_s0 + $0x30] sm:$0xff]  }
   0x5   :  { %v3326_v13 = vld [vmem:[%s4692_s0 + $0x38] sm:$0xff]   ;;  %v3327_v14 = vld [vmem:[%s4692_s0 + $0x40] sm:$0xff]   ;;  %v3328_v15 = vld [vmem:[%s4692_s0 + $0x48] sm:$0xff]  }
   0x6   :  { %v3329_v16 = vld [vmem:[%s4692_s0 + $0x50] sm:$0xff]   ;;  %v3330_v17 = vld [vmem:[%s4692_s0 + $0x58] ss:$0 sps:$4 sm:$0x33]  }
   0x7   :  { %3162 = vmatpush3.bf16.msra.mxu0 %v3315_v1 }
   0x8   :  { %3163 = vmatprep.subr.bf16.mxu0 %v3316_v2 }
   0xb   :  { %3164 = vmatpush3.bf16.msra.mxu0 %v3316_v2 }
   0xc   :  { %3165 = vmatprep.subr.bf16.mxu0 %v3317_v4 }
   0xf   :  { %3166 = vmatpush3.bf16.msra.mxu0 %v3317_v4 }
  0x10   :  { %3299 = vmatprep.subr.msk.bf16.mxu0 %vm208_vm1, %v3318_v5 }
  0x13   :  { %3168 = vmatpush3.bf16.msra.mxu0 %v210_v6 }
  0x16   :  { %3170 = vmatmul.mubr.msk.bf16.vlgmr.msra.gmra.mrb[0].mxu0 %vm171_vm0, %v3320_v7 }
  0x17   :  { %3173 = vmatprep.mubr.msk.bf16.mxu0 %vm171_vm0, %v3321_v8 }
  0x1e   :  { %3174 = vmatmul.mubr.msk.bf16.gmra.mrb[4].mxu0 %vm171_vm0, %v3322_v9 }
  0x1f   :  { %3177 = vmatprep.mubr.msk.bf16.mxu0 %vm171_vm0, %v3323_v10 }
  0x26   :  { %3178 = vmatmul.mubr.msk.bf16.gmra.mrb[8].mxu0 %vm171_vm0, %v3324_v11 }
  0x27   :  { %3181 = vmatprep.mubr.msk.bf16.mxu0 %vm171_vm0, %v3325_v12 }
  0x2e   :  { %3182 = vmatmul.mubr.msk.bf16.gmra.mrb[12].mxu0 %vm171_vm0, %v3326_v13 }
  0x2f   :  { %3185 = vmatprep.mubr.msk.bf16.mxu0 %vm171_vm0, %v3327_v14 }
  0x36   :  { %3186 = vmatmul.mubr.msk.bf16.gmra.mrb[16].mxu0 %vm171_vm0, %v3328_v15 }
  0x37   :  { %3189 = vmatprep.mubr.msk.bf16.mxu0 %vm171_vm0, %v3329_v16 }
  0x3e   :  { %3190 = vmatmul.mubr.msk.bf16.gmra.mrb[20].mxu0 %vm171_vm0, %v3330_v17 }
  0x3f   :  { %19 = vsyncpa [#allocation9], 0  ;;  %v3611_v18 = vld [vmem:[%s4705_s13] ss:$0 sm:$0xff]  ;;  %vm365_vm2 = vcmask 162816   ;;  %vm409_vm3 = vcmask 158720  }
  0x40   :  { %vm652_vm4 = vcmask 424960   ;;  %vm671_vm5 = vcmask 1041408   ;;  %vm949_vm6 = vcmask 523264   ;;  %s3458_s22 = smov 64   ;;  %s3459_s23 = smov 32   ;;  %vm944_vm7 = vcmask 156672  }
  0x41   :  { %s3460_s29 = smov 96   ;;  %vm1035_vm8 = vcmask 425216   ;;  %vm1084_vm9 = vcmask 687616   ;;  %vm1133_vm10 = vcmask 950016   ;;  %vm1955_vm11 = vcmask 80896   ;;  %s3461_s1 = smov 16  }
  0x42   :  { %vm2193_vm12 = vcmask 654336   ;;  %s3462_s30 = smov 48   ;;  %vm2218_vm13 = vcmask 212096   ;;  %vm2237_vm14 = vcmask 343296   ;;  %vm2256_vm15 = vcmask 474496   ;;  %s3468_s24 = smov 100  }
  0x43   :  { %vm2275_vm0 = vcmask 605696   ;;  %vm3463_vm1 = vmmov 0  }
  0xe9   :  { %v3171_v19 = vpop.f32.mrb[0].mxu0 }
  0xea   :  { %v246_v20 = vpop.f32.mrb[1].mxu0  ;;  %v3614_v21 = vadd.f32 %v3171_v19, %v3611_v18  ;;  %v3456_v19 = vmov 0  }
  0xeb   :  { %v3617_v22 = vadd.f32 %v3611_v18, %v246_v20  ;;  %v3172_v23 = vpop.f32.mrb[2].mxu0  ;;  %675 = vmatprep.subr.bf16.mxu1 %v3456_v19  ;;  %840 = vmatprep.subr.bf16.mxu0 %v3456_v19 }
  0xec   :  { %v249_v24 = vpop.f32.mrb[3].mxu0  ;;  %v3621_v26 = vadd.f32 %v3172_v23, %v3611_v18  ;;  %v342_v28 = vmax.f32 %v3614_v21, 0.0 }
  0xed   :  { %v340_v25 = vmax.f32 %v3617_v22, 0.0  ;;  %v3624_v27 = vadd.f32 %v3611_v18, %v249_v24 }
  0xee   :  { %v343_v31 = vmax.f32 %v3621_v26, 0.0  ;;  %v369_v36 = vsel %vm365_vm2, %v342_v28, 0.0 }
  0xef   :  { %v341_v29 = vmax.f32 %v3624_v27, 0.0  ;;  %v366_v30 = vsel %vm365_vm2, %v340_v25, 0.0 }
  0xf0   :  { %v371_v42 = vsel %vm365_vm2, %v343_v31, 0.0 }
  0xf1   :  { %v367_v32 = vsel %vm365_vm2, %v341_v29, 0.0  ;;  %v3175_v33 = vpop.f32.mrb[4].mxu0 }
  0xf2   :  { %v368_v34 = vadd.f32 %v367_v32, %v366_v30  ;;  %v262_v35 = vpop.f32.mrb[5].mxu0  ;;  %v3639_v37 = vadd.f32 %v3175_v33, %v3611_v18 }
  0xf3   :  { %v3642_v38 = vadd.f32 %v3611_v18, %v262_v35  ;;  %v3176_v39 = vpop.f32.mrb[6].mxu0 }
  0xf4   :  { %v370_v40 = vadd.f32 %v369_v36, %v368_v34  ;;  %v265_v41 = vpop.f32.mrb[7].mxu0  ;;  %v3649_v44 = vadd.f32 %v3176_v39, %v3611_v18  ;;  %v346_v47 = vmax.f32 %v3639_v37, 0.0 }
  0xf5   :  { %v344_v43 = vmax.f32 %v3642_v38, 0.0  ;;  %v3652_v45 = vadd.f32 %v3611_v18, %v265_v41 }
  0xf6   :  { %v372_v46 = vadd.f32 %v371_v42, %v370_v40  ;;  %v347_v51 = vmax.f32 %v3649_v44, 0.0  ;;  %v377_v56 = vsel %vm365_vm2, %v346_v47, 0.0 }
  0xf7   :  { %v373_v48 = vsel %vm365_vm2, %v344_v43, 0.0  ;;  %v345_v49 = vmax.f32 %v3652_v45, 0.0 }
  0xf8   :  { %v374_v50 = vadd.f32 %v373_v48, %v372_v46  ;;  %v379_v62 = vsel %vm365_vm2, %v347_v51, 0.0 }
  0xf9   :  { %v375_v52 = vsel %vm365_vm2, %v345_v49, 0.0  ;;  %v3179_v53 = vpop.f32.mrb[8].mxu0 }
  0xfa   :  { %v376_v54 = vadd.f32 %v375_v52, %v374_v50  ;;  %v278_v55 = vpop.f32.mrb[9].mxu0  ;;  %v3667_v57 = vadd.f32 %v3179_v53, %v3611_v18 }
  0xfb   :  { %v3670_v58 = vadd.f32 %v3611_v18, %v278_v55  ;;  %v3180_v59 = vpop.f32.mrb[10].mxu0 }
  0xfc   :  { %v378_v60 = vadd.f32 %v377_v56, %v376_v54  ;;  %v281_v61 = vpop.f32.mrb[11].mxu0  ;;  %v3677_v0 = vadd.f32 %v3180_v59, %v3611_v18  ;;  %v350_v3 = vmax.f32 %v3667_v57, 0.0 }
  0xfd   :  { %v348_v63 = vmax.f32 %v3670_v58, 0.0  ;;  %v3680_v1 = vadd.f32 %v3611_v18, %v281_v61 }
  0xfe   :  { %v380_v2 = vadd.f32 %v379_v62, %v378_v60  ;;  %v351_v7 = vmax.f32 %v3677_v0, 0.0  ;;  %v385_v12 = vsel %vm365_vm2, %v350_v3, 0.0 }
  0xff   :  { %v381_v4 = vsel %vm365_vm2, %v348_v63, 0.0  ;;  %v349_v5 = vmax.f32 %v3680_v1, 0.0 }
 0x100   :  { %v382_v6 = vadd.f32 %v381_v4, %v380_v2  ;;  %v387_v20 = vsel %vm365_vm2, %v351_v7, 0.0 }
 0x101   :  { %v383_v8 = vsel %vm365_vm2, %v349_v5, 0.0  ;;  %v3183_v9 = vpop.f32.mrb[12].mxu0 }
 0x102   :  { %v384_v10 = vadd.f32 %v383_v8, %v382_v6  ;;  %v294_v11 = vpop.f32.mrb[13].mxu0  ;;  %v3695_v13 = vadd.f32 %v3183_v9, %v3611_v18 }
 0x103   :  { %v3698_v14 = vadd.f32 %v3611_v18, %v294_v11  ;;  %v3184_v15 = vpop.f32.mrb[14].mxu0 }
 0x104   :  { %v386_v16 = vadd.f32 %v385_v12, %v384_v10  ;;  %v297_v17 = vpop.f32.mrb[15].mxu0  ;;  %v3707_v24 = vadd.f32 %v3184_v15, %v3611_v18  ;;  %v354_v33 = vmax.f32 %v3695_v13, 0.0 }
 0x105   :  { %v352_v23 = vmax.f32 %v3698_v14, 0.0  ;;  %v3710_v30 = vadd.f32 %v3611_v18, %v297_v17 }
 0x106   :  { %v388_v32 = vadd.f32 %v387_v20, %v386_v16  ;;  %v355_v39 = vmax.f32 %v3707_v24, 0.0  ;;  %v393_v48 = vsel %vm365_vm2, %v354_v33, 0.0 }
 0x107   :  { %v389_v34 = vsel %vm365_vm2, %v352_v23, 0.0  ;;  %v353_v35 = vmax.f32 %v3710_v30, 0.0 }
 0x108   :  { %v390_v36 = vadd.f32 %v389_v34, %v388_v32  ;;  %v395_v56 = vsel %vm365_vm2, %v355_v39, 0.0 }
 0x109   :  { %v391_v40 = vsel %vm365_vm2, %v353_v35, 0.0  ;;  %v3187_v41 = vpop.f32.mrb[16].mxu0 }
 0x10a   :  { %v392_v42 = vadd.f32 %v391_v40, %v390_v36  ;;  %v310_v46 = vpop.f32.mrb[17].mxu0  ;;  %v3725_v50 = vadd.f32 %v3187_v41, %v3611_v18 }
 0x10b   :  { %v311_v52 = vadd.f32 %v3611_v18, %v310_v46  ;;  %v3188_v53 = vpop.f32.mrb[18].mxu0 }
 0x10c   :  { %v394_v54 = vadd.f32 %v393_v48, %v392_v42  ;;  %v313_v55 = vpop.f32.mrb[19].mxu0  ;;  %v322_v60 = vadd.f32 %v3188_v53, %v3611_v18  ;;  %v358_v2 = vmax.f32 %v3725_v50, 0.0 }
 0x10d   :  { %v356_v59 = vmax.f32 %v311_v52, 0.0  ;;  %v314_v61 = vadd.f32 %v3611_v18, %v313_v55 }
 0x10e   :  { %v396_v62 = vadd.f32 %v395_v56, %v394_v54  ;;  %v359_v9 = vmax.f32 %v322_v60, 0.0  ;;  %v401_v16 = vsel %vm365_vm2, %v358_v2, 0.0 }
 0x10f   :  { %v397_v4 = vsel %vm365_vm2, %v356_v59, 0.0  ;;  %v357_v6 = vmax.f32 %v314_v61, 0.0 }
 0x110   :  { %v398_v8 = vadd.f32 %v397_v4, %v396_v62  ;;  %v403_v40 = vsel %vm365_vm2, %v359_v9, 0.0 }
 0x111   :  { %v399_v10 = vsel %vm365_vm2, %v357_v6, 0.0  ;;  %v3191_v11 = vpop.f32.mrb[20].mxu0 }
 0x112   :  { %v400_v12 = vadd.f32 %v399_v10, %v398_v8  ;;  %v326_v15 = vpop.f32.mrb[21].mxu0  ;;  %v335_v17 = vadd.f32 %v3191_v11, %v3611_v18 }
 0x113   :  { %v327_v20 = vadd.f32 %v3611_v18, %v326_v15  ;;  %v3192_v32 = vpop.f32.mrb[22].mxu0 }
 0x114   :  { %v402_v34 = vadd.f32 %v401_v16, %v400_v12  ;;  %v329_v36 = vpop.f32.mrb[23].mxu0  ;;  %v362_v48 = vmax.f32 %v335_v17, 0.0 }
 0x115   :  { %v360_v41 = vmax.f32 %v327_v20, 0.0  ;;  %v330_v42 = vadd.f32 %v3611_v18, %v329_v36 }
 0x116   :  { %v404_v46 = vadd.f32 %v403_v40, %v402_v34  ;;  %v410_v56 = vsel %vm409_vm3, %v362_v48, 0.0 }
 0x117   :  { %v405_v50 = vsel %vm365_vm2, %v360_v41, 0.0  ;;  %v361_v52 = vmax.f32 %v330_v42, 0.0 }
 0x118   :  { %v406_v53 = vadd.f32 %v405_v50, %v404_v46 }
 0x119   :  { %v407_v54 = vsel %vm365_vm2, %v361_v52, 0.0 }
 0x11a   :  { %v408_v55 = vadd.f32 %v407_v54, %v406_v53 }
 0x11c   :  { %v411_v60 = vadd.f32 %v410_v56, %v408_v55 }
 0x11e   :  { %v412_v61 = vrot.slane %v411_v60, 4 }
 0x120   :  { %v413_v62 = vadd.f32 %v412_v61, %v411_v60 }
 0x122   :  { %v414_v4 = vrot.slane %v413_v62, 2 }
 0x124   :  { %v415_v8 = vadd.f32 %v414_v4, %v413_v62 }
 0x126   :  { %v416_v10 = vrot.slane %v415_v8, 1 }
 0x128   :  { %v417_v11 = vadd.f32 %v416_v10, %v415_v8 }
 0x12a   :  { %v418_v18 = vmul.f32 0.0055555557, %v417_v11 }
 0x12c   :  { %v3746_v12 = vsub.f32 %v340_v25, %v418_v18  ;;  %v3750_v15 = vsub.f32 %v341_v29, %v418_v18  ;;  %v3754_v16 = vsub.f32 %v342_v28, %v418_v18  ;;  %v3758_v17 = vsub.f32 %v343_v31, %v418_v18 }
 0x12d   :  { %v3762_v20 = vsub.f32 %v344_v43, %v418_v18  ;;  %v3766_v22 = vsub.f32 %v345_v49, %v418_v18  ;;  %v3770_v25 = vsub.f32 %v346_v47, %v418_v18  ;;  %v3774_v21 = vsub.f32 %v347_v51, %v418_v18 }
 0x12e   :  { %v3778_v26 = vsub.f32 %v348_v63, %v418_v18  ;;  %v3782_v27 = vsub.f32 %v349_v5, %v418_v18  ;;  %v3786_v28 = vsub.f32 %v350_v3, %v418_v18  ;;  %v3790_v29 = vsub.f32 %v351_v7, %v418_v18 }
 0x12f   :  { %v3794_v31 = vsub.f32 %v352_v23, %v418_v18  ;;  %v3798_v37 = vsub.f32 %v353_v35, %v418_v18  ;;  %v3802_v38 = vsub.f32 %v354_v33, %v418_v18  ;;  %v3806_v43 = vsub.f32 %v355_v39, %v418_v18  ;;  %v3333_v35 = vld [vmem:[%s4696_s4 + $0x4] ss:$8 sps:$4 sm:$0xff]  }
 0x130   :  { %v3808_v44 = vsub.f32 %v356_v59, %v418_v18  ;;  %v3810_v45 = vsub.f32 %v357_v6, %v418_v18  ;;  %v3812_v47 = vsub.f32 %v358_v2, %v418_v18  ;;  %v3814_v49 = vsub.f32 %v359_v9, %v418_v18  ;;  %v3336_v39 = vld [vmem:[%s4697_s5 + $0x4] ss:$8 sps:$4 sm:$0xff]   ;;  %2950 = vmatprep.mubr.msk.bf16.mxu1 %vm652_vm4, %v3333_v35 }
 0x131   :  { %v3816_v51 = vsub.f32 %v360_v41, %v418_v18  ;;  %v3818_v57 = vsub.f32 %v361_v52, %v418_v18  ;;  %v3820_v58 = vsub.f32 %v362_v48, %v418_v18  ;;  %v442_v63 = vmul.f32 %v3746_v12, %v3746_v12  ;;  %2968 = vmatprep.mubr.msk.bf16.mxu0 %vm652_vm4, %v3336_v39 }
 0x132   :  { %v443_v0 = vmul.f32 %v3750_v15, %v3750_v15  ;;  %v444_v1 = vmul.f32 %v3754_v16, %v3754_v16  ;;  %v445_v3 = vmul.f32 %v3758_v17, %v3758_v17  ;;  %v446_v14 = vmul.f32 %v3762_v20, %v3762_v20 }
 0x133   :  { %v465_v5 = vsel %vm365_vm2, %v442_v63, 0.0  ;;  %v447_v30 = vmul.f32 %v3766_v22, %v3766_v22  ;;  %v448_v2 = vmul.f32 %v3770_v25, %v3770_v25  ;;  %v449_v32 = vmul.f32 %v3774_v21, %v3774_v21 }
 0x134   :  { %v466_v7 = vsel %vm365_vm2, %v443_v0, 0.0  ;;  %v468_v23 = vsel %vm365_vm2, %v444_v1, 0.0  ;;  %v470_v33 = vsel %vm365_vm2, %v445_v3, 0.0  ;;  %v472_v6 = vsel %vm365_vm2, %v446_v14, 0.0 }
 0x135   :  { %v467_v13 = vadd.f32 %v466_v7, %v465_v5  ;;  %v474_v34 = vsel %vm365_vm2, %v447_v30, 0.0  ;;  %v450_v40 = vmul.f32 %v3778_v26, %v3778_v26  ;;  %v476_v41 = vsel %vm365_vm2, %v448_v2, 0.0 }
 0x136   :  { %v451_v46 = vmul.f32 %v3782_v27, %v3782_v27  ;;  %v478_v48 = vsel %vm365_vm2, %v449_v32, 0.0  ;;  %v452_v52 = vmul.f32 %v3786_v28, %v3786_v28  ;;  %v453_v55 = vmul.f32 %v3790_v29, %v3790_v29 }
 0x137   :  { %v469_v24 = vadd.f32 %v468_v23, %v467_v13  ;;  %v480_v53 = vsel %vm365_vm2, %v450_v40, 0.0  ;;  %v454_v61 = vmul.f32 %v3794_v31, %v3794_v31  ;;  %v455_v8 = vmul.f32 %v3798_v37, %v3798_v37 }
 0x138   :  { %v482_v56 = vsel %vm365_vm2, %v451_v46, 0.0  ;;  %v484_v62 = vsel %vm365_vm2, %v452_v52, 0.0  ;;  %v486_v10 = vsel %vm365_vm2, %v453_v55, 0.0  ;;  %v456_v18 = vmul.f32 %v3802_v38, %v3802_v38 }
 0x139   :  { %v471_v59 = vadd.f32 %v470_v33, %v469_v24  ;;  %v488_v63 = vsel %vm365_vm2, %v454_v61, 0.0  ;;  %v457_v1 = vmul.f32 %v3806_v43, %v3806_v43  ;;  %v490_v3 = vsel %vm365_vm2, %v455_v8, 0.0 }
 0x13a   :  { %v458_v7 = vmul.f32 %v3808_v44, %v3808_v44  ;;  %v492_v13 = vsel %vm365_vm2, %v456_v18, 0.0  ;;  %v459_v23 = vmul.f32 %v3810_v45, %v3810_v45  ;;  %v460_v33 = vmul.f32 %v3812_v47, %v3812_v47 }
 0x13b   :  { %v473_v9 = vadd.f32 %v472_v6, %v471_v59  ;;  %v494_v24 = vsel %vm365_vm2, %v457_v1, 0.0  ;;  %v461_v59 = vmul.f32 %v3814_v49, %v3814_v49 }
 0x13c   :  { %v496_v35 = vsel %vm365_vm2, %v458_v7, 0.0  ;;  %v498_v2 = vsel %vm365_vm2, %v459_v23, 0.0  ;;  %v500_v32 = vsel %vm365_vm2, %v460_v33, 0.0  ;;  %v3910_v7 = vld [vmem:[%s4705_s13 + $0x2] ss:$0 sm:$0xff] }
 0x13d   :  { %v475_v36 = vadd.f32 %v474_v34, %v473_v9  ;;  %v462_v9 = vmul.f32 %v3816_v51, %v3816_v51  ;;  %v502_v40 = vsel %vm365_vm2, %v461_v59, 0.0 }
 0x13f   :  { %v477_v42 = vadd.f32 %v476_v41, %v475_v36  ;;  %v463_v36 = vmul.f32 %v3818_v57, %v3818_v57  ;;  %v504_v46 = vsel %vm365_vm2, %v462_v9, 0.0 }
 0x141   :  { %v479_v50 = vadd.f32 %v478_v48, %v477_v42  ;;  %v464_v42 = vmul.f32 %v3820_v58, %v3820_v58 }
 0x143   :  { %v481_v54 = vadd.f32 %v480_v53, %v479_v50  ;;  %v506_v50 = vsel %vm365_vm2, %v463_v36, 0.0  ;;  %v508_v53 = vsel %vm409_vm3, %v464_v42, 0.0 }
 0x145   :  { %v483_v60 = vadd.f32 %v482_v56, %v481_v54 }
 0x147   :  { %v485_v4 = vadd.f32 %v484_v62, %v483_v60 }
 0x149   :  { %v487_v11 = vadd.f32 %v486_v10, %v485_v4 }
 0x14b   :  { %v489_v0 = vadd.f32 %v488_v63, %v487_v11  ;;  %v520_v11 = vlaneseq  ;;  %v363_v63 = vld [vmem:[%s4705_s13 + $0x1] sm:$0x1] }
 0x14d   :  { %v491_v5 = vadd.f32 %v490_v3, %v489_v0  ;;  %v521_v18 = vshrl.u32 %v520_v11, 7 }
 0x14f   :  { %v493_v14 = vadd.f32 %v492_v13, %v491_v5  ;;  %v3902_v0 = vsub.s32 0, %v521_v18 }
 0x151   :  { %v495_v30 = vadd.f32 %v494_v24, %v493_v14 }
 0x153   :  { %v497_v39 = vadd.f32 %v496_v35, %v495_v30 }
 0x155   :  { %v499_v6 = vadd.f32 %v498_v2, %v497_v39 }
 0x157   :  { %v501_v34 = vadd.f32 %v500_v32, %v499_v6 }
 0x159   :  { %v503_v41 = vadd.f32 %v502_v40, %v501_v34 }
 0x15b   :  { %v505_v48 = vadd.f32 %v504_v46, %v503_v41 }
 0x15d   :  { %v507_v52 = vadd.f32 %v506_v50, %v505_v48 }
 0x15f   :  { %v509_v54 = vadd.f32 %v508_v53, %v507_v52 }
 0x161   :  { %v510_v55 = vrot.slane %v509_v54, 4 }
 0x163   :  { %v511_v56 = vadd.f32 %v510_v55, %v509_v54 }
 0x165   :  { %v512_v60 = vrot.slane %v511_v56, 2 }
 0x167   :  { %v513_v61 = vadd.f32 %v512_v60, %v511_v56 }
 0x169   :  { %v514_v62 = vrot.slane %v513_v61, 1 }
 0x16b   :  { %v515_v4 = vadd.f32 %v514_v62, %v513_v61 }
 0x16d   :  { %v516_v8 = vmul.f32 0.0055555557, %v515_v4 }
 0x16f   :  { %v517_v10 = vadd.f32 1e-05, %v516_v8 }
 0x171   :  { %3426 = vrsqrt.f32 %v517_v10 }
 0x17b   :  { %v3427_v1 = vpop.eup %3426 }
 0x17c   :  { %v519_v3 = vmul.f32 %v3427_v1, %v363_v63 }
 0x17e   :  { %v3905_v5 = vrot.slane %v519_v3, %v3902_v0  ;;  %v3331_v3 = vld [vmem:[%s4696_s4] ss:$8 sps:$4 sm:$0xff]  }
 0x180   :  { %v524_v13 = vmul.f32 %v3905_v5, %v3746_v12  ;;  %v525_v14 = vmul.f32 %v3905_v5, %v3750_v15  ;;  %v526_v23 = vmul.f32 %v3905_v5, %v3754_v16  ;;  %v527_v24 = vmul.f32 %v3905_v5, %v3758_v17 }
 0x181   :  { %v528_v35 = vmul.f32 %v3905_v5, %v3762_v20  ;;  %v529_v15 = vmul.f32 %v3905_v5, %v3766_v22  ;;  %v530_v16 = vmul.f32 %v3905_v5, %v3770_v25  ;;  %v531_v6 = vmul.f32 %v3905_v5, %v3774_v21 }
 0x182   :  { %v551_v30 = vadd.f32 %v3910_v7, %v524_v13  ;;  %v552_v33 = vadd.f32 %v3910_v7, %v525_v14  ;;  %v553_v59 = vadd.f32 %v3910_v7, %v526_v23  ;;  %v554_v12 = vadd.f32 %v3910_v7, %v527_v24  ;;  %v3339_v13 = vld [vmem:[%s4697_s5 + $0x14] ss:$8 sps:$4 sm:$0xff]   ;;  %v3341_v14 = vld [vmem:[%s4696_s4 + $0x10] ss:$8 sps:$4 sm:$0xff]   ;;  %v3343_v24 = vld [vmem:[%s4696_s4 + $0x24] ss:$8 sps:$4 sm:$0xff]  }
 0x183   :  { %v555_v20 = vadd.f32 %v3910_v7, %v528_v35  ;;  %v556_v2 = vadd.f32 %v3910_v7, %v529_v15  ;;  %v557_v22 = vadd.f32 %v3910_v7, %v530_v16  ;;  %v558_v32 = vadd.f32 %v3910_v7, %v531_v6  ;;  %v3342_v23 = vld [vmem:[%s4697_s5 + $0x10] ss:$8 sps:$4 sm:$0xff]   ;;  %v3348_v35 = vld [vmem:[%s4697_s5 + $0x20] ss:$8 sps:$4 sm:$0xff]   ;;  %v3355_v16 = vld [vmem:[%s4696_s4 + $0x44] ss:$8 sps:$4 sm:$0xff]  }
 0x184   :  { %v574_v39 = vpack.c.bf16 %v552_v33, %v551_v30  ;;  %v575_v17 = vpack.c.bf16 %v554_v12, %v553_v59  ;;  %v532_v25 = vmul.f32 %v3905_v5, %v3778_v26  ;;  %v533_v34 = vmul.f32 %v3905_v5, %v3782_v27  ;;  %v3345_v30 = vld [vmem:[%s4697_s5 + $0x24] ss:$8 sps:$4 sm:$0xff]   ;;  %v3347_v33 = vld [vmem:[%s4696_s4 + $0x20] ss:$8 sps:$4 sm:$0xff]   ;;  %v3351_v59 = vld [vmem:[%s4697_s5 + $0x34] ss:$8 sps:$4 sm:$0xff]  }
 0x185   :  { %v576_v9 = vpack.c.bf16 %v556_v2, %v555_v20  ;;  %v534_v21 = vmul.f32 %v3905_v5, %v3786_v28  ;;  %v577_v36 = vpack.c.bf16 %v558_v32, %v557_v22  ;;  %v535_v26 = vmul.f32 %v3905_v5, %v3790_v29  ;;  %v3353_v12 = vld [vmem:[%s4696_s4 + $0x30] ss:$8 sps:$4 sm:$0xff]   ;;  %v3359_v20 = vld [vmem:[%s4696_s4 + $0x40] ss:$8 sps:$4 sm:$0xff]  }
 0x186   :  { %676 = vmatpush1.bf16.msra.mxu1 %v574_v39  ;;  %841 = vmatpush1.bf16.msra.mxu0 %v574_v39  ;;  %v559_v40 = vadd.f32 %v3910_v7, %v532_v25  ;;  %v560_v41 = vadd.f32 %v3910_v7, %v533_v34  ;;  %v536_v28 = vmul.f32 %v3905_v5, %v3794_v31  ;;  %v3349_v39 = vld [vmem:[%s4696_s4 + $0x34] ss:$8 sps:$4 sm:$0xff]   ;;  %v3354_v15 = vld [vmem:[%s4697_s5 + $0x30] ss:$8 sps:$4 sm:$0xff]   ;;  %v3360_v2 = vld [vmem:[%s4697_s5 + $0x40] ss:$8 sps:$4 sm:$0xff]  }
 0x187   :  { %677 = vmatprep.subr.bf16.mxu1 %v3456_v19  ;;  %842 = vmatprep.subr.bf16.mxu0 %v3456_v19  ;;  %v561_v27 = vadd.f32 %v3910_v7, %v534_v21  ;;  %v562_v46 = vadd.f32 %v3910_v7, %v535_v26  ;;  %v537_v48 = vmul.f32 %v3905_v5, %v3798_v37  ;;  %v3361_v6 = vld [vmem:[%s4696_s4 + $0x54] ss:$8 sps:$4 sm:$0x1f]   ;;  %v3366_v32 = vld [vmem:[%s4697_s5 + $0x50] ss:$8 sps:$4 sm:$0x1f]  }
 0x188   :  { %v578_v42 = vpack.c.bf16 %v560_v41, %v559_v40  ;;  %v538_v29 = vmul.f32 %v3905_v5, %v3802_v38  ;;  %v563_v52 = vadd.f32 %v3910_v7, %v536_v28  ;;  %v539_v31 = vmul.f32 %v3905_v5, %v3806_v43  ;;  %v3363_v22 = vld [vmem:[%s4697_s5 + $0x54] ss:$8 sps:$4 sm:$0x1f]  }
 0x189   :  { %v579_v50 = vpack.c.bf16 %v562_v46, %v561_v27  ;;  %v564_v53 = vadd.f32 %v3910_v7, %v537_v48  ;;  %v540_v37 = vmul.f32 %v3905_v5, %v3808_v44  ;;  %v541_v56 = vmul.f32 %v3905_v5, %v3810_v45  ;;  %v3368_v27 = vld [vmem:[%s4694_s2] sm:$0xff]  }
 0x18a   :  { %678 = vmatpush1.bf16.msra.mxu1 %v575_v17  ;;  %843 = vmatpush1.bf16.msra.mxu0 %v575_v17  ;;  %v565_v38 = vadd.f32 %v3910_v7, %v538_v29  ;;  %v566_v55 = vadd.f32 %v3910_v7, %v539_v31  ;;  %v542_v44 = vmul.f32 %v3905_v5, %v3812_v47  ;;  %v3357_v17 = vld [vmem:[%s4697_s5 + $0x44] ss:$8 sps:$4 sm:$0xff]   ;;  %v3457_v25 = vmov 0.0  }
 0x18b   :  { %679 = vmatprep.subr.bf16.mxu1 %v3456_v19  ;;  %844 = vmatprep.subr.bf16.mxu0 %v3456_v19  ;;  %v580_v54 = vpack.c.bf16 %v564_v53, %v563_v52  ;;  %v567_v43 = vadd.f32 %v3910_v7, %v540_v37  ;;  %v568_v61 = vadd.f32 %v3910_v7, %v541_v56  ;;  %v3370_v52 = vld [vmem:[%s4694_s2 + $0x8] sm:$0xff]   ;;  %v3371_v37 = vld [vmem:[%s4694_s2 + $0x50] sm:$0xff]  }
 0x18c   :  { %v581_v60 = vpack.c.bf16 %v566_v55, %v565_v38  ;;  %v543_v62 = vmul.f32 %v3905_v5, %v3814_v49  ;;  %v545_v45 = vmul.f32 %v3905_v5, %v3818_v57  ;;  %v569_v8 = vadd.f32 %v3910_v7, %v542_v44  ;;  %946 = vst [vmem:[#allocation3] sm:$0xff] %v3457_v25 }
 0x18d   :  { %v582_v4 = vpack.c.bf16 %v568_v61, %v567_v43  ;;  %v544_v47 = vmul.f32 %v3905_v5, %v3816_v51  ;;  %v546_v49 = vmul.f32 %v3905_v5, %v3820_v58  ;;  %v3334_v5 = vld [vmem:[%s4697_s5] ss:$8 sps:$4 sm:$0xff]   ;;  %947 = vst [vmem:[#allocation3 + $0x8] sm:$0xff] %v3457_v25  ;;  %948 = vst [vmem:[#allocation3 + $0x10] sm:$0xff] %v3457_v25  ;;  %v3372_v61 = vld [vmem:[%s4694_s2 + $0x10] sm:$0xff]  }
 0x18e   :  { %680 = vmatpush1.bf16.msra.mxu1 %v576_v9  ;;  %845 = vmatpush1.bf16.msra.mxu0 %v576_v9  ;;  %v570_v10 = vadd.f32 %v3910_v7, %v543_v62  ;;  %v572_v18 = vadd.f32 %v3910_v7, %v545_v45  ;;  %v3365_v9 = vld [vmem:[%s4696_s4 + $0x50] ss:$8 sps:$4 sm:$0x1f]   ;;  %951 = vst [vmem:[#allocation3 + $0x20] sm:$0xff] %v3457_v25  ;;  %952 = vst [vmem:[#allocation3 + $0x28] sm:$0xff] %v3457_v25 }
 0x18f   :  { %681 = vmatprep.subr.bf16.mxu1 %v3456_v19  ;;  %846 = vmatprep.subr.bf16.mxu0 %v3456_v19  ;;  %v571_v11 = vadd.f32 %v3910_v7, %v544_v47  ;;  %v573_v63 = vadd.f32 %v3910_v7, %v546_v49  ;;  %v3337_v7 = vld [vmem:[%s4696_s4 + $0x14] ss:$8 sps:$4 sm:$0xff]   ;;  %953 = vst [vmem:[#allocation3 + $0x30] sm:$0xff] %v3457_v25  ;;  %955 = vst [vmem:[#allocation3 + $0x40] sm:$0xff] %v3457_v25 }
 0x190   :  { %v583_v57 = vpack.c.bf16 %v570_v10, %v569_v8  ;;  %956 = vst [vmem:[#allocation3 + $0x48] sm:$0xff] %v3457_v25  ;;  %957 = vst [vmem:[#allocation3 + $0x50] sm:$0xff] %v3457_v25  ;;  %v3373_v47 = vld [vmem:[%s4694_s2 + $0x58] sm:$0xff]  }
 0x191   :  { %v584_v51 = vpack.c.bf16 %v572_v18, %v571_v11  ;;  %v585_v58 = vpack.c.bf16 %v573_v63, %v573_v63  ;;  %959 = vst [vmem:[#allocation3 + $0x60] sm:$0xff] %v3457_v25  ;;  %960 = vst [vmem:[#allocation3 + $0x68] sm:$0xff] %v3457_v25  ;;  %v3374_v49 = vld [vmem:[%s4694_s2 + $0x18] sm:$0xff]  }
 0x192   :  { %682 = vmatpush1.bf16.msra.mxu1 %v577_v36  ;;  %847 = vmatpush1.bf16.msra.mxu0 %v577_v36  ;;  %961 = vst [vmem:[#allocation3 + $0x70] sm:$0xff] %v3457_v25  ;;  %963 = vst [vmem:[#allocation3 + $0x80] sm:$0xff] %v3457_v25  ;;  %v3367_v36 = vld [vmem:[%s4694_s2 + $0x40] sm:$0xff]  }
 0x193   :  { %683 = vmatprep.subr.bf16.mxu1 %v3456_v19  ;;  %848 = vmatprep.subr.bf16.mxu0 %v3456_v19  ;;  %v673_v1 = vsel %vm671_vm5, %v585_v58, 0  ;;  %964 = vst [vmem:[#allocation3 + $0x88] sm:$0xff] %v3457_v25  ;;  %965 = vst [vmem:[#allocation3 + $0x90] sm:$0xff] %v3457_v25  ;;  %vm2444_vm5 = vcmask 195584  }
 0x194   :  { %967 = vst [vmem:[#allocation3 + $0xa0] sm:$0xff] %v3457_v25  ;;  %968 = vst [vmem:[#allocation3 + $0xa8] sm:$0xff] %v3457_v25 }
 0x195   :  { %969 = vst [vmem:[#allocation3 + $0xb0] sm:$0xff] %v3457_v25  ;;  %971 = vst [vmem:[#allocation3 + $0xc0] sm:$0xff] %v3457_v25 }
 0x196   :  { %684 = vmatpush1.bf16.msra.mxu1 %v578_v42  ;;  %849 = vmatpush1.bf16.msra.mxu0 %v578_v42  ;;  %972 = vst [vmem:[#allocation3 + $0xc8] sm:$0xff] %v3457_v25  ;;  %973 = vst [vmem:[#allocation3 + $0xd0] sm:$0xff] %v3457_v25 }
 0x197   :  { %685 = vmatprep.subr.bf16.mxu1 %v3456_v19  ;;  %850 = vmatprep.subr.bf16.mxu0 %v3456_v19  ;;  %975 = vst [vmem:[#allocation3 + $0xe0] sm:$0xff] %v3457_v25  ;;  %976 = vst [vmem:[#allocation3 + $0xe8] sm:$0xff] %v3457_v25 }
 0x198   :  { %977 = vst [vmem:[#allocation3 + $0xf0] sm:$0xff] %v3457_v25  ;;  %950 = vst.msk [vmem:[#allocation3 + $0x18] sm:$0xff] %vm949_vm6, %v3457_v25 }
 0x199   :  { %954 = vst.msk [vmem:[#allocation3 + $0x38] sm:$0xff] %vm949_vm6, %v3457_v25  ;;  %958 = vst.msk [vmem:[#allocation3 + $0x58] sm:$0xff] %vm949_vm6, %v3457_v25 }
 0x19a   :  { %686 = vmatpush1.bf16.msra.mxu1 %v579_v50  ;;  %851 = vmatpush1.bf16.msra.mxu0 %v579_v50  ;;  %962 = vst.msk [vmem:[#allocation3 + $0x78] sm:$0xff] %vm949_vm6, %v3457_v25  ;;  %966 = vst.msk [vmem:[#allocation3 + $0x98] sm:$0xff] %vm949_vm6, %v3457_v25  ;;  %v3369_v50 = vld [vmem:[%s4694_s2 + $0x48] sm:$0xff]  }
 0x19b   :  { %687 = vmatprep.subr.bf16.mxu1 %v3456_v19  ;;  %852 = vmatprep.subr.bf16.mxu0 %v3456_v19  ;;  %970 = vst.msk [vmem:[#allocation3 + $0xb8] sm:$0xff] %vm949_vm6, %v3457_v25  ;;  %974 = vst.msk [vmem:[#allocation3 + $0xd8] sm:$0xff] %vm949_vm6, %v3457_v25 }
 0x19c   :  { %978 = vst.msk [vmem:[#allocation3 + $0xf8] sm:$0xff] %vm949_vm6, %v3457_v25 }
 0x19d   :  { %2196 = vst.msk [vmem:[#allocation5 + $0x10] sm:$0xff] %vm2193_vm12, %v3457_v25  ;;  %2194 = vst.msk [vmem:[#allocation5] sm:$0xff] %vm2193_vm12, %v3457_v25 }
 0x19e   :  { %688 = vmatpush1.bf16.msra.mxu1 %v580_v54  ;;  %853 = vmatpush1.bf16.msra.mxu0 %v580_v54  ;;  %2195 = vst.msk [vmem:[#allocation5 + $0x8] sm:$0xff] %vm2193_vm12, %v3457_v25 }
 0x19f   :  { %689 = vmatprep.subr.bf16.mxu1 %v3456_v19  ;;  %854 = vmatprep.subr.bf16.mxu0 %v3456_v19 }
 0x1a2   :  { %690 = vmatpush1.bf16.msra.mxu1 %v581_v60  ;;  %855 = vmatpush1.bf16.msra.mxu0 %v581_v60 }
 0x1a3   :  { %691 = vmatprep.subr.bf16.mxu1 %v3456_v19  ;;  %856 = vmatprep.subr.bf16.mxu0 %v3456_v19 }
 0x1a6   :  { %692 = vmatpush1.bf16.msra.mxu1 %v582_v4  ;;  %857 = vmatpush1.bf16.msra.mxu0 %v582_v4 }
 0x1a7   :  { %693 = vmatprep.subr.bf16.mxu1 %v3456_v19  ;;  %858 = vmatprep.subr.bf16.mxu0 %v3456_v19 }
 0x1aa   :  { %694 = vmatpush1.bf16.msra.mxu1 %v583_v57  ;;  %859 = vmatpush1.bf16.msra.mxu0 %v583_v57  ;;  %v3375_v57 = vld [vmem:[%s4694_s2 + $0x80] sm:$0xff]  }
 0x1ab   :  { %695 = vmatprep.subr.bf16.mxu1 %v3456_v19  ;;  %860 = vmatprep.subr.bf16.mxu0 %v3456_v19 }
 0x1ae   :  { %696 = vmatpush1.bf16.msra.mxu1 %v584_v51  ;;  %861 = vmatpush1.bf16.msra.mxu0 %v584_v51  ;;  %v3376_v51 = vld [vmem:[%s4694_s2 + $0x60] sm:$0xff]  }
 0x1af   :  { %697 = vmatprep.subr.bf16.mxu1 %v3456_v19  ;;  %862 = vmatprep.subr.bf16.mxu0 %v3456_v19 }
 0x1b2   :  { %698 = vmatpush1.bf16.msra.mxu1 %v673_v1  ;;  %863 = vmatpush1.bf16.msra.mxu0 %v673_v1 }
 0x1b3   :  { %1880 = vmatprep.subr.bf16.mxu0 %v3456_v19  ;;  %3071 = vmatprep.subr.bf16.mxu1 %v3367_v36 }
 0x1b5   :  { %708 = vmatmul.mubr.bf16.vlgmr.msra.gmra.mrb[0].mxu1 %v3331_v3  ;;  %873 = vmatmul.mubr.bf16.vlgmr.msra.gmra.mrb[24].mxu0 %v3334_v5  ;;  %v3377_v5 = vld [vmem:[%s4694_s2 + $0x20] sm:$0xff]  }
 0x1b6   :  { %2951 = vmatprep.mubr.msk.bf16.mxu1 %vm652_vm4, %v3337_v7  ;;  %2969 = vmatprep.mubr.msk.bf16.mxu0 %vm652_vm4, %v3339_v13  ;;  %v3378_v7 = vld [vmem:[%s4694_s2 + $0x88] sm:$0xff]  }
 0x1b7   :  { %3072 = vmatpush3.bf16.msra.mxu1 %v3368_v27  ;;  %1881 = vmatpush1.bf16.msra.mxu0 %v3375_v57  ;;  %v3384_v27 = vld [vmem:[%s4694_s2 + $0x98] sm:$0xff]  }
 0x1b8   :  { %3073 = vmatprep.subr.bf16.mxu1 %v3369_v50  ;;  %1882 = vmatprep.subr.bf16.mxu0 %v3456_v19  ;;  %v3387_v50 = vld [vmem:[%s4694_s2 + $0xa0] sm:$0xff]  }
 0x1bb   :  { %3074 = vmatpush3.bf16.msra.mxu1 %v3370_v52  ;;  %1883 = vmatpush1.bf16.msra.mxu0 %v3378_v7  ;;  %v3390_v7 = vld [vmem:[%s4694_s2 + $0xb8] sm:$0xff]  }
 0x1bc   :  { %3075 = vmatprep.subr.bf16.mxu1 %v3371_v37  ;;  %1884 = vmatprep.subr.bf16.mxu0 %v3456_v19 }
 0x1bd   :  { %716 = vmatmul.mubr.bf16.gmra.mrb[4].mxu1 %v3341_v14  ;;  %881 = vmatmul.mubr.bf16.gmra.mrb[28].mxu0 %v3342_v23 }
 0x1be   :  { %2952 = vmatprep.mubr.msk.bf16.mxu1 %vm652_vm4, %v3343_v24  ;;  %2970 = vmatprep.mubr.msk.bf16.mxu0 %vm652_vm4, %v3345_v30 }
 0x1bf   :  { %3076 = vmatpush3.bf16.msra.mxu1 %v3372_v61 }
 0x1c0   :  { %3077 = vmatprep.subr.bf16.mxu1 %v3373_v47 }
 0x1c3   :  { %3078 = vmatpush3.bf16.msra.mxu1 %v3374_v49 }
 0x1c4   :  { %3079 = vmatprep.subr.bf16.mxu1 %v3376_v51 }
 0x1c5   :  { %724 = vmatmul.mubr.bf16.gmra.mrb[8].mxu1 %v3347_v33  ;;  %889 = vmatmul.mubr.bf16.gmra.mrb[32].mxu0 %v3348_v35 }
 0x1c6   :  { %2953 = vmatprep.mubr.msk.bf16.mxu1 %vm652_vm4, %v3349_v39  ;;  %2971 = vmatprep.mubr.msk.bf16.mxu0 %vm652_vm4, %v3351_v59  ;;  %v3379_v39 = vld [vmem:[%s4694_s2 + $0x68] sm:$0xff]  }
 0x1c7   :  { %3080 = vmatpush3.bf16.msra.mxu1 %v3377_v5 }
 0x1c8   :  { %3081 = vmatprep.subr.bf16.mxu1 %v3379_v39  ;;  %v3394_v39 = vld [vmem:[%s4694_s2 + $0xd8] sm:$0xff]  }
 0x1cd   :  { %732 = vmatmul.mubr.bf16.gmra.mrb[12].mxu1 %v3353_v12  ;;  %897 = vmatmul.mubr.bf16.gmra.mrb[36].mxu0 %v3354_v15  ;;  %v3380_v15 = vld [vmem:[%s4694_s2 + $0x28] sm:$0xff]  }
 0x1ce   :  { %2954 = vmatprep.mubr.msk.bf16.mxu1 %vm652_vm4, %v3355_v16  ;;  %2972 = vmatprep.mubr.msk.bf16.mxu0 %vm652_vm4, %v3357_v17  ;;  %v3381_v16 = vld [vmem:[%s4694_s2 + $0x90] sm:$0xff]  }
 0x1cf   :  { %3082 = vmatpush3.bf16.msra.mxu1 %v3380_v15  ;;  %1885 = vmatpush1.bf16.msra.mxu0 %v3381_v16 }
 0x1d0   :  { %1886 = vmatprep.subr.bf16.mxu0 %v3456_v19 }
 0x1d3   :  { %1887 = vmatpush1.bf16.msra.mxu0 %v3384_v27 }
 0x1d4   :  { %1888 = vmatprep.subr.bf16.mxu0 %v3456_v19 }
 0x1d5   :  { %740 = vmatmul.mubr.bf16.gmra.mrb[16].mxu1 %v3359_v20  ;;  %905 = vmatmul.mubr.bf16.gmra.mrb[40].mxu0 %v3360_v2  ;;  %v3382_v2 = vld [vmem:[%s4694_s2 + $0x70] sm:$0xff]  }
 0x1d6   :  { %2955 = vmatprep.mubr.msk.bf16.mxu1 %vm652_vm4, %v3361_v6  ;;  %2973 = vmatprep.mubr.msk.bf16.mxu0 %vm652_vm4, %v3363_v22  ;;  %vm2448_vm4 = vcmask 1043456  }
 0x1d7   :  { %3083 = vmatprep.subr.bf16.mxu1 %v3382_v2  ;;  %1889 = vmatpush1.bf16.msra.mxu0 %v3387_v50 }
 0x1d8   :  { %1890 = vmatprep.subr.bf16.mxu0 %v3456_v19 }
 0x1dd   :  { %748 = vmatmul.mubr.bf16.gmra.mrb[20].mxu1 %v3365_v9  ;;  %913 = vmatmul.mubr.bf16.gmra.mrb[44].mxu0 %v3366_v32 }
 0x288   :  { %v709_v34 = vpop.f32.mrb[0].mxu1  ;;  %v874_v21 = vpop.f32.mrb[24].mxu0 }
 0x289   :  { %v921_v40 = vmax.f32 %v709_v34, %v874_v21  ;;  %v711_v41 = vpop.f32.mrb[1].mxu1  ;;  %v876_v26 = vpop.f32.mrb[25].mxu0 }
 0x28a   :  { %v712_v42 = vpop.f32.mrb[2].mxu1  ;;  %v877_v46 = vpop.f32.mrb[26].mxu0  ;;  %v3383_v26 = vld [vmem:[%s4694_s2 + $0x30] sm:$0xff]  }
 0x28b   :  { %933 = vst.msk [vmem:[#allocation2] sm:$0xff] %vm365_vm2, %v921_v40  ;;  %v922_v28 = vmax.f32 %v712_v42, %v877_v46  ;;  %v714_v48 = vpop.f32.mrb[3].mxu1  ;;  %v879_v29 = vpop.f32.mrb[27].mxu0  ;;  %3084 = vmatpush3.bf16.msra.mxu1 %v3383_v26  ;;  %v3385_v46 = vld [vmem:[%s4694_s2 + $0x78] sm:$0xff]  }
 0x28c   :  { %v3386_v29 = vld [vmem:[%s4694_s2 + $0x38] sm:$0xff]   ;;  %3085 = vmatprep.subr.bf16.mxu1 %v3385_v46 }
 0x28d   :  { %934 = vst.msk [vmem:[#allocation2 + $0x8] sm:$0xff] %vm365_vm2, %v922_v28 }
 0x28f   :  { %3086 = vmatpush3.bf16.msra.mxu1 %v3386_v29 }
 0x290   :  { %v717_v53 = vpop.f32.mrb[4].mxu1  ;;  %v882_v31 = vpop.f32.mrb[28].mxu0 }
 0x291   :  { %v923_v54 = vmax.f32 %v717_v53, %v882_v31  ;;  %v719_v38 = vpop.f32.mrb[5].mxu1  ;;  %v884_v55 = vpop.f32.mrb[29].mxu0 }
 0x292   :  { %v720_v56 = vpop.f32.mrb[6].mxu1  ;;  %v885_v43 = vpop.f32.mrb[30].mxu0  ;;  %v979_v60 = vld [vmem:[#allocation2] sm:$0xff] }
 0x293   :  { %935 = vst.msk [vmem:[#allocation2 + $0x10] sm:$0xff] %vm365_vm2, %v923_v54  ;;  %v924_v44 = vmax.f32 %v720_v56, %v885_v43  ;;  %v722_v62 = vpop.f32.mrb[7].mxu1  ;;  %v887_v45 = vpop.f32.mrb[31].mxu0  ;;  %987 = vst.msk [vmem:[#allocation3] sm:$0xff] %vm365_vm2, %v979_v60 }
 0x294   :  { %v1044_v4 = vld [vmem:[#allocation2 + $0x4] sm:$0xff] }
 0x295   :  { %v995_v8 = vld [vmem:[#allocation2 + $0x2] sm:$0xff]  ;;  %936 = vst.msk [vmem:[#allocation2 + $0x18] sm:$0xff] %vm365_vm2, %v924_v44  ;;  %1060 = vrot.lane.b32.xlu0 %v1044_v4, %s3458_s22 }
 0x296   :  { %1011 = vrot.lane.b32.xlu1 %v995_v8, %s3459_s23  ;;  %v980_v10 = vld [vmem:[#allocation2 + $0x8] sm:$0xff] }
 0x297   :  { %988 = vst.msk [vmem:[#allocation3 + $0x20] sm:$0xff] %vm365_vm2, %v980_v10  ;;  %1150 = vst.msk [vmem:[#allocation3 + $0x8] sm:$0xff] %vm365_vm2, %v980_v10  ;;  %v1093_v63 = vld [vmem:[#allocation2 + $0x6] sm:$0xff]  ;;  %v3389_v10 = vld [vmem:[%s4694_s2 + $0xb0] sm:$0xff]  }
 0x298   :  { %v725_v11 = vpop.f32.mrb[8].mxu1  ;;  %v890_v18 = vpop.f32.mrb[32].mxu0  ;;  %v3388_v62 = vld [vmem:[%s4694_s2 + $0xa8] sm:$0xff]  }
 0x299   :  { %v925_v58 = vmax.f32 %v725_v11, %v890_v18  ;;  %1109 = vrot.lane.b32.xlu0 %v1093_v63, %s3460_s29  ;;  %v892_v1 = vpop.f32.mrb[33].mxu0  ;;  %v727_v3 = vpop.f32.mrb[9].mxu1  ;;  %1891 = vmatpush1.bf16.msra.mxu0 %v3388_v62 }
 0x29a   :  { %v996_v13 = vld [vmem:[#allocation2 + $0xa] sm:$0xff]  ;;  %v728_v14 = vpop.f32.mrb[10].mxu1  ;;  %v893_v23 = vpop.f32.mrb[34].mxu0  ;;  %1892 = vmatprep.subr.bf16.mxu0 %v3456_v19 }
 0x29b   :  { %937 = vst.msk [vmem:[#allocation2 + $0x20] sm:$0xff] %vm365_vm2, %v925_v58  ;;  %1013 = vrot.lane.b32.xlu1 %v996_v13, %s3459_s23  ;;  %v926_v24 = vmax.f32 %v728_v14, %v893_v23  ;;  %v895_v30 = vpop.f32.mrb[35].mxu0  ;;  %v730_v33 = vpop.f32.mrb[11].mxu1  ;;  %v1143_v35 = vld [vmem:[#allocation2 + $0x10] sm:$0xff] }
 0x29c   :  { %1151 = vst.msk [vmem:[#allocation3 + $0x28] sm:$0xff] %vm365_vm2, %v1143_v35  ;;  %1310 = vst.msk [vmem:[#allocation3 + $0x10] sm:$0xff] %vm365_vm2, %v1143_v35  ;;  %v1303_v59 = vld [vmem:[#allocation2 + $0x18] sm:$0xff]  ;;  %v1045_v12 = vld [vmem:[#allocation2 + $0xc] sm:$0xff] }
 0x29d   :  { %989 = vst.msk [vmem:[#allocation3 + $0x40] sm:$0xff] %vm365_vm2, %v1143_v35  ;;  %1174 = vrot.lane.b32.xlu0 %v996_v13, %s3459_s23  ;;  %938 = vst.msk [vmem:[#allocation2 + $0x28] sm:$0xff] %vm365_vm2, %v926_v24  ;;  %v1094_v32 = vld [vmem:[#allocation2 + $0xe] sm:$0xff]  ;;  %v4230_v55 = vld [vmem:[#allocation2 + $0x16] sm:$0xff]  ;;  %1893 = vmatpush1.bf16.msra.mxu0 %v3389_v10 }
 0x29e   :  { %1311 = vst.msk [vmem:[#allocation3 + $0x30] sm:$0xff] %vm365_vm2, %v1303_v59  ;;  %990 = vst.msk [vmem:[#allocation3 + $0x60] sm:$0xff] %vm365_vm2, %v1303_v59  ;;  %v4211_v48 = vld [vmem:[#allocation2 + $0x14] sm:$0xff]  ;;  %1894 = vmatprep.subr.bf16.mxu0 %v3456_v19  ;;  %v3391_v24 = vld [vmem:[%s4694_s2 + $0xc0] sm:$0xff]  }
 0x29f   :  { %1470 = vst.msk [vmem:[#allocation3 + $0x18] sm:$0xff] %vm365_vm2, %v1303_v59  ;;  %1152 = vst.msk [vmem:[#allocation3 + $0x48] sm:$0xff] %vm365_vm2, %v1303_v59  ;;  %1062 = vrot.lane.b32.xlu1 %v1045_v12, %s3458_s22  ;;  %v4225_v52 = vld [vmem:[#allocation2 + $0x12] sm:$0xff]  ;;  %v3392_v30 = vld [vmem:[%s4694_s2 + $0xc8] sm:$0xff]  }
 0x2a0   :  { %v733_v17 = vpop.f32.mrb[12].mxu1  ;;  %v898_v20 = vpop.f32.mrb[36].mxu0  ;;  %v3393_v35 = vld [vmem:[%s4694_s2 + $0xd0] sm:$0xff]  }
 0x2a1   :  { %1222 = vrot.lane.b32.xlu0 %v1045_v12, %s3458_s22  ;;  %v927_v6 = vmax.f32 %v733_v17, %v898_v20  ;;  %v900_v22 = vpop.f32.mrb[37].mxu0  ;;  %v735_v9 = vpop.f32.mrb[13].mxu1  ;;  %1895 = vmatpush1.bf16.msra.mxu0 %v3390_v7 }
 0x2a2   :  { %v736_v34 = vpop.f32.mrb[14].mxu1  ;;  %v901_v21 = vpop.f32.mrb[38].mxu0  ;;  %v1463_v42 = vld [vmem:[#allocation2 + $0x20] sm:$0xff]  ;;  %1896 = vmatprep.subr.bf16.mxu0 %v3456_v19 }
 0x2a3   :  { %1111 = vrot.lane.b32.xlu1 %v1094_v32, %s3460_s29  ;;  %939 = vst.msk [vmem:[#allocation2 + $0x30] sm:$0xff] %vm365_vm2, %v927_v6  ;;  %v928_v36 = vmax.f32 %v736_v34, %v901_v21  ;;  %v903_v40 = vpop.f32.mrb[39].mxu0  ;;  %v738_v41 = vpop.f32.mrb[15].mxu1  ;;  %1471 = vst.msk [vmem:[#allocation3 + $0x38] sm:$0xff] %vm365_vm2, %v1463_v42  ;;  %v1319_v8 = vld [vmem:[#allocation2 + $0x1a] sm:$0xff] }
 0x2a4   :  { %1153 = vst.msk [vmem:[#allocation3 + $0x68] sm:$0xff] %vm365_vm2, %v1463_v42  ;;  %1312 = vst.msk [vmem:[#allocation3 + $0x50] sm:$0xff] %vm365_vm2, %v1463_v42  ;;  %v1305_v28 = vld [vmem:[#allocation2 + $0x28] sm:$0xff]  ;;  %v1367_v63 = vld [vmem:[#allocation2 + $0x1c] sm:$0xff] }
 0x2a5   :  { %991 = vst.msk [vmem:[#allocation3 + $0x80] sm:$0xff] %vm365_vm2, %v1463_v42  ;;  %1270 = vrot.lane.b32.xlu0 %v1094_v32, %s3460_s29  ;;  %940 = vst.msk [vmem:[#allocation2 + $0x38] sm:$0xff] %vm365_vm2, %v928_v36  ;;  %v1415_v23 = vld [vmem:[#allocation2 + $0x1e] sm:$0xff]  ;;  %1897 = vmatpush1.bf16.msra.mxu0 %v3391_v24  ;;  %v1257_v15 = vld [vmem:[#allocation2 + $0x26] sm:$0xff] }
 0x2a6   :  { %1313 = vst.msk [vmem:[#allocation3 + $0x70] sm:$0xff] %vm365_vm2, %v1305_v28  ;;  %992 = vst.msk [vmem:[#allocation3 + $0xa0] sm:$0xff] %vm365_vm2, %v1305_v28  ;;  %1898 = vmatprep.subr.bf16.mxu0 %v3456_v19  ;;  %v1479_v59 = vld [vmem:[#allocation2 + $0x22] sm:$0xff] }
 0x2a7   :  { %1472 = vst.msk [vmem:[#allocation3 + $0x58] sm:$0xff] %vm365_vm2, %v1305_v28  ;;  %1154 = vst.msk [vmem:[#allocation3 + $0x88] sm:$0xff] %vm365_vm2, %v1305_v28  ;;  %1224 = vrot.lane.b32.xlu1 %v4211_v48, %s3458_s22  ;;  %v1209_v12 = vld [vmem:[#allocation2 + $0x24] sm:$0xff] }
 0x2a8   :  { %v741_v53 = vpop.f32.mrb[16].mxu1  ;;  %v906_v31 = vpop.f32.mrb[40].mxu0 }
 0x2a9   :  { %1176 = vrot.lane.b32.xlu0 %v4225_v52, %s3459_s23  ;;  %v929_v37 = vmax.f32 %v741_v53, %v906_v31  ;;  %v908_v54 = vpop.f32.mrb[41].mxu0  ;;  %v743_v38 = vpop.f32.mrb[17].mxu1  ;;  %1899 = vmatpush1.bf16.msra.mxu0 %v3392_v30 }
 0x2aa   :  { %v744_v56 = vpop.f32.mrb[18].mxu1  ;;  %v909_v43 = vpop.f32.mrb[42].mxu0  ;;  %v1465_v45 = vld [vmem:[#allocation2 + $0x30] sm:$0xff]  ;;  %1900 = vmatprep.subr.bf16.mxu0 %v3456_v19 }
 0x2ab   :  { %1272 = vrot.lane.b32.xlu1 %v4230_v55, %s3460_s29  ;;  %941 = vst.msk [vmem:[#allocation2 + $0x40] sm:$0xff] %vm365_vm2, %v929_v37  ;;  %v930_v60 = vmax.f32 %v744_v56, %v909_v43  ;;  %v911_v61 = vpop.f32.mrb[43].mxu0  ;;  %v746_v44 = vpop.f32.mrb[19].mxu1  ;;  %1473 = vst.msk [vmem:[#allocation3 + $0x78] sm:$0xff] %vm365_vm2, %v1465_v45  ;;  %v1369_v16 = vld [vmem:[#allocation2 + $0x2c] sm:$0xff] }
 0x2ac   :  { %1155 = vst.msk [vmem:[#allocation3 + $0xa8] sm:$0xff] %vm365_vm2, %v1465_v45  ;;  %1314 = vst.msk [vmem:[#allocation3 + $0x90] sm:$0xff] %vm365_vm2, %v1465_v45  ;;  %v1307_v4 = vld [vmem:[#allocation2 + $0x38] sm:$0xff]  ;;  %v1417_v17 = vld [vmem:[#allocation2 + $0x2e] sm:$0xff] }
 0x2ad   :  { %993 = vst.msk [vmem:[#allocation3 + $0xc0] sm:$0xff] %vm365_vm2, %v1465_v45  ;;  %1334 = vrot.lane.b32.xlu0 %v4225_v52, %s3459_s23  ;;  %942 = vst.msk [vmem:[#allocation2 + $0x48] sm:$0xff] %vm365_vm2, %v930_v60  ;;  %1901 = vmatpush1.bf16.msra.mxu0 %v3393_v35  ;;  %v1481_v20 = vld [vmem:[#allocation2 + $0x32] sm:$0xff] }
 0x2ae   :  { %1315 = vst.msk [vmem:[#allocation3 + $0xb0] sm:$0xff] %vm365_vm2, %v1307_v4  ;;  %994 = vst.msk [vmem:[#allocation3 + $0xe0] sm:$0xff] %vm365_vm2, %v1307_v4  ;;  %1902 = vmatprep.subr.bf16.mxu0 %v3456_v19  ;;  %v1321_v19 = vld [vmem:[#allocation2 + $0x2a] sm:$0xff]  ;;  %v1211_v2 = vld [vmem:[#allocation2 + $0x34] sm:$0xff] }
 0x2af   :  { %1474 = vst.msk [vmem:[#allocation3 + $0x98] sm:$0xff] %vm365_vm2, %v1307_v4  ;;  %1156 = vst.msk [vmem:[#allocation3 + $0xc8] sm:$0xff] %vm365_vm2, %v1307_v4  ;;  %1336 = vrot.lane.b32.xlu1 %v1319_v8, %s3459_s23  ;;  %v1259_v6 = vld [vmem:[#allocation2 + $0x36] sm:$0xff] }
 0x2b0   :  { %v749_v47 = vpop.f32.mrb[20].mxu1  ;;  %v914_v49 = vpop.f32.mrb[44].mxu0 }
 0x2b1   :  { %1382 = vrot.lane.b32.xlu0 %v4211_v48, %s3458_s22  ;;  %v931_v57 = vmax.f32 %v749_v47, %v914_v49  ;;  %v751_v11 = vpop.f32.mrb[21].mxu1  ;;  %v916_v18 = vpop.f32.mrb[45].mxu0  ;;  %1903 = vmatpush1.bf16.msra.mxu0 %v3394_v39 }
 0x2b2   :  { %v917_v51 = vpop.f32.mrb[46].mxu0  ;;  %v752_v58 = vpop.f32.mrb[22].mxu1  ;;  %v1467_v13 = vld [vmem:[#allocation2 + $0x40] sm:$0xff] }
 0x2b3   :  { %1384 = vrot.lane.b32.xlu1 %v1367_v63, %s3458_s22  ;;  %943 = vst.msk [vmem:[#allocation2 + $0x50] sm:$0xff] %vm365_vm2, %v931_v57  ;;  %v932_v1 = vmax.f32 %v752_v58, %v917_v51  ;;  %v754_v3 = vpop.f32.mrb[23].mxu1  ;;  %v919_v5 = vpop.f32.mrb[47].mxu0  ;;  %1475 = vst.msk [vmem:[#allocation3 + $0xb8] sm:$0xff] %vm365_vm2, %v1467_v13  ;;  %v1323_v22 = vld [vmem:[#allocation2 + $0x3a] sm:$0xff] }
 0x2b4   :  { %1157 = vst.msk [vmem:[#allocation3 + $0xe8] sm:$0xff] %vm365_vm2, %v1467_v13  ;;  %1316 = vst.msk [vmem:[#allocation3 + $0xd0] sm:$0xff] %vm365_vm2, %v1467_v13  ;;  %v1309_v14 = vld [vmem:[#allocation2 + $0x48] sm:$0xff]  ;;  %v1371_v9 = vld [vmem:[#allocation2 + $0x3c] sm:$0xff] }
 0x2b5   :  { %1430 = vrot.lane.b32.xlu0 %v4230_v55, %s3460_s29  ;;  %945 = vst.msk [vmem:[#allocation2 + $0x58] sm:$0x3] %vm944_vm7, %v932_v1  ;;  %v1419_v32 = vld [vmem:[#allocation2 + $0x3e] sm:$0xff]  ;;  %v1261_v37 = vld [vmem:[#allocation2 + $0x46] sm:$0xff] }
 0x2b6   :  { %1317 = vst.msk [vmem:[#allocation3 + $0xf0] sm:$0xff] %vm365_vm2, %v1309_v14  ;;  %1476 = vst.msk [vmem:[#allocation3 + $0xd8] sm:$0xff] %vm365_vm2, %v1309_v14  ;;  %v1483_v46 = vld [vmem:[#allocation2 + $0x42] sm:$0xff] }
 0x2b7   :  { %1432 = vrot.lane.b32.xlu1 %v1415_v23, %s3460_s29 }
 0x2b9   :  { %1015 = vrot.lane.b32.xlu0 %v4225_v52, %s3459_s23  ;;  %v1213_v52 = vld [vmem:[#allocation2 + $0x44] sm:$0xff] }
 0x2ba   :  { %v1469_v33 = vld [vmem:[#allocation2 + $0x50] sm:$0xff] }
 0x2bb   :  { %1017 = vrot.lane.b32.xlu1 %v1319_v8, %s3459_s23  ;;  %1477 = vst.msk [vmem:[#allocation3 + $0xf8] sm:$0xff] %vm365_vm2, %v1469_v33  ;;  %v1325_v60 = vld [vmem:[#allocation2 + $0x4a] sm:$0xff] }
 0x2bc   :  { %v1485_v49 = vld [vmem:[#allocation2 + $0x52] sm:$0xff] }
 0x2bd   :  { %1064 = vrot.lane.b32.xlu0 %v4211_v48, %s3458_s22  ;;  %v1421_v18 = vld [vmem:[#allocation2 + $0x4e] sm:$0xff] }
 0x2bf   :  { %1066 = vrot.lane.b32.xlu1 %v1367_v63, %s3458_s22 }
 0x2c1   :  { %1113 = vrot.lane.b32.xlu0 %v4230_v55, %s3460_s29 }
 0x2c3   :  { %1115 = vrot.lane.b32.xlu1 %v1415_v23, %s3460_s29 }
 0x2c5   :  { %1494 = vrot.lane.b32.xlu0 %v1319_v8, %s3459_s23 }
 0x2c7   :  { %1496 = vrot.lane.b32.xlu1 %v1479_v59, %s3459_s23 }
 0x2c9   :  { %1178 = vrot.lane.b32.xlu0 %v1319_v8, %s3459_s23  ;;  %v1373_v8 = vld [vmem:[#allocation2 + $0x4c] sm:$0xff] }
 0x2cb   :  { %1180 = vrot.lane.b32.xlu1 %v1479_v59, %s3459_s23 }
 0x2cd   :  { %1226 = vrot.lane.b32.xlu0 %v1367_v63, %s3458_s22 }
 0x2cf   :  { %1228 = vrot.lane.b32.xlu1 %v1209_v12, %s3458_s22 }
 0x2d1   :  { %1274 = vrot.lane.b32.xlu0 %v1415_v23, %s3460_s29 }
 0x2d3   :  { %1276 = vrot.lane.b32.xlu1 %v1257_v15, %s3460_s29 }
 0x2d5   :  { %1338 = vrot.lane.b32.xlu0 %v1479_v59, %s3459_s23 }
 0x2d7   :  { %1340 = vrot.lane.b32.xlu1 %v1321_v19, %s3459_s23 }
 0x2d9   :  { %1386 = vrot.lane.b32.xlu0 %v1209_v12, %s3458_s22 }
 0x2db   :  { %1388 = vrot.lane.b32.xlu1 %v1369_v16, %s3458_s22 }
 0x2dd   :  { %1434 = vrot.lane.b32.xlu0 %v1257_v15, %s3460_s29 }
 0x2df   :  { %1436 = vrot.lane.b32.xlu1 %v1417_v17, %s3460_s29 }
 0x2e1   :  { %1019 = vrot.lane.b32.xlu0 %v1479_v59, %s3459_s23 }
 0x2e3   :  { %1021 = vrot.lane.b32.xlu1 %v1321_v19, %s3459_s23 }
 0x2e5   :  { %1068 = vrot.lane.b32.xlu0 %v1209_v12, %s3458_s22 }
 0x2e7   :  { %1070 = vrot.lane.b32.xlu1 %v1369_v16, %s3458_s22 }
 0x2e9   :  { %1117 = vrot.lane.b32.xlu0 %v1257_v15, %s3460_s29 }
 0x2eb   :  { %1119 = vrot.lane.b32.xlu1 %v1417_v17, %s3460_s29 }
 0x2ed   :  { %1498 = vrot.lane.b32.xlu0 %v1321_v19, %s3459_s23 }
 0x2ef   :  { %1500 = vrot.lane.b32.xlu1 %v1481_v20, %s3459_s23 }
 0x2f1   :  { %1182 = vrot.lane.b32.xlu0 %v1321_v19, %s3459_s23 }
 0x2f3   :  { %1184 = vrot.lane.b32.xlu1 %v1481_v20, %s3459_s23 }
 0x2f5   :  { %1230 = vrot.lane.b32.xlu0 %v1369_v16, %s3458_s22 }
 0x2f7   :  { %1232 = vrot.lane.b32.xlu1 %v1211_v2, %s3458_s22 }
 0x2f9   :  { %1278 = vrot.lane.b32.xlu0 %v1417_v17, %s3460_s29 }
 0x2fb   :  { %1280 = vrot.lane.b32.xlu1 %v1259_v6, %s3460_s29 }
 0x2fd   :  { %1342 = vrot.lane.b32.xlu0 %v1481_v20, %s3459_s23 }
 0x2ff   :  { %1344 = vrot.lane.b32.xlu1 %v1323_v22, %s3459_s23 }
 0x301   :  { %1390 = vrot.lane.b32.xlu0 %v1211_v2, %s3458_s22 }
 0x303   :  { %1392 = vrot.lane.b32.xlu1 %v1371_v9, %s3458_s22 }
 0x305   :  { %1438 = vrot.lane.b32.xlu0 %v1259_v6, %s3460_s29 }
 0x307   :  { %v1061_v34 = vpop.permute.xlu0 %1060  ;;  %1440 = vrot.lane.b32.xlu1 %v1419_v32, %s3460_s29 }
 0x308   :  { %v1012_v21 = vpop.permute.xlu1 %1011 }
 0x309   :  { %1036 = vst.msk [vmem:[#allocation3] sm:$0xff] %vm1035_vm8, %v1012_v21  ;;  %1023 = vrot.lane.b32.xlu0 %v1481_v20, %s3459_s23 }
 0x30a   :  { %1085 = vst.msk [vmem:[#allocation3] sm:$0xff] %vm1084_vm9, %v1061_v34 }
 0x30b   :  { %v1110_v36 = vpop.permute.xlu0 %1109  ;;  %1025 = vrot.lane.b32.xlu1 %v1323_v22, %s3459_s23 }
 0x30c   :  { %1134 = vst.msk [vmem:[#allocation3] sm:$0xff] %vm1133_vm10, %v1110_v36 }
 0x30d   :  { %v1014_v40 = vpop.permute.xlu1 %1013  ;;  %1072 = vrot.lane.b32.xlu0 %v1211_v2, %s3458_s22 }
 0x30e   :  { %1037 = vst.msk [vmem:[#allocation3 + $0x20] sm:$0xff] %vm1035_vm8, %v1014_v40 }
 0x30f   :  { %v1175_v41 = vpop.permute.xlu0 %1174  ;;  %1074 = vrot.lane.b32.xlu1 %v1371_v9, %s3458_s22 }
 0x310   :  { %1198 = vst.msk [vmem:[#allocation3 + $0x8] sm:$0xff] %vm1035_vm8, %v1175_v41 }
 0x311   :  { %v1063_v26 = vpop.permute.xlu1 %1062  ;;  %1121 = vrot.lane.b32.xlu0 %v1259_v6, %s3460_s29 }
 0x312   :  { %1086 = vst.msk [vmem:[#allocation3 + $0x20] sm:$0xff] %vm1084_vm9, %v1063_v26 }
 0x313   :  { %v1223_v27 = vpop.permute.xlu0 %1222  ;;  %1123 = vrot.lane.b32.xlu1 %v1419_v32, %s3460_s29  ;;  %v1526_v44 = vld [vmem:[#allocation3] sm:$0xff] }
 0x314   :  { %1246 = vst.msk [vmem:[#allocation3 + $0x8] sm:$0xff] %vm1084_vm9, %v1223_v27 }
 0x315   :  { %v1112_v42 = vpop.permute.xlu1 %1111  ;;  %1502 = vrot.lane.b32.xlu0 %v1323_v22, %s3459_s23 }
 0x316   :  { %1135 = vst.msk [vmem:[#allocation3 + $0x20] sm:$0xff] %vm1133_vm10, %v1112_v42 }
 0x317   :  { %v1271_v28 = vpop.permute.xlu0 %1270  ;;  %1504 = vrot.lane.b32.xlu1 %v1483_v46, %s3459_s23 }
 0x318   :  { %1294 = vst.msk [vmem:[#allocation3 + $0x8] sm:$0xff] %vm1133_vm10, %v1271_v28 }
 0x319   :  { %v1225_v48 = vpop.permute.xlu1 %1224  ;;  %1186 = vrot.lane.b32.xlu0 %v1323_v22, %s3459_s23 }
 0x31b   :  { %v1177_v29 = vpop.permute.xlu0 %1176  ;;  %1188 = vrot.lane.b32.xlu1 %v1483_v46, %s3459_s23 }
 0x31c   :  { %1199 = vst.msk [vmem:[#allocation3 + $0x28] sm:$0xff] %vm1035_vm8, %v1177_v29 }
 0x31d   :  { %1247 = vst.msk [vmem:[#allocation3 + $0x28] sm:$0xff] %vm1084_vm9, %v1225_v48  ;;  %v1273_v50 = vpop.permute.xlu1 %1272  ;;  %1234 = vrot.lane.b32.xlu0 %v1371_v9, %s3458_s22  ;;  %v1530_v38 = vld [vmem:[#allocation3 + $0x20] sm:$0xff] }
 0x31e   :  { %1295 = vst.msk [vmem:[#allocation3 + $0x28] sm:$0xff] %vm1133_vm10, %v1273_v50  ;;  %v1558_v45 = vpack.c.bf16 %v1530_v38, %v1526_v44 }
 0x31f   :  { %v1335_v53 = vpop.permute.xlu0 %1334  ;;  %1236 = vrot.lane.b32.xlu1 %v1213_v52, %s3458_s22  ;;  %v1527_v56 = vld [vmem:[#allocation3 + $0x8] sm:$0xff] }
 0x320   :  { %1358 = vst.msk [vmem:[#allocation3 + $0x10] sm:$0xff] %vm1035_vm8, %v1335_v53 }
 0x321   :  { %v1337_v31 = vpop.permute.xlu1 %1336  ;;  %1282 = vrot.lane.b32.xlu0 %v1419_v32, %s3460_s29 }
 0x322   :  { %1359 = vst.msk [vmem:[#allocation3 + $0x30] sm:$0xff] %vm1035_vm8, %v1337_v31 }
 0x323   :  { %v1383_v54 = vpop.permute.xlu0 %1382  ;;  %1284 = vrot.lane.b32.xlu1 %v1261_v37, %s3460_s29 }
 0x324   :  { %1406 = vst.msk [vmem:[#allocation3 + $0x10] sm:$0xff] %vm1084_vm9, %v1383_v54 }
 0x325   :  { %v1385_v55 = vpop.permute.xlu1 %1384  ;;  %1346 = vrot.lane.b32.xlu0 %v1483_v46, %s3459_s23  ;;  %v1531_v43 = vld [vmem:[#allocation3 + $0x28] sm:$0xff] }
 0x326   :  { %1407 = vst.msk [vmem:[#allocation3 + $0x30] sm:$0xff] %vm1084_vm9, %v1385_v55  ;;  %v1559_v61 = vpack.c.bf16 %v1531_v43, %v1527_v56 }
 0x327   :  { %v1431_v62 = vpop.permute.xlu0 %1430  ;;  %1348 = vrot.lane.b32.xlu1 %v1325_v60, %s3459_s23 }
 0x328   :  { %1454 = vst.msk [vmem:[#allocation3 + $0x10] sm:$0xff] %vm1133_vm10, %v1431_v62  ;;  %1847 = vmatprep.mubr.bf16.mxu1 %v1559_v61 }
 0x329   :  { %1848 = vmatmul.mubr.bf16.vlgmr.msra.gmra.mrb[24].mxu1 %v1558_v45  ;;  %v1433_v4 = vpop.permute.xlu1 %1432  ;;  %1394 = vrot.lane.b32.xlu0 %v1213_v52, %s3458_s22 }
 0x32a   :  { %1455 = vst.msk [vmem:[#allocation3 + $0x30] sm:$0xff] %vm1133_vm10, %v1433_v4 }
 0x32b   :  { %v1016_v10 = vpop.permute.xlu0 %1015  ;;  %1396 = vrot.lane.b32.xlu1 %v1373_v8, %s3458_s22 }
 0x32c   :  { %1038 = vst.msk [vmem:[#allocation3 + $0x40] sm:$0xff] %vm1035_vm8, %v1016_v10 }
 0x32d   :  { %v1018_v47 = vpop.permute.xlu1 %1017  ;;  %1506 = vrot.lane.b32.xlu0 %v1325_v60, %s3459_s23 }
 0x32e   :  { %1039 = vst.msk [vmem:[#allocation3 + $0x60] sm:$0xff] %vm1035_vm8, %v1018_v47 }
 0x32f   :  { %v1065_v57 = vpop.permute.xlu0 %1064  ;;  %1508 = vrot.lane.b32.xlu1 %v1485_v49, %s3459_s23  ;;  %v1528_v33 = vld [vmem:[#allocation3 + $0x10] sm:$0xff] }
 0x330   :  { %1087 = vst.msk [vmem:[#allocation3 + $0x40] sm:$0xff] %vm1084_vm9, %v1065_v57 }
 0x331   :  { %v1067_v11 = vpop.permute.xlu1 %1066  ;;  %1442 = vrot.lane.b32.xlu0 %v1261_v37, %s3460_s29  ;;  %v1532_v13 = vld [vmem:[#allocation3 + $0x30] sm:$0xff] }
 0x332   :  { %1088 = vst.msk [vmem:[#allocation3 + $0x60] sm:$0xff] %vm1084_vm9, %v1067_v11  ;;  %v1560_v39 = vpack.c.bf16 %v1532_v13, %v1528_v33 }
 0x333   :  { %v1114_v63 = vpop.permute.xlu0 %1113  ;;  %1444 = vrot.lane.b32.xlu1 %v1421_v18, %s3460_s29 }
 0x334   :  { %1136 = vst.msk [vmem:[#allocation3 + $0x40] sm:$0xff] %vm1133_vm10, %v1114_v63 }
 0x335   :  { %v1116_v51 = vpop.permute.xlu1 %1115 }
 0x336   :  { %1137 = vst.msk [vmem:[#allocation3 + $0x60] sm:$0xff] %vm1133_vm10, %v1116_v51 }
 0x337   :  { %v1495_v58 = vpop.permute.xlu0 %1494 }
 0x338   :  { %1518 = vst.msk [vmem:[#allocation3 + $0x18] sm:$0xff] %vm1035_vm8, %v1495_v58 }
 0x339   :  { %v1497_v1 = vpop.permute.xlu1 %1496 }
 0x33a   :  { %1519 = vst.msk [vmem:[#allocation3 + $0x38] sm:$0xff] %vm1035_vm8, %v1497_v1 }
 0x33b   :  { %v1179_v3 = vpop.permute.xlu0 %1178  ;;  %v1534_v22 = vld [vmem:[#allocation3 + $0x40] sm:$0xff] }
 0x33c   :  { %1200 = vst.msk [vmem:[#allocation3 + $0x48] sm:$0xff] %vm1035_vm8, %v1179_v3 }
 0x33d   :  { %v1181_v5 = vpop.permute.xlu1 %1180  ;;  %v1538_v16 = vld [vmem:[#allocation3 + $0x60] sm:$0xff] }
 0x33e   :  { %1201 = vst.msk [vmem:[#allocation3 + $0x68] sm:$0xff] %vm1035_vm8, %v1181_v5  ;;  %v1562_v32 = vpack.c.bf16 %v1538_v16, %v1534_v22 }
 0x33f   :  { %v1227_v7 = vpop.permute.xlu0 %1226  ;;  %v1529_v23 = vld [vmem:[#allocation3 + $0x18] sm:$0xff] }
 0x340   :  { %1248 = vst.msk [vmem:[#allocation3 + $0x48] sm:$0xff] %vm1084_vm9, %v1227_v7 }
 0x341   :  { %v1229_v14 = vpop.permute.xlu1 %1228  ;;  %v1533_v24 = vld [vmem:[#allocation3 + $0x38] sm:$0xff] }
 0x342   :  { %1249 = vst.msk [vmem:[#allocation3 + $0x68] sm:$0xff] %vm1084_vm9, %v1229_v14  ;;  %v1561_v30 = vpack.c.bf16 %v1533_v24, %v1529_v23 }
 0x343   :  { %v1275_v35 = vpop.permute.xlu0 %1274 }
 0x344   :  { %1296 = vst.msk [vmem:[#allocation3 + $0x48] sm:$0xff] %vm1133_vm10, %v1275_v35  ;;  %3003 = vmatprep.mubr.msk.bf16.mxu0 %vm949_vm6, %v1561_v30 }
 0x345   :  { %1913 = vmatmul.mubr.bf16.vlgmr.msra.gmra.mrb[48].mxu0 %v1560_v39  ;;  %v1277_v59 = vpop.permute.xlu1 %1276 }
 0x346   :  { %1297 = vst.msk [vmem:[#allocation3 + $0x68] sm:$0xff] %vm1133_vm10, %v1277_v59 }
 0x347   :  { %v1339_v12 = vpop.permute.xlu0 %1338 }
 0x348   :  { %1360 = vst.msk [vmem:[#allocation3 + $0x50] sm:$0xff] %vm1035_vm8, %v1339_v12 }
 0x349   :  { %v1341_v15 = vpop.permute.xlu1 %1340 }
 0x34a   :  { %1361 = vst.msk [vmem:[#allocation3 + $0x70] sm:$0xff] %vm1035_vm8, %v1341_v15 }
 0x34b   :  { %v1387_v19 = vpop.permute.xlu0 %1386  ;;  %v1535_v20 = vld [vmem:[#allocation3 + $0x48] sm:$0xff] }
 0x34c   :  { %1408 = vst.msk [vmem:[#allocation3 + $0x50] sm:$0xff] %vm1084_vm9, %v1387_v19 }
 0x34d   :  { %v1389_v17 = vpop.permute.xlu1 %1388  ;;  %v1539_v2 = vld [vmem:[#allocation3 + $0x68] sm:$0xff] }
 0x34e   :  { %1409 = vst.msk [vmem:[#allocation3 + $0x70] sm:$0xff] %vm1084_vm9, %v1389_v17  ;;  %v1563_v6 = vpack.c.bf16 %v1539_v2, %v1535_v20 }
 0x34f   :  { %v1435_v9 = vpop.permute.xlu0 %1434 }
 0x350   :  { %1456 = vst.msk [vmem:[#allocation3 + $0x50] sm:$0xff] %vm1133_vm10, %v1435_v9  ;;  %1855 = vmatprep.mubr.bf16.mxu1 %v1563_v6 }
 0x351   :  { %1856 = vmatmul.mubr.bf16.gmra.mrb[28].mxu1 %v1562_v32  ;;  %v1437_v34 = vpop.permute.xlu1 %1436 }
 0x352   :  { %1457 = vst.msk [vmem:[#allocation3 + $0x70] sm:$0xff] %vm1133_vm10, %v1437_v34 }
 0x353   :  { %v1020_v21 = vpop.permute.xlu0 %1019 }
 0x354   :  { %1040 = vst.msk [vmem:[#allocation3 + $0x80] sm:$0xff] %vm1035_vm8, %v1020_v21 }
 0x355   :  { %v1022_v36 = vpop.permute.xlu1 %1021 }
 0x356   :  { %1041 = vst.msk [vmem:[#allocation3 + $0xa0] sm:$0xff] %vm1035_vm8, %v1022_v36 }
 0x357   :  { %v1069_v40 = vpop.permute.xlu0 %1068  ;;  %v1536_v54 = vld [vmem:[#allocation3 + $0x50] sm:$0xff] }
 0x358   :  { %1089 = vst.msk [vmem:[#allocation3 + $0x80] sm:$0xff] %vm1084_vm9, %v1069_v40 }
 0x359   :  { %v1071_v41 = vpop.permute.xlu1 %1070  ;;  %v1540_v50 = vld [vmem:[#allocation3 + $0x70] sm:$0xff] }
 0x35a   :  { %1090 = vst.msk [vmem:[#allocation3 + $0xa0] sm:$0xff] %vm1084_vm9, %v1071_v41  ;;  %v1564_v55 = vpack.c.bf16 %v1540_v50, %v1536_v54  ;;  %v4441_v54 = vld [vmem:[%s4705_s13 + $0x3] ss:$0 sm:$0xff] }
 0x35b   :  { %v1118_v26 = vpop.permute.xlu0 %1117 }
 0x35c   :  { %1138 = vst.msk [vmem:[#allocation3 + $0x80] sm:$0xff] %vm1133_vm10, %v1118_v26 }
 0x35d   :  { %v1120_v27 = vpop.permute.xlu1 %1119 }
 0x35e   :  { %1139 = vst.msk [vmem:[#allocation3 + $0xa0] sm:$0xff] %vm1133_vm10, %v1120_v27 }
 0x35f   :  { %v1499_v42 = vpop.permute.xlu0 %1498 }
 0x360   :  { %1520 = vst.msk [vmem:[#allocation3 + $0x58] sm:$0xff] %vm1035_vm8, %v1499_v42 }
 0x361   :  { %v1501_v46 = vpop.permute.xlu1 %1500 }
 0x362   :  { %1521 = vst.msk [vmem:[#allocation3 + $0x78] sm:$0xff] %vm1035_vm8, %v1501_v46 }
 0x363   :  { %v1183_v28 = vpop.permute.xlu0 %1182  ;;  %v1542_v10 = vld [vmem:[#allocation3 + $0x80] sm:$0xff] }
 0x364   :  { %1202 = vst.msk [vmem:[#allocation3 + $0x88] sm:$0xff] %vm1035_vm8, %v1183_v28 }
 0x365   :  { %v1185_v48 = vpop.permute.xlu1 %1184  ;;  %v1546_v44 = vld [vmem:[#allocation3 + $0xa0] sm:$0xff] }
 0x366   :  { %1203 = vst.msk [vmem:[#allocation3 + $0xa8] sm:$0xff] %vm1035_vm8, %v1185_v48  ;;  %v1566_v49 = vpack.c.bf16 %v1546_v44, %v1542_v10 }
 0x367   :  { %v1231_v29 = vpop.permute.xlu0 %1230  ;;  %v1537_v53 = vld [vmem:[#allocation3 + $0x58] sm:$0xff] }
 0x368   :  { %1250 = vst.msk [vmem:[#allocation3 + $0x88] sm:$0xff] %vm1084_vm9, %v1231_v29 }
 0x369   :  { %v1233_v52 = vpop.permute.xlu1 %1232  ;;  %v1541_v31 = vld [vmem:[#allocation3 + $0x78] sm:$0xff] }
 0x36a   :  { %1251 = vst.msk [vmem:[#allocation3 + $0xa8] sm:$0xff] %vm1084_vm9, %v1233_v52  ;;  %v1565_v37 = vpack.c.bf16 %v1541_v31, %v1537_v53 }
 0x36b   :  { %v1279_v38 = vpop.permute.xlu0 %1278 }
 0x36c   :  { %1298 = vst.msk [vmem:[#allocation3 + $0x88] sm:$0xff] %vm1133_vm10, %v1279_v38  ;;  %3004 = vmatprep.mubr.msk.bf16.mxu0 %vm949_vm6, %v1565_v37 }
 0x36d   :  { %1921 = vmatmul.mubr.bf16.gmra.mrb[52].mxu0 %v1564_v55  ;;  %v1281_v56 = vpop.permute.xlu1 %1280 }
 0x36e   :  { %1299 = vst.msk [vmem:[#allocation3 + $0xa8] sm:$0xff] %vm1133_vm10, %v1281_v56 }
 0x36f   :  { %v1343_v43 = vpop.permute.xlu0 %1342 }
 0x370   :  { %1362 = vst.msk [vmem:[#allocation3 + $0x90] sm:$0xff] %vm1035_vm8, %v1343_v43 }
 0x371   :  { %v1345_v60 = vpop.permute.xlu1 %1344 }
 0x372   :  { %1363 = vst.msk [vmem:[#allocation3 + $0xb0] sm:$0xff] %vm1035_vm8, %v1345_v60 }
 0x373   :  { %v1391_v61 = vpop.permute.xlu0 %1390  ;;  %v1543_v45 = vld [vmem:[#allocation3 + $0x88] sm:$0xff] }
 0x374   :  { %1410 = vst.msk [vmem:[#allocation3 + $0x90] sm:$0xff] %vm1084_vm9, %v1391_v61 }
 0x375   :  { %v1393_v62 = vpop.permute.xlu1 %1392  ;;  %v1547_v4 = vld [vmem:[#allocation3 + $0xa8] sm:$0xff] }
 0x376   :  { %1411 = vst.msk [vmem:[#allocation3 + $0xb0] sm:$0xff] %vm1084_vm9, %v1393_v62  ;;  %v1567_v8 = vpack.c.bf16 %v1547_v4, %v1543_v45 }
 0x377   :  { %v1439_v47 = vpop.permute.xlu0 %1438 }
 0x378   :  { %1458 = vst.msk [vmem:[#allocation3 + $0x90] sm:$0xff] %vm1133_vm10, %v1439_v47  ;;  %1863 = vmatprep.mubr.bf16.mxu1 %v1567_v8 }
 0x379   :  { %1864 = vmatmul.mubr.bf16.gmra.mrb[32].mxu1 %v1566_v49  ;;  %v1441_v57 = vpop.permute.xlu1 %1440 }
 0x37a   :  { %1459 = vst.msk [vmem:[#allocation3 + $0xb0] sm:$0xff] %vm1133_vm10, %v1441_v57 }
 0x37b   :  { %v1024_v11 = vpop.permute.xlu0 %1023 }
 0x37c   :  { %1042 = vst.msk [vmem:[#allocation3 + $0xc0] sm:$0xff] %vm1035_vm8, %v1024_v11 }
 0x37d   :  { %v1026_v18 = vpop.permute.xlu1 %1025 }
 0x37e   :  { %1043 = vst.msk [vmem:[#allocation3 + $0xe0] sm:$0xff] %vm1035_vm8, %v1026_v18 }
 0x37f   :  { %v1073_v63 = vpop.permute.xlu0 %1072  ;;  %v1544_v39 = vld [vmem:[#allocation3 + $0x90] sm:$0xff] }
 0x380   :  { %1091 = vst.msk [vmem:[#allocation3 + $0xc0] sm:$0xff] %vm1084_vm9, %v1073_v63 }
 0x381   :  { %v1075_v51 = vpop.permute.xlu1 %1074  ;;  %v1548_v23 = vld [vmem:[#allocation3 + $0xb0] sm:$0xff] }
 0x382   :  { %1092 = vst.msk [vmem:[#allocation3 + $0xe0] sm:$0xff] %vm1084_vm9, %v1075_v51  ;;  %v1568_v12 = vpack.c.bf16 %v1548_v23, %v1544_v39 }
 0x383   :  { %v1122_v58 = vpop.permute.xlu0 %1121 }
 0x384   :  { %1140 = vst.msk [vmem:[#allocation3 + $0xc0] sm:$0xff] %vm1133_vm10, %v1122_v58 }
 0x385   :  { %v1124_v1 = vpop.permute.xlu1 %1123 }
 0x386   :  { %1141 = vst.msk [vmem:[#allocation3 + $0xe0] sm:$0xff] %vm1133_vm10, %v1124_v1 }
 0x387   :  { %v1503_v3 = vpop.permute.xlu0 %1502 }
 0x388   :  { %1522 = vst.msk [vmem:[#allocation3 + $0x98] sm:$0xff] %vm1035_vm8, %v1503_v3 }
 0x389   :  { %v1505_v5 = vpop.permute.xlu1 %1504 }
 0x38a   :  { %1523 = vst.msk [vmem:[#allocation3 + $0xb8] sm:$0xff] %vm1035_vm8, %v1505_v5 }
 0x38b   :  { %v1187_v7 = vpop.permute.xlu0 %1186  ;;  %v1550_v32 = vld [vmem:[#allocation3 + $0xc0] sm:$0xff] }
 0x38c   :  { %1204 = vst.msk [vmem:[#allocation3 + $0xc8] sm:$0xff] %vm1035_vm8, %v1187_v7 }
 0x38d   :  { %v1189_v13 = vpop.permute.xlu1 %1188  ;;  %v1554_v20 = vld [vmem:[#allocation3 + $0xe0] sm:$0xff] }
 0x38e   :  { %1205 = vst.msk [vmem:[#allocation3 + $0xe8] sm:$0xff] %vm1035_vm8, %v1189_v13  ;;  %v1570_v21 = vpack.c.bf16 %v1554_v20, %v1550_v32 }
 0x38f   :  { %v1235_v14 = vpop.permute.xlu0 %1234  ;;  %v1545_v30 = vld [vmem:[#allocation3 + $0x98] sm:$0xff] }
 0x390   :  { %1252 = vst.msk [vmem:[#allocation3 + $0xc8] sm:$0xff] %vm1084_vm9, %v1235_v14 }
 0x391   :  { %v1237_v24 = vpop.permute.xlu1 %1236  ;;  %v1549_v33 = vld [vmem:[#allocation3 + $0xb8] sm:$0xff] }
 0x392   :  { %1253 = vst.msk [vmem:[#allocation3 + $0xe8] sm:$0xff] %vm1084_vm9, %v1237_v24  ;;  %v1569_v35 = vpack.c.bf16 %v1549_v33, %v1545_v30 }
 0x393   :  { %v1283_v59 = vpop.permute.xlu0 %1282 }
 0x394   :  { %1300 = vst.msk [vmem:[#allocation3 + $0xc8] sm:$0xff] %vm1133_vm10, %v1283_v59  ;;  %3005 = vmatprep.mubr.msk.bf16.mxu0 %vm949_vm6, %v1569_v35 }
 0x395   :  { %1929 = vmatmul.mubr.bf16.gmra.mrb[56].mxu0 %v1568_v12  ;;  %v1285_v15 = vpop.permute.xlu1 %1284 }
 0x396   :  { %1301 = vst.msk [vmem:[#allocation3 + $0xe8] sm:$0xff] %vm1133_vm10, %v1285_v15 }
 0x397   :  { %v1347_v19 = vpop.permute.xlu0 %1346 }
 0x398   :  { %1364 = vst.msk [vmem:[#allocation3 + $0xd0] sm:$0xff] %vm1035_vm8, %v1347_v19 }
 0x399   :  { %v1349_v16 = vpop.permute.xlu1 %1348 }
 0x39a   :  { %1365 = vst.msk [vmem:[#allocation3 + $0xf0] sm:$0xff] %vm1035_vm8, %v1349_v16 }
 0x39b   :  { %v1395_v17 = vpop.permute.xlu0 %1394  ;;  %v1551_v6 = vld [vmem:[#allocation3 + $0xc8] sm:$0xff] }
 0x39c   :  { %1412 = vst.msk [vmem:[#allocation3 + $0xd0] sm:$0xff] %vm1084_vm9, %v1395_v17 }
 0x39d   :  { %v1397_v2 = vpop.permute.xlu1 %1396  ;;  %v1555_v22 = vld [vmem:[#allocation3 + $0xe8] sm:$0xff] }
 0x39e   :  { %1413 = vst.msk [vmem:[#allocation3 + $0xf0] sm:$0xff] %vm1084_vm9, %v1397_v2  ;;  %v1571_v9 = vpack.c.bf16 %v1555_v22, %v1551_v6  ;;  %v3395_v2 = vld [vmem:[%s4698_s6] sm:$0xff]   ;;  %vm2583_vm9 = vcmask 976672  }
 0x39f   :  { %v1507_v34 = vpop.permute.xlu0 %1506 }
 0x3a0   :  { %1524 = vst.msk [vmem:[#allocation3 + $0xd8] sm:$0xff] %vm1035_vm8, %v1507_v34  ;;  %1871 = vmatprep.mubr.bf16.mxu1 %v1571_v9 }
 0x3a1   :  { %1872 = vmatmul.mubr.bf16.gmra.mrb[36].mxu1 %v1570_v21  ;;  %v1509_v36 = vpop.permute.xlu1 %1508 }
 0x3a2   :  { %1525 = vst.msk [vmem:[#allocation3 + $0xf8] sm:$0xff] %vm1035_vm8, %v1509_v36  ;;  %3201 = vmatprep.mubr.msk.bf16.mxu1 %vm949_vm6, %v3395_v2  ;;  %vm2576_vm8 = vcmask 812672  }
 0x3a3   :  { %v1443_v40 = vpop.permute.xlu0 %1442 }
 0x3a4   :  { %1460 = vst.msk [vmem:[#allocation3 + $0xd0] sm:$0xff] %vm1133_vm10, %v1443_v40 }
 0x3a5   :  { %v1445_v41 = vpop.permute.xlu1 %1444 }
 0x3a6   :  { %1461 = vst.msk [vmem:[#allocation3 + $0xf0] sm:$0xff] %vm1133_vm10, %v1445_v41  ;;  %vm2652_vm10 = vcmask 982016  }
 0x3a7   :  { %v1553_v26 = vld [vmem:[#allocation3 + $0xd8] sm:$0xff] }
 0x3a9   :  { %v1557_v27 = vld [vmem:[#allocation3 + $0xf8] sm:$0xff] }
 0x3aa   :  { %v1573_v42 = vpack.c.bf16 %v1557_v27, %v1553_v26 }
 0x3ab   :  { %v1552_v46 = vld [vmem:[#allocation3 + $0xd0] sm:$0xff] }
 0x3ac   :  { %3006 = vmatprep.mubr.msk.bf16.mxu0 %vm949_vm6, %v1573_v42 }
 0x3ad   :  { %v1556_v28 = vld [vmem:[#allocation3 + $0xf0] sm:$0xff] }
 0x3ae   :  { %v1572_v48 = vpack.c.bf16 %v1556_v28, %v1552_v46 }
 0x3b0   :  { %1937 = vmatmul.mubr.bf16.gmra.mrb[60].mxu0 %v1572_v48 }
 0x3fc   :  { %v3087_v29 = vpop.f32.mrb[24].mxu1 }
 0x3fd   :  { %v3088_v50 = vpop.f32.mrb[25].mxu1 }
 0x3fe   :  { %v3089_v52 = vadd.f32 %v3088_v50, %v3087_v29  ;;  %v3090_v53 = vpop.f32.mrb[26].mxu1 }
 0x3ff   :  { %v3091_v31 = vpop.f32.mrb[27].mxu1 }
 0x400   :  { %v3092_v37 = vadd.f32 %v3091_v31, %v3090_v53  ;;  %v1850_v38 = vadd.f32 %v3089_v52, %v4441_v54 }
 0x402   :  { %v1853_v60 = vadd.f32 %v3092_v37, %v4441_v54 }
 0x418   :  { %v1914_v55 = vpop.f32.mrb[48].mxu0 }
 0x419   :  { %v4444_v56 = vadd.f32 %v1914_v55, %v1850_v38  ;;  %v1916_v43 = vpop.f32.mrb[49].mxu0 }
 0x41a   :  { %v1917_v61 = vpop.f32.mrb[50].mxu0 }
 0x41b   :  { %v1945_v44 = vmax.f32 %v4444_v56, 0.0  ;;  %v4448_v62 = vadd.f32 %v1917_v61, %v1853_v60  ;;  %v1919_v45 = vpop.f32.mrb[51].mxu0 }
 0x41d   :  { %v1946_v4 = vmax.f32 %v4448_v62, 0.0  ;;  %v1956_v8 = vsel %vm1955_vm11, %v1945_v44, 0.0 }
 0x41f   :  { %v1957_v10 = vsel %vm1955_vm11, %v1946_v4, 0.0 }
 0x420   :  { %v1958_v47 = vadd.f32 %v1957_v10, %v1956_v8 }
 0x424   :  { %v3093_v49 = vpop.f32.mrb[28].mxu1 }
 0x425   :  { %v3094_v57 = vpop.f32.mrb[29].mxu1 }
 0x426   :  { %v3095_v11 = vadd.f32 %v3094_v57, %v3093_v49  ;;  %v3096_v18 = vpop.f32.mrb[30].mxu1 }
 0x427   :  { %v3097_v63 = vpop.f32.mrb[31].mxu1 }
 0x428   :  { %v3098_v51 = vadd.f32 %v3097_v63, %v3096_v18  ;;  %v1858_v58 = vadd.f32 %v3095_v11, %v4441_v54 }
 0x42a   :  { %v1861_v7 = vadd.f32 %v3098_v51, %v4441_v54 }
 0x440   :  { %v1922_v1 = vpop.f32.mrb[52].mxu0 }
 0x441   :  { %v4458_v3 = vadd.f32 %v1922_v1, %v1858_v58  ;;  %v1924_v5 = vpop.f32.mrb[53].mxu0 }
 0x442   :  { %v1925_v13 = vpop.f32.mrb[54].mxu0 }
 0x443   :  { %v1947_v14 = vmax.f32 %v4458_v3, 0.0  ;;  %v1926_v23 = vadd.f32 %v1925_v13, %v1861_v7  ;;  %v1927_v24 = vpop.f32.mrb[55].mxu0 }
 0x445   :  { %v1959_v30 = vsel %vm1955_vm11, %v1947_v14, 0.0  ;;  %v1948_v33 = vmax.f32 %v1926_v23, 0.0 }
 0x446   :  { %v1960_v35 = vadd.f32 %v1959_v30, %v1958_v47 }
 0x447   :  { %v1961_v39 = vsel %vm1955_vm11, %v1948_v33, 0.0 }
 0x448   :  { %v1962_v59 = vadd.f32 %v1961_v39, %v1960_v35 }
 0x44c   :  { %v3099_v12 = vpop.f32.mrb[32].mxu1 }
 0x44d   :  { %v3100_v15 = vpop.f32.mrb[33].mxu1 }
 0x44e   :  { %v3101_v19 = vadd.f32 %v3100_v15, %v3099_v12  ;;  %v3102_v16 = vpop.f32.mrb[34].mxu1 }
 0x44f   :  { %v3103_v17 = vpop.f32.mrb[35].mxu1 }
 0x450   :  { %v3104_v20 = vadd.f32 %v3103_v17, %v3102_v16  ;;  %v1866_v6 = vadd.f32 %v3101_v19, %v4441_v54 }
 0x452   :  { %v1869_v34 = vadd.f32 %v3104_v20, %v4441_v54 }
 0x468   :  { %v1930_v22 = vpop.f32.mrb[56].mxu0 }
 0x469   :  { %v1931_v9 = vadd.f32 %v1930_v22, %v1866_v6  ;;  %v1932_v32 = vpop.f32.mrb[57].mxu0 }
 0x46a   :  { %v1933_v21 = vpop.f32.mrb[58].mxu0 }
 0x46b   :  { %v1949_v36 = vmax.f32 %v1931_v9, 0.0  ;;  %v1934_v40 = vadd.f32 %v1933_v21, %v1869_v34  ;;  %v1935_v41 = vpop.f32.mrb[59].mxu0 }
 0x46d   :  { %v1963_v26 = vsel %vm1955_vm11, %v1949_v36, 0.0  ;;  %v1950_v27 = vmax.f32 %v1934_v40, 0.0 }
 0x46e   :  { %v1964_v42 = vadd.f32 %v1963_v26, %v1962_v59 }
 0x46f   :  { %v1965_v46 = vsel %vm1955_vm11, %v1950_v27, 0.0 }
 0x470   :  { %v1966_v28 = vadd.f32 %v1965_v46, %v1964_v42 }
 0x474   :  { %v3105_v48 = vpop.f32.mrb[36].mxu1 }
 0x475   :  { %v3106_v29 = vpop.f32.mrb[37].mxu1 }
 0x476   :  { %v3107_v50 = vadd.f32 %v3106_v29, %v3105_v48  ;;  %v3108_v52 = vpop.f32.mrb[38].mxu1 }
 0x477   :  { %v3109_v53 = vpop.f32.mrb[39].mxu1 }
 0x478   :  { %v3110_v31 = vadd.f32 %v3109_v53, %v3108_v52  ;;  %v1874_v37 = vadd.f32 %v3107_v50, %v4441_v54  ;;  %v1953_v53 = vld [vmem:[%s4705_s13 + $0x4] sm:$0x1] }
 0x47a   :  { %v1877_v60 = vadd.f32 %v3110_v31, %v4441_v54 }
 0x483   :  { %v1938_v38 = vpop.f32.mrb[60].mxu0 }
 0x484   :  { %v1939_v55 = vadd.f32 %v1938_v38, %v1874_v37  ;;  %v1940_v43 = vpop.f32.mrb[61].mxu0 }
 0x485   :  { %v1941_v61 = vpop.f32.mrb[62].mxu0 }
 0x486   :  { %v1951_v45 = vmax.f32 %v1939_v55, 0.0  ;;  %v1942_v8 = vadd.f32 %v1941_v61, %v1877_v60  ;;  %v1943_v10 = vpop.f32.mrb[63].mxu0  ;;  %v3007_v55 = vld [vmem:[%s4705_s13 + $0x5] ss:$0 sm:$0xff] }
 0x488   :  { %v1967_v47 = vsel %vm1955_vm11, %v1951_v45, 0.0  ;;  %v1952_v49 = vmax.f32 %v1942_v8, 0.0 }
 0x489   :  { %v1968_v57 = vadd.f32 %v1967_v47, %v1966_v28 }
 0x48a   :  { %v1969_v11 = vsel %vm1955_vm11, %v1952_v49, 0.0 }
 0x48b   :  { %v1970_v18 = vadd.f32 %v1969_v11, %v1968_v57 }
 0x48d   :  { %v1971_v63 = vrot.slane %v1970_v18, 4 }
 0x48f   :  { %v1972_v51 = vadd.f32 %v1971_v63, %v1970_v18 }
 0x491   :  { %v1973_v58 = vrot.slane %v1972_v51, 2 }
 0x493   :  { %v1974_v1 = vadd.f32 %v1973_v58, %v1972_v51 }
 0x495   :  { %v1975_v3 = vrot.slane %v1974_v1, 1 }
 0x497   :  { %v1976_v5 = vadd.f32 %v1975_v3, %v1974_v1 }
 0x499   :  { %v1977_v7 = vmul.f32 0.015625, %v1976_v5 }
 0x49b   :  { %v1978_v54 = vsub.f32 %v1945_v44, %v1977_v7  ;;  %v1979_v13 = vsub.f32 %v1946_v4, %v1977_v7  ;;  %v1980_v23 = vsub.f32 %v1947_v14, %v1977_v7  ;;  %v1981_v24 = vsub.f32 %v1948_v33, %v1977_v7 }
 0x49c   :  { %v1982_v30 = vsub.f32 %v1949_v36, %v1977_v7  ;;  %v1983_v35 = vsub.f32 %v1950_v27, %v1977_v7  ;;  %v1984_v39 = vsub.f32 %v1951_v45, %v1977_v7  ;;  %v1985_v59 = vsub.f32 %v1952_v49, %v1977_v7 }
 0x49d   :  { %v1986_v12 = vmul.f32 %v1978_v54, %v1978_v54  ;;  %v1987_v15 = vmul.f32 %v1979_v13, %v1979_v13  ;;  %v1988_v19 = vmul.f32 %v1980_v23, %v1980_v23  ;;  %v1989_v16 = vmul.f32 %v1981_v24, %v1981_v24 }
 0x49e   :  { %v1990_v56 = vmul.f32 %v1982_v30, %v1982_v30  ;;  %v1991_v4 = vmul.f32 %v1983_v35, %v1983_v35  ;;  %v1992_v6 = vmul.f32 %v1984_v39, %v1984_v39  ;;  %v1993_v32 = vmul.f32 %v1985_v59, %v1985_v59 }
 0x49f   :  { %v1994_v17 = vsel %vm1955_vm11, %v1986_v12, 0.0  ;;  %v1995_v20 = vsel %vm1955_vm11, %v1987_v15, 0.0  ;;  %v1997_v44 = vsel %vm1955_vm11, %v1988_v19, 0.0  ;;  %v1999_v14 = vsel %vm1955_vm11, %v1989_v16, 0.0 }
 0x4a0   :  { %v1996_v2 = vadd.f32 %v1995_v20, %v1994_v17  ;;  %v2001_v22 = vsel %vm1955_vm11, %v1990_v56, 0.0  ;;  %v2003_v34 = vsel %vm1955_vm11, %v1991_v4, 0.0  ;;  %v2005_v36 = vsel %vm1955_vm11, %v1992_v6, 0.0 }
 0x4a1   :  { %v2007_v41 = vsel %vm1955_vm11, %v1993_v32, 0.0 }
 0x4a2   :  { %v1998_v62 = vadd.f32 %v1997_v44, %v1996_v2 }
 0x4a4   :  { %v2000_v33 = vadd.f32 %v1999_v14, %v1998_v62  ;;  %v3399_v62 = vld [vmem:[%s4695_s3] sm:$0xff]  }
 0x4a5   :  { %3217 = vmatprep.subr.bf16.mxu0 %v3399_v62 }
 0x4a6   :  { %v2002_v9 = vadd.f32 %v2001_v22, %v2000_v33  ;;  %3218 = vmatpush3.bf16.msra.mxu0 %v3399_v62 }
 0x4a8   :  { %v2004_v21 = vadd.f32 %v2003_v34, %v2002_v9  ;;  %v3400_v9 = vld [vmem:[%s4695_s3 + $0x8] sm:$0xff]  }
 0x4a9   :  { %3219 = vmatprep.subr.bf16.mxu0 %v3400_v9 }
 0x4aa   :  { %v2006_v40 = vadd.f32 %v2005_v36, %v2004_v21  ;;  %v3401_v21 = vld [vmem:[%s4695_s3 + $0x10] sm:$0xff]   ;;  %3220 = vmatpush3.bf16.msra.mxu0 %v3400_v9 }
 0x4ab   :  { %3221 = vmatprep.subr.bf16.mxu0 %v3401_v21 }
 0x4ac   :  { %v2008_v26 = vadd.f32 %v2007_v41, %v2006_v40  ;;  %v3402_v41 = vld [vmem:[%s4695_s3 + $0x18] sm:$0xff]  }
 0x4ae   :  { %v2009_v27 = vrot.slane %v2008_v26, 4  ;;  %3222 = vmatpush3.bf16.msra.mxu0 %v3401_v21 }
 0x4af   :  { %3223 = vmatprep.subr.bf16.mxu0 %v3402_v41 }
 0x4b0   :  { %v2010_v42 = vadd.f32 %v2009_v27, %v2008_v26 }
 0x4b2   :  { %v2011_v46 = vrot.slane %v2010_v42, 2  ;;  %3224 = vmatpush3.bf16.msra.mxu0 %v3402_v41 }
 0x4b4   :  { %v2012_v28 = vadd.f32 %v2011_v46, %v2010_v42  ;;  %v3403_v42 = vld [vmem:[%s4695_s3 + $0x20] sm:$0xff]   ;;  %s3464_s3 = smov 20  }
 0x4b5   :  { %3225 = vmatprep.subr.bf16.mxu0 %v3403_v42 }
 0x4b6   :  { %v2013_v48 = vrot.slane %v2012_v28, 1  ;;  %3226 = vmatpush3.bf16.msra.mxu0 %v3403_v42  ;;  %v2386_v42 = vld [vmem:[%s4705_s13 + $0x7] sm:$0x1] }
 0x4b7   :  { %3231 = vmatprep.subr.bf16.mxu0 %v3457_v25 }
 0x4b8   :  { %v2014_v29 = vadd.f32 %v2013_v48, %v2012_v28 }
 0x4ba   :  { %v2015_v50 = vmul.f32 0.015625, %v2014_v29 }
 0x4bc   :  { %v2016_v52 = vadd.f32 1e-05, %v2015_v50 }
 0x4be   :  { %3428 = vrsqrt.f32 %v2016_v52 }
 0x4c8   :  { %v3429_v31 = vpop.eup %3428 }
 0x4c9   :  { %v2018_v37 = vmul.f32 %v3429_v31, %v1953_v53 }
 0x4cb   :  { %v2022_v38 = vrot.slane %v2018_v37, %v3902_v0 }
 0x4cd   :  { %v2030_v43 = vmul.f32 %v2022_v38, %v1985_v59  ;;  %v2023_v60 = vmul.f32 %v2022_v38, %v1978_v54  ;;  %v2024_v61 = vmul.f32 %v2022_v38, %v1979_v13  ;;  %v2025_v45 = vmul.f32 %v2022_v38, %v1980_v23  ;;  %v3396_v54 = vld [vmem:[%s4698_s6 + $0x8] sm:$0xff]   ;;  %v3397_v13 = vld [vmem:[%s4699_s7] sm:$0xff]  }
 0x4ce   :  { %v2026_v8 = vmul.f32 %v2022_v38, %v1981_v24  ;;  %v2027_v10 = vmul.f32 %v2022_v38, %v1982_v30  ;;  %v2028_v47 = vmul.f32 %v2022_v38, %v1983_v35  ;;  %v2029_v49 = vmul.f32 %v2022_v38, %v1984_v39  ;;  %v3398_v23 = vld [vmem:[%s4699_s7 + $0x8] sm:$0xff]  }
 0x4cf   :  { %v2042_v57 = vadd.f32 %v3007_v55, %v2030_v43  ;;  %v2035_v11 = vadd.f32 %v3007_v55, %v2023_v60  ;;  %v2036_v18 = vadd.f32 %v3007_v55, %v2024_v61  ;;  %v2037_v63 = vadd.f32 %v3007_v55, %v2025_v45 }
 0x4d0   :  { %v2038_v51 = vadd.f32 %v3007_v55, %v2026_v8  ;;  %v2039_v58 = vadd.f32 %v3007_v55, %v2027_v10  ;;  %v2040_v1 = vadd.f32 %v3007_v55, %v2028_v47  ;;  %v2041_v3 = vadd.f32 %v3007_v55, %v2029_v49 }
 0x4d1   :  { %v2043_v5 = vpack.c.bf16 %v2036_v18, %v2035_v11 }
 0x4d2   :  { %v2044_v7 = vpack.c.bf16 %v2038_v51, %v2037_v63  ;;  %v2045_v12 = vpack.c.bf16 %v2040_v1, %v2039_v58  ;;  %v2046_v15 = vpack.c.bf16 %v2042_v57, %v2041_v3  ;;  %v3016_v57 = vld [vmem:[%s4705_s13 + $0x6] ss:$0 sm:$0xff] }
 0x4d3   :  { %3193 = vmatprep.subr.bf16.mxu1 %v2043_v5 }
 0x4d4   :  { %3194 = vmatpush3.bf16.msra.mxu1 %v2043_v5 }
 0x4d5   :  { %3195 = vmatprep.subr.bf16.mxu1 %v2044_v7 }
 0x4d8   :  { %3196 = vmatpush3.bf16.msra.mxu1 %v2044_v7 }
 0x4d9   :  { %3197 = vmatprep.subr.bf16.mxu1 %v2045_v12 }
 0x4dc   :  { %3198 = vmatpush3.bf16.msra.mxu1 %v2045_v12 }
 0x4dd   :  { %3199 = vmatprep.subr.bf16.mxu1 %v2046_v15 }
 0x4e0   :  { %3200 = vmatpush3.bf16.msra.mxu1 %v2046_v15 }
 0x4e1   :  { %3205 = vmatprep.subr.bf16.mxu1 %v2043_v5 }
 0x4e3   :  { %3202 = vmatmul.mubr.msk.bf16.vlgmr.msra.gmra.mrb[40].mxu1 %vm949_vm6, %v3396_v54 }
 0x4e4   :  { %3206 = vmatpush3.bf16.msra.mxu1 %v2043_v5  ;;  %3213 = vmatprep.mubr.msk.bf16.mxu1 %vm949_vm6, %v3397_v13 }
 0x4e5   :  { %3207 = vmatprep.subr.bf16.mxu1 %v2044_v7 }
 0x4e8   :  { %3208 = vmatpush3.bf16.msra.mxu1 %v2044_v7 }
 0x4e9   :  { %3209 = vmatprep.subr.bf16.mxu1 %v2045_v12 }
 0x4ec   :  { %3210 = vmatpush3.bf16.msra.mxu1 %v2045_v12 }
 0x4ed   :  { %3211 = vmatprep.subr.bf16.mxu1 %v2046_v15 }
 0x4f0   :  { %3212 = vmatpush3.bf16.msra.mxu1 %v2046_v15 }
 0x4f1   :  { %3247 = vmatprep.subr.bf16.mxu1 %v3457_v25 }
 0x4f3   :  { %3214 = vmatmul.mubr.msk.bf16.vlgmr.msra.gmra.mrb[44].mxu1 %vm949_vm6, %v3398_v23 }
 0x4f4   :  { %3263 = vmatprep.mubr.msk.bf16.mxu1 %vm3463_vm1, %v3457_v25 }
 0x5b6   :  { %v3203_v24 = vpop.f32.mrb[40].mxu1 }
 0x5b7   :  { %v2101_v30 = vpop.f32.mrb[41].mxu1 }
 0x5b8   :  { %v3204_v35 = vpop.f32.mrb[42].mxu1 }
 0x5b9   :  { %v2104_v39 = vpop.f32.mrb[43].mxu1 }
 0x5c6   :  { %v3215_v59 = vpop.f32.mrb[44].mxu1 }
 0x5c7   :  { %v2187_v19 = vmax.f32 %v3203_v24, %v3215_v59  ;;  %v2170_v16 = vpop.f32.mrb[45].mxu1 }
 0x5c8   :  { %v2185_v17 = vmax.f32 %v2101_v30, %v2170_v16  ;;  %v3216_v20 = vpop.f32.mrb[46].mxu1 }
 0x5c9   :  { %2191 = vst.msk [vmem:[#allocation4 + $0x10] sm:$0xff] %vm1955_vm11, %v2187_v19  ;;  %v2188_v2 = vmax.f32 %v3204_v35, %v3216_v20  ;;  %v2173_v56 = vpop.f32.mrb[47].mxu1 }
 0x5ca   :  { %2189 = vst.msk [vmem:[#allocation4] sm:$0xff] %vm1955_vm11, %v2185_v17  ;;  %v2186_v44 = vmax.f32 %v2104_v39, %v2173_v56 }
 0x5cb   :  { %2192 = vst.msk [vmem:[#allocation4 + $0x18] sm:$0xff] %vm1955_vm11, %v2188_v2 }
 0x5cc   :  { %2190 = vst.msk [vmem:[#allocation4 + $0x8] sm:$0xff] %vm1955_vm11, %v2186_v44 }
 0x5d0   :  { %v2261_v4 = vld [vmem:[#allocation4 + $0x10] sm:$0xff] }
 0x5d1   :  { %2202 = vst.msk [vmem:[#allocation5 + $0x10] sm:$0xff] %vm1955_vm11, %v2261_v4  ;;  %v2197_v14 = vld [vmem:[#allocation4] sm:$0xff] }
 0x5d2   :  { %v2224_v33 = vld [vmem:[#allocation4 + $0x14] sm:$0xff]  ;;  %2200 = vst.msk [vmem:[#allocation5] sm:$0xff] %vm1955_vm11, %v2197_v14 }
 0x5d3   :  { %v2205_v6 = vld [vmem:[#allocation4 + $0x12] sm:$0xff]  ;;  %2232 = vrot.lane.b32.xlu1 %v2224_v33, %s3459_s23  ;;  %v2260_v22 = vld [vmem:[#allocation4 + $0x8] sm:$0xff] }
 0x5d4   :  { %2213 = vrot.lane.b32.xlu0 %v2205_v6, %s3461_s1  ;;  %2201 = vst.msk [vmem:[#allocation5 + $0x8] sm:$0xff] %vm1955_vm11, %v2260_v22  ;;  %v2243_v32 = vld [vmem:[#allocation4 + $0x16] sm:$0xff]  ;;  %v2204_v34 = vld [vmem:[#allocation4 + $0xa] sm:$0xff]  ;;  %v2203_v40 = vld [vmem:[#allocation4 + $0x2] sm:$0xff] }
 0x5d5   :  { %v2222_v36 = vld [vmem:[#allocation4 + $0x4] sm:$0xff]  ;;  %v2242_v26 = vld [vmem:[#allocation4 + $0xe] sm:$0xff]  ;;  %v2262_v28 = vld [vmem:[#allocation4 + $0x18] sm:$0xff] }
 0x5d6   :  { %v2223_v27 = vld [vmem:[#allocation4 + $0xc] sm:$0xff] }
 0x5d7   :  { %2211 = vrot.lane.b32.xlu1 %v2204_v34, %s3461_s1  ;;  %v2241_v46 = vld [vmem:[#allocation4 + $0x6] sm:$0xff] }
 0x5d8   :  { %2251 = vrot.lane.b32.xlu0 %v2243_v32, %s3462_s30 }
 0x5db   :  { %2228 = vrot.lane.b32.xlu1 %v2222_v36, %s3459_s23 }
 0x5dc   :  { %2209 = vrot.lane.b32.xlu0 %v2203_v40, %s3461_s1 }
 0x5df   :  { %2249 = vrot.lane.b32.xlu1 %v2242_v26, %s3462_s30 }
 0x5e0   :  { %2230 = vrot.lane.b32.xlu0 %v2223_v27, %s3459_s23  ;;  %s3467_s23 = smov 80  }
 0x5e3   :  { %2266 = vrot.lane.b32.xlu1 %v2260_v22, %s3458_s22 }
 0x5e4   :  { %2247 = vrot.lane.b32.xlu0 %v2241_v46, %s3462_s30 }
 0x5e7   :  { %2270 = vrot.lane.b32.xlu1 %v2262_v28, %s3458_s22 }
 0x5e8   :  { %2268 = vrot.lane.b32.xlu0 %v2261_v4, %s3458_s22  ;;  %s3465_s22 = smov 40  }
 0x645   :  { %v2233_v48 = vpop.permute.xlu1 %2232 }
 0x646   :  { %v2214_v29 = vpop.permute.xlu0 %2213 }
 0x647   :  { %2221 = vst.msk [vmem:[#allocation5 + $0x10] sm:$0xff] %vm2218_vm13, %v2214_v29  ;;  %v3024_v29 = vld [vmem:[%s4705_s13 + $0x8] ss:$0 sm:$0xff] }
 0x648   :  { %2240 = vst.msk [vmem:[#allocation5 + $0x10] sm:$0xff] %vm2237_vm14, %v2233_v48 }
 0x649   :  { %v2212_v52 = vpop.permute.xlu1 %2211 }
 0x64a   :  { %v2252_v50 = vpop.permute.xlu0 %2251  ;;  %2220 = vst.msk [vmem:[#allocation5 + $0x8] sm:$0xff] %vm2218_vm13, %v2212_v52 }
 0x64b   :  { %2259 = vst.msk [vmem:[#allocation5 + $0x10] sm:$0xff] %vm2256_vm15, %v2252_v50 }
 0x64d   :  { %v2229_v53 = vpop.permute.xlu1 %2228 }
 0x64e   :  { %v2210_v31 = vpop.permute.xlu0 %2209 }
 0x64f   :  { %2219 = vst.msk [vmem:[#allocation5] sm:$0xff] %vm2218_vm13, %v2210_v31 }
 0x650   :  { %2238 = vst.msk [vmem:[#allocation5] sm:$0xff] %vm2237_vm14, %v2229_v53 }
 0x651   :  { %v2250_v37 = vpop.permute.xlu1 %2249 }
 0x652   :  { %v2231_v38 = vpop.permute.xlu0 %2230 }
 0x653   :  { %2239 = vst.msk [vmem:[#allocation5 + $0x8] sm:$0xff] %vm2237_vm14, %v2231_v38 }
 0x654   :  { %2258 = vst.msk [vmem:[#allocation5 + $0x8] sm:$0xff] %vm2256_vm15, %v2250_v37 }
 0x655   :  { %v2267_v55 = vpop.permute.xlu1 %2266 }
 0x656   :  { %v2248_v43 = vpop.permute.xlu0 %2247 }
 0x657   :  { %2257 = vst.msk [vmem:[#allocation5] sm:$0xff] %vm2256_vm15, %v2248_v43 }
 0x658   :  { %2276 = vst.msk [vmem:[#allocation5] sm:$0xff] %vm2275_vm0, %v2267_v55 }
 0x659   :  { %v2271_v60 = vpop.permute.xlu1 %2270 }
 0x65a   :  { %v2269_v61 = vpop.permute.xlu0 %2268  ;;  %2278 = vst.msk [vmem:[#allocation5 + $0x10] sm:$0xff] %vm2275_vm0, %v2271_v60 }
 0x65b   :  { %2277 = vst.msk [vmem:[#allocation5 + $0x8] sm:$0xff] %vm2275_vm0, %v2269_v61  ;;  %v3405_v61 = vld [vmem:[%s4701_s9] sm:$0x3f]  }
 0x65f   :  { %v2279_v45 = vld [vmem:[#allocation5] sm:$0xff] }
 0x661   :  { %v2281_v10 = vld [vmem:[#allocation5 + $0x10] sm:$0xff] }
 0x662   :  { %v2280_v8 = vld [vmem:[#allocation5 + $0x8] sm:$0xff]  ;;  %v2283_v49 = vpack.c.bf16 %v2281_v10, %v2281_v10  ;;  %v3408_v10 = vld [vmem:[%s4702_s10 + $0x10] sm:$0xff]  }
 0x663   :  { %v2282_v47 = vpack.c.bf16 %v2280_v8, %v2279_v45  ;;  %v3406_v45 = vld [vmem:[%s4702_s10] sm:$0xff]   ;;  %v3407_v8 = vld [vmem:[%s4702_s10 + $0x8] sm:$0xff]  }
 0x664   :  { %3248 = vmatpush3.bf16.msra.mxu1 %v3406_v45 }
 0x665   :  { %3227 = vmatprep.mubr.msk.bf16.mxu0 %vm2193_vm12, %v2282_v47  ;;  %3249 = vmatprep.subr.bf16.mxu1 %v3457_v25  ;;  %v3409_v47 = vld [vmem:[%s4702_s10 + $0x18] sm:$0xff]  }
 0x666   :  { %3228 = vmatmul.mubr.msk.bf16.vlgmr.msra.gmra.mrb[64].mxu0 %vm2193_vm12, %v2283_v49 }
 0x667   :  { %3235 = vmatprep.mubr.msk.bf16.mxu0 %vm3463_vm1, %v3457_v25 }
 0x668   :  { %3250 = vmatpush3.bf16.msra.mxu1 %v3407_v8 }
 0x669   :  { %3251 = vmatprep.subr.bf16.mxu1 %v3457_v25 }
 0x66c   :  { %3252 = vmatpush3.bf16.msra.mxu1 %v3408_v10 }
 0x66d   :  { %3253 = vmatprep.subr.bf16.mxu1 %v3457_v25 }
 0x670   :  { %3254 = vmatpush3.bf16.msra.mxu1 %v3409_v47 }
 0x671   :  { %3255 = vmatprep.subr.bf16.mxu1 %v3457_v25 }
 0x739   :  { %v3229_v11 = vpop.f32.mrb[64].mxu0 }
 0x73a   :  { %v2369_v18 = vpop.f32.mrb[65].mxu0  ;;  %v2378_v63 = vadd.f32 %v3229_v11, %v3016_v57 }
 0x73b   :  { %v2370_v51 = vadd.f32 %v3016_v57, %v2369_v18  ;;  %v3230_v58 = vpop.f32.mrb[66].mxu0 }
 0x73c   :  { %v2372_v1 = vpop.f32.mrb[67].mxu0  ;;  %v2385_v7 = vmax.f32 %v2378_v63, 0.0  ;;  %v3410_v63 = vld [vmem:[%s4702_s10 + $0x20] sm:$0xff]  }
 0x73d   :  { %v2383_v3 = vmax.f32 %v2370_v51, 0.0  ;;  %v2373_v5 = vadd.f32 %v3016_v57, %v2372_v1  ;;  %3256 = vmatpush3.bf16.msra.mxu1 %v3410_v63 }
 0x73e   :  { %v2391_v23 = vsel %vm365_vm2, %v2385_v7, 0.0  ;;  %3257 = vmatprep.subr.bf16.mxu1 %v3457_v25 }
 0x73f   :  { %v2384_v12 = vmax.f32 %v2373_v5, 0.0  ;;  %v2388_v15 = vsel %vm365_vm2, %v2383_v3, 0.0 }
 0x741   :  { %v2389_v54 = vsel %vm365_vm2, %v2384_v12, 0.0 }
 0x742   :  { %v2390_v13 = vadd.f32 %v2389_v54, %v2388_v15  ;;  %v3412_v15 = vld [vmem:[%s4702_s10 + $0x30] sm:$0xff]   ;;  %v3413_v54 = vld [vmem:[%s4702_s10 + $0x38] ss:$0 sps:$4 sm:$0xff]  }
 0x744   :  { %v2392_v24 = vadd.f32 %v2391_v23, %v2390_v13 }
 0x746   :  { %v2393_v30 = vrot.slane %v2392_v24, 4 }
 0x748   :  { %v2394_v35 = vadd.f32 %v2393_v30, %v2392_v24  ;;  %v2657_v24 = vsel %vm2448_vm4, %v3413_v54, 0 }
 0x74a   :  { %v2395_v39 = vrot.slane %v2394_v35, 2 }
 0x74c   :  { %v2396_v59 = vadd.f32 %v2395_v39, %v2394_v35 }
 0x74e   :  { %v2397_v19 = vrot.slane %v2396_v59, 1 }
 0x750   :  { %v2398_v16 = vadd.f32 %v2397_v19, %v2396_v59  ;;  %v3414_v59 = vld [vmem:[%s4703_s11] sm:$0xff]  }
 0x752   :  { %v2399_v17 = vmul.f32 0.041666668, %v2398_v16  ;;  %v3415_v16 = vld [vmem:[%s4703_s11 + $0x8] sm:$0xff]  }
 0x754   :  { %v2400_v20 = vsub.f32 %v2383_v3, %v2399_v17  ;;  %v2401_v2 = vsub.f32 %v2384_v12, %v2399_v17  ;;  %v2402_v56 = vsub.f32 %v2385_v7, %v2399_v17  ;;  %v3411_v12 = vld [vmem:[%s4702_s10 + $0x28] sm:$0xff]   ;;  %s3466_s10 = smov 60   ;;  %v3416_v17 = vld [vmem:[%s4703_s11 + $0x10] sm:$0xff]  }
 0x755   :  { %3258 = vmatpush3.bf16.msra.mxu1 %v3411_v12 }
 0x756   :  { %v2403_v44 = vmul.f32 %v2400_v20, %v2400_v20  ;;  %v2404_v62 = vmul.f32 %v2401_v2, %v2401_v2  ;;  %v2405_v4 = vmul.f32 %v2402_v56, %v2402_v56  ;;  %3259 = vmatprep.subr.bf16.mxu1 %v3457_v25 }
 0x758   :  { %v2406_v14 = vsel %vm365_vm2, %v2403_v44, 0.0  ;;  %v2407_v33 = vsel %vm365_vm2, %v2404_v62, 0.0  ;;  %v2409_v22 = vsel %vm365_vm2, %v2405_v4, 0.0 }
 0x759   :  { %v2408_v6 = vadd.f32 %v2407_v33, %v2406_v14  ;;  %3260 = vmatpush3.bf16.msra.mxu1 %v3412_v15 }
 0x75a   :  { %3261 = vmatprep.subr.bf16.mxu1 %v3457_v25 }
 0x75b   :  { %v2410_v9 = vadd.f32 %v2409_v22, %v2408_v6 }
 0x75d   :  { %v2411_v32 = vrot.slane %v2410_v9, 4  ;;  %3262 = vmatpush3.bf16.msra.mxu1 %v2657_v24 }
 0x75e   :  { %3287 = vmatprep.subr.bf16.mxu1 %v3457_v25 }
 0x75f   :  { %v2412_v34 = vadd.f32 %v2411_v32, %v2410_v9  ;;  %v3420_v9 = vld [vmem:[%s4703_s11 + $0x30] sm:$0xff]   ;;  %v3421_v32 = vld [vmem:[%s4703_s11 + $0x38] sm:$0xff]  }
 0x761   :  { %v2413_v21 = vrot.slane %v2412_v34, 2 }
 0x763   :  { %v2414_v36 = vadd.f32 %v2413_v21, %v2412_v34  ;;  %v3422_v34 = vld [vmem:[%s4704_s12] sm:$0xff]   ;;  %v3423_v21 = vld [vmem:[%s4704_s12 + $0x8] sm:$0xff]  }
 0x765   :  { %v2415_v40 = vrot.slane %v2414_v36, 1 }
 0x767   :  { %v2416_v41 = vadd.f32 %v2415_v40, %v2414_v36  ;;  %v3029_v36 = vld [vmem:[%s4705_s13 + $0x9] ss:$0 sm:$0xff] }
 0x769   :  { %v2417_v26 = vmul.f32 0.041666668, %v2416_v41 }
 0x76b   :  { %v2418_v27 = vadd.f32 1e-05, %v2417_v26 }
 0x76d   :  { %3430 = vrsqrt.f32 %v2418_v27 }
 0x777   :  { %v3431_v46 = vpop.eup %3430 }
 0x778   :  { %v2420_v28 = vmul.f32 %v3431_v46, %v2386_v42 }
 0x77a   :  { %v2424_v48 = vrot.slane %v2420_v28, %v3902_v0  ;;  %v3404_v0 = vld [vmem:[%s4700_s8] sm:$0x3f]  }
 0x77c   :  { %v2426_v50 = vmul.f32 %v2424_v48, %v2401_v2  ;;  %v2425_v52 = vmul.f32 %v2424_v48, %v2400_v20  ;;  %v2427_v53 = vmul.f32 %v2424_v48, %v2402_v56  ;;  %v3417_v20 = vld [vmem:[%s4703_s11 + $0x18] sm:$0xff]   ;;  %v3418_v2 = vld [vmem:[%s4703_s11 + $0x20] sm:$0xff]   ;;  %v3419_v56 = vld [vmem:[%s4703_s11 + $0x28] sm:$0xff]  }
 0x77d   :  { %v3424_v48 = vld [vmem:[%s4704_s12 + $0x10] sm:$0xff]  }
 0x77e   :  { %v2433_v31 = vadd.f32 %v3024_v29, %v2426_v50  ;;  %v2432_v37 = vadd.f32 %v3024_v29, %v2425_v52  ;;  %v2434_v38 = vadd.f32 %v3024_v29, %v2427_v53  ;;  %v3425_v29 = vld [vmem:[%s4704_s12 + $0x18] sm:$0xff]   ;;  %v3039_v50 = vld [vmem:[%s4705_s13 + $0xa] ss:$0 sm:$0xff]  ;;  %s3469_s12 = smov [#allocation8]  }
 0x77f   :  { %s2899_s21 = sshll.u32 %s3469_s12, 4  ;;  %s2900_s21 = int_to_ptr.vmem [resolvable:$true] %s2899_s21 }
 0x780   :  { %v2435_v55 = vpack.c.bf16 %v2433_v31, %v2432_v37  ;;  %v2436_v43 = vpack.c.bf16 %v2434_v38, %v2434_v38  ;;  %p3437_p1 = scmp.lt.s32.totalorder %s2900_s21, %s2900_s21 }
 0x782   :  { %3232 = vmatpush3.bf16.msra.mxu0 %v2435_v55  ;;  %v2450_v60 = vsel %vm2448_vm4, %v2436_v43, 0 }
 0x783   :  { %3233 = vmatprep.subr.bf16.mxu0 %v3457_v25 }
 0x786   :  { %3234 = vmatpush3.bf16.msra.mxu0 %v2450_v60 }
 0x787   :  { %3239 = vmatprep.subr.bf16.mxu0 %v3457_v25 }
 0x789   :  { %3236 = vmatmul.mubr.msk.bf16.vlgmr.msra.gmra.mrb[68].mxu0 %vm2444_vm5, %v3404_v0 }
 0x78a   :  { %3240 = vmatpush3.bf16.msra.mxu0 %v2435_v55  ;;  %3243 = vmatprep.mubr.msk.bf16.mxu0 %vm3463_vm1, %v3457_v25 }
 0x78b   :  { %3241 = vmatprep.subr.bf16.mxu0 %v3457_v25 }
 0x78e   :  { %3242 = vmatpush3.bf16.msra.mxu0 %v2450_v60  ;;  %v3048_v60 = vld [vmem:[%s4705_s13 + $0xb] ss:$0 sm:$0xff] }
 0x78f   :  { %3267 = vmatprep.subr.bf16.mxu0 %v3457_v25 }
 0x791   :  { %3244 = vmatmul.mubr.msk.bf16.vlgmr.msra.gmra.mrb[72].mxu0 %vm2444_vm5, %v3405_v61 }
 0x792   :  { %3283 = vmatprep.mubr.msk.bf16.mxu0 %vm3463_vm1, %v3457_v25  ;;  %3268 = vmatpush3.bf16.msra.mxu0 %v3414_v59 }
 0x793   :  { %3269 = vmatprep.subr.bf16.mxu0 %v3457_v25 }
 0x796   :  { %3270 = vmatpush3.bf16.msra.mxu0 %v3415_v16 }
 0x797   :  { %3271 = vmatprep.subr.bf16.mxu0 %v3457_v25 }
 0x79a   :  { %3272 = vmatpush3.bf16.msra.mxu0 %v3416_v17 }
 0x79b   :  { %3273 = vmatprep.subr.bf16.mxu0 %v3457_v25 }
 0x79e   :  { %3274 = vmatpush3.bf16.msra.mxu0 %v3417_v20 }
 0x79f   :  { %3275 = vmatprep.subr.bf16.mxu0 %v3457_v25 }
 0x7a2   :  { %3276 = vmatpush3.bf16.msra.mxu0 %v3418_v2 }
 0x7a3   :  { %3277 = vmatprep.subr.bf16.mxu0 %v3457_v25 }
 0x7a6   :  { %3278 = vmatpush3.bf16.msra.mxu0 %v3419_v56 }
 0x7a7   :  { %3279 = vmatprep.subr.bf16.mxu0 %v3457_v25 }
 0x7aa   :  { %3280 = vmatpush3.bf16.msra.mxu0 %v3420_v9 }
 0x7ab   :  { %3281 = vmatprep.subr.bf16.mxu0 %v3457_v25 }
 0x7ae   :  { %3282 = vmatpush3.bf16.msra.mxu0 %v3421_v32 }
 0x85c   :  { %v2486_v49 = vpop.f32.mrb[68].mxu0 }
 0x85d   :  { %v3237_v57 = vpop.f32.mrb[69].mxu0 }
 0x85e   :  { %v2489_v11 = vpop.f32.mrb[70].mxu0 }
 0x85f   :  { %v3238_v18 = vpop.f32.mrb[71].mxu0 }
 0x864   :  { %v2537_v51 = vpop.f32.mrb[72].mxu0 }
 0x865   :  { %v2544_v58 = vmax.f32 %v2486_v49, %v2537_v51  ;;  %v3245_v1 = vpop.f32.mrb[73].mxu0 }
 0x866   :  { %v2540_v3 = vpop.f32.mrb[74].mxu0 }
 0x867   :  { %2546 = vst.msk [vmem:[#allocation6] sm:$0xff] %vm365_vm2, %v2544_v58  ;;  %v2545_v5 = vmax.f32 %v2489_v11, %v2540_v3  ;;  %v3246_v7 = vpop.f32.mrb[75].mxu0  ;;  %vm2555_vm2 = vcmask 320672  }
 0x869   :  { %2547 = vst.msk [vmem:[#allocation6 + $0x8] sm:$0xf] %vm409_vm3, %v2545_v5  ;;  %vm2562_vm3 = vcmask 484672  }
 0x86e   :  { %v2550_v13 = vld [vmem:[#allocation6 + $0x2] sm:$0x3]  ;;  %v2557_v23 = vld [vmem:[#allocation6 + $0x4] sm:$0x3]  ;;  %v2548_v30 = vld [vmem:[#allocation6] sm:$0x3] }
 0x86f   :  { %2552 = vrot.lane.b32.xlu0 %v2550_v13, %s3464_s3  ;;  %2559 = vrot.lane.b32.xlu1 %v2557_v23, %s3465_s22  ;;  %2549 = vst.msk [vmem:[#allocation7] sm:$0x3] %vm944_vm7, %v2548_v30  ;;  %v2564_v35 = vld [vmem:[#allocation6 + $0x6] sm:$0x3]  ;;  %vm2569_vm7 = vcmask 648672  }
 0x870   :  { %v2571_v39 = vld [vmem:[#allocation6 + $0x8] sm:$0x3]  ;;  %v2578_v19 = vld [vmem:[#allocation6 + $0xa] sm:$0x3] }
 0x873   :  { %2566 = vrot.lane.b32.xlu0 %v2564_v35, %s3466_s10  ;;  %2573 = vrot.lane.b32.xlu1 %v2571_v39, %s3467_s23 }
 0x877   :  { %2580 = vrot.lane.b32.xlu0 %v2578_v19, %s3468_s24  ;;  %s3432_s24 = scalar_lea.vmem %s2900_s21, 32 }
 0x878   :  { %p3433_p0 = scmp.ne.s32.totalorder %s2900_s21, %s3432_s24  ;;  %p3438_p2 = scmp.lt.s32.totalorder %s3432_s24, %s3432_s24 }
 0x87a   :  { %p3439_p3 = por %p3438_p2, %p3437_p1 }
 0x87c   :  { %p3440_p4 = pnand %p3439_p3, %p3433_p0 }
 0x8e1   :  { %v2553_v44 = vpop.permute.xlu0 %2552  ;;  %v2560_v62 = vpop.permute.xlu1 %2559 }
 0x8e2   :  { %2556 = vst.msk [vmem:[#allocation7] sm:$0x3] %vm2555_vm2, %v2553_v44 }
 0x8e3   :  { %2563 = vst.msk [vmem:[#allocation7] sm:$0x3] %vm2562_vm3, %v2560_v62 }
 0x8e5   :  { %v2567_v4 = vpop.permute.xlu0 %2566  ;;  %v2574_v14 = vpop.permute.xlu1 %2573 }
 0x8e6   :  { %2570 = vst.msk [vmem:[#allocation7] sm:$0x3] %vm2569_vm7, %v2567_v4 }
 0x8e7   :  { %2577 = vst.msk [vmem:[#allocation7] sm:$0x3] %vm2576_vm8, %v2574_v14 }
 0x8e9   :  { %v2581_v33 = vpop.permute.xlu0 %2580 }
 0x8ea   :  { %2584 = vst.msk [vmem:[#allocation7] sm:$0x3] %vm2583_vm9, %v2581_v33 }
 0x8f1   :  { %v2585_v6 = vld [vmem:[#allocation7] sm:$0x3] }
 0x8f2   :  { %v2586_v22 = vpack.c.bf16 %v2585_v6, %v2585_v6 }
 0x8f4   :  { %3264 = vmatmul.mubr.msk.bf16.vlgmr.msra.gmra.mrb[48].mxu1 %vm2652_vm10, %v2586_v22 }
 0x8f5   :  { %3295 = vmatprep.mubr.msk.bf16.mxu1 %vm3463_vm1, %v3457_v25  ;;  %3288 = vmatpush3.bf16.msra.mxu1 %v3422_v34 }
 0x8f6   :  { %3289 = vmatprep.subr.bf16.mxu1 %v3457_v25 }
 0x8f9   :  { %3290 = vmatpush3.bf16.msra.mxu1 %v3423_v21 }
 0x8fa   :  { %3291 = vmatprep.subr.bf16.mxu1 %v3457_v25 }
 0x8fd   :  { %3292 = vmatpush3.bf16.msra.mxu1 %v3424_v48 }
 0x8fe   :  { %3293 = vmatprep.subr.bf16.mxu1 %v3457_v25 }
 0x901   :  { %3294 = vmatpush3.bf16.msra.mxu1 %v3425_v29 }
 0x9c7   :  { %v2693_v40 = vpop.f32.mrb[48].mxu1 }
 0x9c8   :  { %v2694_v41 = vadd.f32 %v3029_v36, %v2693_v40  ;;  %v3265_v26 = vpop.f32.mrb[49].mxu1 }
 0x9c9   :  { %v2696_v27 = vpop.f32.mrb[50].mxu1 }
 0x9ca   :  { %v2699_v42 = vmax.f32 %v2694_v41, 0.0  ;;  %v3266_v46 = vpop.f32.mrb[51].mxu1 }
 0x9cc   :  { %v2700_v28 = vpack.c.bf16 %v2699_v42, %v2699_v42 }
 0x9ce   :  { %3284 = vmatmul.mubr.bf16.vlgmr.msra.gmra.mrb[76].mxu0 %v2700_v28 }
 0xaa1   :  { %v2804_v52 = vpop.f32.mrb[76].mxu0 }
 0xaa2   :  { %v2805_v53 = vadd.f32 %v3039_v50, %v2804_v52  ;;  %v3285_v31 = vpop.f32.mrb[77].mxu0 }
 0xaa3   :  { %v2807_v37 = vpop.f32.mrb[78].mxu0 }
 0xaa4   :  { %v2810_v38 = vmax.f32 %v2805_v53, 0.0  ;;  %v3286_v55 = vpop.f32.mrb[79].mxu0 }
 0xaa6   :  { %v2811_v43 = vpack.c.bf16 %v2810_v38, %v2810_v38 }
 0xaa8   :  { %3296 = vmatmul.mubr.msk.bf16.vlgmr.msra.gmra.mrb[52].mxu1 %vm949_vm6, %v2811_v43 }
 0xb7b   :  { %v2886_v25 = vpop.f32.mrb[52].mxu1 }
 0xb7c   :  { %v2887_v0 = vadd.f32 %v3048_v60, %v2886_v25  ;;  %v3297_v61 = vpop.f32.mrb[53].mxu1 }
 0xb7d   :  { %v2889_v45 = vpop.f32.mrb[54].mxu1 }
 0xb7e   :  { %2892 = vst [vmem:[#allocation8] sm:$0x3] %v2887_v0  ;;  %v3298_v8 = vpop.f32.mrb[55].mxu1 }
 0xb7f   :  { %3443 = shalt.err (!%p3440_p4)
}
 0xb80   :  { %s3444_s13 = scalar_lea.hbm %s4706_s14, 32 }
 0xb81   :  { %p3445_p5 = scmp.ne.s32.totalorder %s4706_s14, %s3444_s13  ;;  %p3448_p6 = scmp.lt.u32.totalorder %s3444_s13, %s4706_s14 }
 0xb83   :  { %p3450_p7 = pnand %p3448_p6, %p3445_p5 }
 0xb85   :  { %3453 = shalt.err (!%p3450_p7)
}
 0xb86   :  { %2902 = dma.vmem_to_hbm [thread:$0]  %s2900_s21, 32, %s4706_s14, [#allocation9]  }
 0xb87   :  { %3454 = dma.done.wait [#allocation9], 32  }
 0xb88   :  { %3455 = vsyncadd [#allocation9], 4294967264 }
 0xb89   :  { %2906 = vsyncpa [#allocation9], 1 }

</bundles_post_ra>
